<compile_context>
chip_gen: v5e
topology: v5e:2x2
jax: 0.10.0
libtpu: 0.0.40
codegen_flags: <defaults>
</compile_context>

<pallas_src>
import numpy as np
import jax
import jax.numpy as jnp
from jax import lax
from jax.experimental import pallas as pl
from jax.experimental.pallas import tpu as pltpu

_BIG = 1e37   # additive exclusion bias: huge, but far from f32 overflow


# ---------------------------------------------------------------------------
# in-kernel helpers
# ---------------------------------------------------------------------------
def _pairwise_sqdist(q, a_t):
    """(TN,3) query tile vs (3,Np) lane-dense slab -> (TN,Np) squared distances."""
    dc = q[:, 0:1] - a_t[0:1, :]
    d = dc * dc                                        # init from c=0 (no zeros+add)
    for c in range(1, q.shape[1]):
        dc = q[:, c:c + 1] - a_t[c:c + 1, :]
        d = d + dc * dc
    return d


def _select_k(d, colf, k):
    """0/1 selection matrix of the k smallest entries per row of d.

    Ties broken by lowest column index (matches lax.top_k).  `d` must already
    contain the additive exclusion bias for self / padded columns.
    """
    np_ = d.shape[1]
    sel = None
    for _ in range(k):                                 # k small & static -> unrolled
        rmin = jnp.min(d, axis=-1, keepdims=True)      # XLU lane reduce
        cand = jnp.where(d <= rmin, colf, float(np_))
        first = jnp.min(cand, axis=-1, keepdims=True)  # first column among ties
        hot = colf == first                            # bool mask, reused twice
        hot_f = hot.astype(jnp.float32)
        sel = hot_f if sel is None else sel + hot_f
        d = jnp.where(hot, _BIG, d)                    # never re-pick this column
    return sel


def _make_kernel(tile_n, n_valid, k, use_norm, metric, two_knn):
    inv_k = 1.0 / float(k)                 # Python float -> literal, not a captured const
    dims = (((1,), (0,)), ((), ()))        # contract Np axis

    def kernel(*refs):
        if two_knn:
            p1_ref, p2_ref, p1t_ref, p2t_ref, pts1_ref, pts2_ref, out_ref = refs
        else:
            p1_ref, p2_ref, p1t_ref, pts1_ref, pts2_ref, out_ref = refs

        t = pl.program_id(1)
        row0 = t * tile_n

        q1 = p1_ref[0]                     # (tile_n, 3)  query tile of point1
        q2 = p2_ref[0]                     # (tile_n, 3)  query tile of point2
        a1 = p1t_ref[0]                    # (3, n_pad)   lane-dense slab (distances)
        pts1 = pts1_ref[0]                 # (n_pad, 3)   MXU slab
        pts2 = pts2_ref[0]

        np_ = a1.shape[1]
        col = lax.broadcasted_iota(jnp.int32, (tile_n, np_), 1)
        row = lax.broadcasted_iota(jnp.int32, (tile_n, np_), 0) + row0
        colf = col.astype(jnp.float32)
        # self + padded-column exclusion as an additive bias, computed once per
        # tile and shared by both KNN selections.
        bias = jnp.where(jnp.logical_or(col >= n_valid, col == row),
                         _BIG, 0.0).astype(jnp.float32)

        sel1 = _select_k(_pairwise_sqdist(q1, a1) + bias, colf, k)
        if two_knn:
            a2 = p2t_ref[0]
            sel2 = _select_k(_pairwise_sqdist(q2, a2) + bias, colf, k)
        else:
            sel2 = sel1

        # Uniform laplacian: mean of selected neighbours minus the point itself.
        # sel is exactly 0/1, so the (TN,Np)x(Np,3) contraction runs on the MXU
        # (idle otherwise) instead of six full-width VPU reduce trees.
        m1 = lax.dot_general(sel1, pts1, dims,
                             precision=lax.Precision.HIGHEST,
                             preferred_element_type=jnp.float32)
        m2 = lax.dot_general(sel2, pts2, dims,
                             precision=lax.Precision.HIGHEST,
                             preferred_element_type=jnp.float32)
        lap1 = m1 * inv_k - q1                                       # (tile_n, 3)
        lap2 = m2 * inv_k - q2

        if use_norm:
            n1 = jnp.sqrt(jnp.sum(lap1 * lap1, axis=-1, keepdims=True))
            n2 = jnp.sqrt(jnp.sum(lap2 * lap2, axis=-1, keepdims=True))
            dv = n1 - n2
            err = dv * dv if metric == "mse" else jnp.abs(dv)        # (tile_n, 1)
        else:
            dv = lap1 - lap2
            e = dv * dv if metric == "mse" else jnp.abs(dv)
            err = jnp.sum(e, axis=-1, keepdims=True)                 # (tile_n, 1)

        rows = lax.broadcasted_iota(jnp.int32, (tile_n, 1), 0) + row0
        err = jnp.where(rows < n_valid, err, 0.0)                    # mask padded rows

        # per-(batch, tile) partial sum -> no revisited accumulator, both grid
        # axes can be "parallel" (v7x dual-TensorCore friendly).
        out_ref[...] = jnp.full((1, 1, 1, 1), jnp.sum(err), dtype=jnp.float32)

    return kernel


# ---------------------------------------------------------------------------
# wrapper
# ---------------------------------------------------------------------------
def point_laplacian_loss(point1, point2, idx12=None, *, nn_size=4, metric="mse",
                         use_norm=False, tile_n=128):
    """metric in {'mse', 'l2', 'l1'} with 'mean' reduction (torch MSELoss / L1Loss)."""
    metric = "mse" if metric in ("mse", "l2") else "l1"
    point1 = jnp.asarray(point1, jnp.float32)
    point2 = jnp.asarray(point2, jnp.float32)
    B, N, D = point1.shape
    assert D == 3, "kernel expects 3-D points"
    assert N > nn_size, "need at least nn_size + 1 points"

    two_knn = idx12 is not None
    if two_knn:
        # correspondence gather (same as torch.gather in the module) -- XLA glue
        idx = jnp.broadcast_to(jnp.asarray(idx12, jnp.int32)[:, :, None], (B, N, 3))
        point2 = jnp.take_along_axis(point2, idx, axis=1)
    else:
        assert point2.shape[1] == N

    assert tile_n % 128 == 0
    n_pad = ((N + tile_n - 1) // tile_n) * tile_n
    n_tiles = n_pad // tile_n
    pad = ((0, 0), (0, n_pad - N), (0, 0))
    p1 = jnp.pad(point1, pad)                          # (B, n_pad, 3)
    p2 = jnp.pad(point2, pad)
    p1t = jnp.transpose(p1, (0, 2, 1))                 # (B, 3, n_pad) lane-dense

    q_spec = pl.BlockSpec((1, tile_n, 3), lambda b, t: (b, t, 0))
    slab_t_spec = pl.BlockSpec((1, 3, n_pad), lambda b, t: (b, 0, 0))   # resident / batch
    slab_spec = pl.BlockSpec((1, n_pad, 3), lambda b, t: (b, 0, 0))     # resident / batch

    inputs = [p1, p2, p1t]
    in_specs = [q_spec, q_spec, slab_t_spec]
    if two_knn:
        inputs.append(jnp.transpose(p2, (0, 2, 1)))
        in_specs.append(slab_t_spec)
    inputs += [p1, p2]                                 # (n_pad, 3) slabs for the MXU
    in_specs += [slab_spec, slab_spec]

    # VMEM budget: resident slabs (double-buffered), query tiles, plus the live
    # (tile_n, n_pad) f32 temporaries of the selection loop.
    slab_bytes = 3 * n_pad * 4
    n_slabs = 4 if two_knn else 3
    temp_bytes = 8 * tile_n * n_pad * 4
    vmem_needed = 2 * n_slabs * slab_bytes + 4 * tile_n * 3 * 4 + temp_bytes + (4 << 20)
    vmem_limit = int(min(max(vmem_needed, 32 << 20), 64 << 20))   # cap for v7x physical VMEM

    kernel = _make_kernel(tile_n, N, nn_size, use_norm, metric, two_knn)

    partial = pl.pallas_call(
        kernel,
        grid=(B, n_tiles),
        out_shape=jax.ShapeDtypeStruct((B, n_tiles, 1, 1), jnp.float32),
        in_specs=in_specs,
        out_specs=pl.BlockSpec((1, 1, 1, 1), lambda b, t: (b, t, 0, 0)),
        compiler_params=pltpu.CompilerParams(
            dimension_semantics=("parallel", "parallel"),
            vmem_limit_bytes=vmem_limit),
    )(*inputs)

    denom = B * N * (1 if use_norm else 3)             # 'mean' reduction of the metric
    return jnp.sum(partial) / denom


# ---------------------------------------------------------------------------
# pure-JAX reference (straightforward top_k implementation) for the self-check
# ---------------------------------------------------------------------------
def _ref_point_laplacian_loss(point1, point2, idx12=None, nn_size=4,
                              metric="mse", use_norm=False):
    p1 = jnp.asarray(point1, jnp.float32)
    p2 = jnp.asarray(point2, jnp.float32)
    B, N, _ = p1.shape
    if idx12 is not None:
        idx = jnp.broadcast_to(jnp.asarray(idx12, jnp.int32)[:, :, None], (B, N, 3))
        p2 = jnp.take_along_axis(p2, idx, axis=1)

    def knn_idx_of(p):
        diff = p[:, :, None, :] - p[:, None, :, :]
        d = jnp.sum(diff * diff, axis=-1)
        d = jnp.where(jnp.eye(N, dtype=bool)[None], jnp.inf, d)
        _, idx = lax.top_k(-d, nn_size)
        return idx

    def uniform_lap(p, idx):
        nbr = jax.vmap(lambda pts, ix: pts[ix])(p, idx)   # (B, N, K, 3)
        return jnp.mean(nbr, axis=2) - p

    idx1 = knn_idx_of(p1)
    lap1 = uniform_lap(p1, idx1)
    if idx12 is not None:
        lap2 = uniform_lap(p2, knn_idx_of(p2))
    else:
        lap2 = uniform_lap(p2, idx1)
    if use_norm:
        lap1 = jnp.sqrt(jnp.sum(lap1 * lap1, axis=-1))
        lap2 = jnp.sqrt(jnp.sum(lap2 * lap2, axis=-1))
    diff = lap1 - lap2
    return jnp.mean(diff * diff) if metric == "mse" else jnp.mean(jnp.abs(diff))


# ---------------------------------------------------------------------------
if __name__ == "__main__":
    B, N, K = 2, 64, 4
    key = jax.random.PRNGKey(0)
    k1, k2, k3 = jax.random.split(key, 3)
    point1 = jax.random.normal(k1, (B, N, 3), dtype=jnp.float32)
    point2 = point1 + 0.05 * jax.random.normal(k2, (B, N, 3), dtype=jnp.float32)

    # 1) MSE metric on raw laplacian vectors (shared KNN from point1)
    loss = jax.block_until_ready(
        point_laplacian_loss(point1, point2, nn_size=K, metric="mse", use_norm=False))
    ref = jax.block_until_ready(
        _ref_point_laplacian_loss(point1, point2, nn_size=K, metric="mse", use_norm=False))
    np.testing.assert_allclose(np.asarray(loss), np.asarray(ref), rtol=2e-4, atol=1e-6)

    # 2) L1 metric on laplacian norms (use_norm=True path)
    loss_n = jax.block_until_ready(
        point_laplacian_loss(point1, point2, nn_size=K, metric="l1", use_norm=True))
    ref_n = jax.block_until_ready(
        _ref_point_laplacian_loss(point1, point2, nn_size=K, metric="l1", use_norm=True))
    np.testing.assert_allclose(np.asarray(loss_n), np.asarray(ref_n), rtol=2e-4, atol=1e-6)

    # 3) explicit correspondence idx12 (point2 re-indexed, computes its own KNN)
    idx12 = jnp.stack(
        [jax.random.permutation(jax.random.fold_in(k3, b), N) for b in range(B)])
    loss_c = jax.block_until_ready(
        point_laplacian_loss(point1, point2, idx12, nn_size=K, metric="mse", use_norm=False))
    ref_c = jax.block_until_ready(
        _ref_point_laplacian_loss(point1, point2, idx12, nn_size=K, metric="mse",
                                  use_norm=False))
    np.testing.assert_allclose(np.asarray(loss_c), np.asarray(ref_c), rtol=2e-4, atol=1e-6)

    print("KERNEL_OK")
</pallas_src>

<mosaic_0001>
module attributes {stable_mosaic.version = 11 : i64} {
  func.func @kernel(%arg0: i32, %arg1: i32, %arg2: memref<1x128x3xf32, #tpu.memory_space<vmem>>, %arg3: memref<1x128x3xf32, #tpu.memory_space<vmem>>, %arg4: memref<1x3x128xf32, #tpu.memory_space<vmem>>, %arg5: memref<1x128x3xf32, #tpu.memory_space<vmem>>, %arg6: memref<1x128x3xf32, #tpu.memory_space<vmem>>, %arg7: memref<1x1x1x1xf32, #tpu.memory_space<vmem>>) attributes {dimension_semantics = [#tpu.dimension_semantics<parallel>, #tpu.dimension_semantics<parallel>], iteration_bounds = array<i64: 2, 1>, scalar_prefetch = 0 : i64, scratch_operands = 0 : i64, tpu.core_type = #tpu.core_type<tc>, window_params = [{transform_indices = @transform_0, window_bounds = array<i64: 1, 128, 3>}, {transform_indices = @transform_1, window_bounds = array<i64: 1, 128, 3>}, {transform_indices = @transform_2, window_bounds = array<i64: 1, 3, 128>}, {transform_indices = @transform_3, window_bounds = array<i64: 1, 128, 3>}, {transform_indices = @transform_4, window_bounds = array<i64: 1, 128, 3>}, {transform_indices = @transform_5, window_bounds = array<i64: 1, 1, 1, 1>}]} {
    %c128_i32 = arith.constant 128 : i32
    %0 = arith.muli %arg1, %c128_i32 : i32
    %c0 = arith.constant 0 : index
    %c0_0 = arith.constant 0 : index
    %c0_1 = arith.constant 0 : index
    %1 = vector.load %arg2[%c0, %c0_0, %c0_1] : memref<1x128x3xf32, #tpu.memory_space<vmem>>, vector<1x128x3xf32>
    %2 = vector.shape_cast %1 : vector<1x128x3xf32> to vector<128x3xf32>
    %c0_2 = arith.constant 0 : index
    %c0_3 = arith.constant 0 : index
    %c0_4 = arith.constant 0 : index
    %3 = vector.load %arg3[%c0_2, %c0_3, %c0_4] : memref<1x128x3xf32, #tpu.memory_space<vmem>>, vector<1x128x3xf32>
    %4 = vector.shape_cast %3 : vector<1x128x3xf32> to vector<128x3xf32>
    %c0_5 = arith.constant 0 : index
    %c0_6 = arith.constant 0 : index
    %c0_7 = arith.constant 0 : index
    %5 = vector.load %arg4[%c0_5, %c0_6, %c0_7] : memref<1x3x128xf32, #tpu.memory_space<vmem>>, vector<1x3x128xf32>
    %6 = vector.shape_cast %5 : vector<1x3x128xf32> to vector<3x128xf32>
    %c0_8 = arith.constant 0 : index
    %c0_9 = arith.constant 0 : index
    %c0_10 = arith.constant 0 : index
    %7 = vector.load %arg5[%c0_8, %c0_9, %c0_10] : memref<1x128x3xf32, #tpu.memory_space<vmem>>, vector<1x128x3xf32>
    %8 = vector.shape_cast %7 : vector<1x128x3xf32> to vector<128x3xf32>
    %c0_11 = arith.constant 0 : index
    %c0_12 = arith.constant 0 : index
    %c0_13 = arith.constant 0 : index
    %9 = vector.load %arg6[%c0_11, %c0_12, %c0_13] : memref<1x128x3xf32, #tpu.memory_space<vmem>>, vector<1x128x3xf32>
    %10 = vector.shape_cast %9 : vector<1x128x3xf32> to vector<128x3xf32>
    %11 = tpu.iota {dimensions = array<i32: 1>} : vector<128x128xi32>
    %12 = tpu.iota {dimensions = array<i32: 0>} : vector<128x128xi32>
    %13 = vector.broadcast %0 : i32 to vector<128x128xi32>
    %14 = arith.addi %12, %13 : vector<128x128xi32>
    %15 = arith.sitofp %11 : vector<128x128xi32> to vector<128x128xf32>
    %c64_i32 = arith.constant 64 : i32
    %16 = vector.broadcast %c64_i32 : i32 to vector<128x128xi32>
    %17 = arith.cmpi sge, %11, %16 : vector<128x128xi32>
    %18 = arith.cmpi eq, %11, %14 : vector<128x128xi32>
    %19 = arith.ori %17, %18 : vector<128x128xi1>
    %cst = arith.constant 9.99999993E+36 : f32
    %cst_14 = arith.constant 0.000000e+00 : f32
    %20 = vector.broadcast %cst : f32 to vector<128x128xf32>
    %21 = vector.broadcast %cst_14 : f32 to vector<128x128xf32>
    %22 = arith.select %19, %20, %21 : vector<128x128xi1>, vector<128x128xf32>
    %23 = vector.extract_strided_slice %2 {offsets = [0, 0], sizes = [128, 1], strides = [1, 1]} : vector<128x3xf32> to vector<128x1xf32>
    %24 = vector.extract_strided_slice %6 {offsets = [0, 0], sizes = [1, 128], strides = [1, 1]} : vector<3x128xf32> to vector<1x128xf32>
    %25 = vector.broadcast %23 : vector<128x1xf32> to vector<128x128xf32>
    %26 = vector.broadcast %24 : vector<1x128xf32> to vector<128x128xf32>
    %27 = arith.subf %25, %26 : vector<128x128xf32>
    %28 = arith.mulf %27, %27 : vector<128x128xf32>
    %29 = vector.extract_strided_slice %2 {offsets = [0, 1], sizes = [128, 1], strides = [1, 1]} : vector<128x3xf32> to vector<128x1xf32>
    %30 = vector.extract_strided_slice %6 {offsets = [1, 0], sizes = [1, 128], strides = [1, 1]} : vector<3x128xf32> to vector<1x128xf32>
    %31 = vector.broadcast %29 : vector<128x1xf32> to vector<128x128xf32>
    %32 = vector.broadcast %30 : vector<1x128xf32> to vector<128x128xf32>
    %33 = arith.subf %31, %32 : vector<128x128xf32>
    %34 = arith.mulf %33, %33 : vector<128x128xf32>
    %35 = arith.addf %28, %34 : vector<128x128xf32>
    %36 = vector.extract_strided_slice %2 {offsets = [0, 2], sizes = [128, 1], strides = [1, 1]} : vector<128x3xf32> to vector<128x1xf32>
    %37 = vector.extract_strided_slice %6 {offsets = [2, 0], sizes = [1, 128], strides = [1, 1]} : vector<3x128xf32> to vector<1x128xf32>
    %38 = vector.broadcast %36 : vector<128x1xf32> to vector<128x128xf32>
    %39 = vector.broadcast %37 : vector<1x128xf32> to vector<128x128xf32>
    %40 = arith.subf %38, %39 : vector<128x128xf32>
    %41 = arith.mulf %40, %40 : vector<128x128xf32>
    %42 = arith.addf %35, %41 : vector<128x128xf32>
    %43 = arith.addf %42, %22 : vector<128x128xf32>
    %cst_15 = arith.constant dense<0x7F800000> : vector<128xf32>
    %44 = vector.multi_reduction <minimumf>, %43, %cst_15 [1] : vector<128x128xf32> to vector<128xf32>
    %45 = vector.shape_cast %44 : vector<128xf32> to vector<128x1xf32>
    %46 = vector.broadcast %45 : vector<128x1xf32> to vector<128x128xf32>
    %47 = arith.cmpf ole, %43, %46 : vector<128x128xf32>
    %cst_16 = arith.constant 1.280000e+02 : f32
    %48 = vector.broadcast %cst_16 : f32 to vector<128x128xf32>
    %49 = arith.select %47, %15, %48 : vector<128x128xi1>, vector<128x128xf32>
    %cst_17 = arith.constant dense<0x7F800000> : vector<128xf32>
    %50 = vector.multi_reduction <minimumf>, %49, %cst_17 [1] : vector<128x128xf32> to vector<128xf32>
    %51 = vector.shape_cast %50 : vector<128xf32> to vector<128x1xf32>
    %52 = vector.broadcast %51 : vector<128x1xf32> to vector<128x128xf32>
    %53 = arith.cmpf oeq, %15, %52 : vector<128x128xf32>
    %54 = arith.extui %53 : vector<128x128xi1> to vector<128x128xi32>
    %55 = arith.sitofp %54 : vector<128x128xi32> to vector<128x128xf32>
    %cst_18 = arith.constant 9.99999993E+36 : f32
    %56 = vector.broadcast %cst_18 : f32 to vector<128x128xf32>
    %57 = arith.select %53, %56, %43 : vector<128x128xi1>, vector<128x128xf32>
    %cst_19 = arith.constant dense<0x7F800000> : vector<128xf32>
    %58 = vector.multi_reduction <minimumf>, %57, %cst_19 [1] : vector<128x128xf32> to vector<128xf32>
    %59 = vector.shape_cast %58 : vector<128xf32> to vector<128x1xf32>
    %60 = vector.broadcast %59 : vector<128x1xf32> to vector<128x128xf32>
    %61 = arith.cmpf ole, %57, %60 : vector<128x128xf32>
    %cst_20 = arith.constant 1.280000e+02 : f32
    %62 = vector.broadcast %cst_20 : f32 to vector<128x128xf32>
    %63 = arith.select %61, %15, %62 : vector<128x128xi1>, vector<128x128xf32>
    %cst_21 = arith.constant dense<0x7F800000> : vector<128xf32>
    %64 = vector.multi_reduction <minimumf>, %63, %cst_21 [1] : vector<128x128xf32> to vector<128xf32>
    %65 = vector.shape_cast %64 : vector<128xf32> to vector<128x1xf32>
    %66 = vector.broadcast %65 : vector<128x1xf32> to vector<128x128xf32>
    %67 = arith.cmpf oeq, %15, %66 : vector<128x128xf32>
    %68 = arith.extui %67 : vector<128x128xi1> to vector<128x128xi32>
    %69 = arith.sitofp %68 : vector<128x128xi32> to vector<128x128xf32>
    %70 = arith.addf %55, %69 : vector<128x128xf32>
    %cst_22 = arith.constant 9.99999993E+36 : f32
    %71 = vector.broadcast %cst_22 : f32 to vector<128x128xf32>
    %72 = arith.select %67, %71, %57 : vector<128x128xi1>, vector<128x128xf32>
    %cst_23 = arith.constant dense<0x7F800000> : vector<128xf32>
    %73 = vector.multi_reduction <minimumf>, %72, %cst_23 [1] : vector<128x128xf32> to vector<128xf32>
    %74 = vector.shape_cast %73 : vector<128xf32> to vector<128x1xf32>
    %75 = vector.broadcast %74 : vector<128x1xf32> to vector<128x128xf32>
    %76 = arith.cmpf ole, %72, %75 : vector<128x128xf32>
    %cst_24 = arith.constant 1.280000e+02 : f32
    %77 = vector.broadcast %cst_24 : f32 to vector<128x128xf32>
    %78 = arith.select %76, %15, %77 : vector<128x128xi1>, vector<128x128xf32>
    %cst_25 = arith.constant dense<0x7F800000> : vector<128xf32>
    %79 = vector.multi_reduction <minimumf>, %78, %cst_25 [1] : vector<128x128xf32> to vector<128xf32>
    %80 = vector.shape_cast %79 : vector<128xf32> to vector<128x1xf32>
    %81 = vector.broadcast %80 : vector<128x1xf32> to vector<128x128xf32>
    %82 = arith.cmpf oeq, %15, %81 : vector<128x128xf32>
    %83 = arith.extui %82 : vector<128x128xi1> to vector<128x128xi32>
    %84 = arith.sitofp %83 : vector<128x128xi32> to vector<128x128xf32>
    %85 = arith.addf %70, %84 : vector<128x128xf32>
    %cst_26 = arith.constant 9.99999993E+36 : f32
    %86 = vector.broadcast %cst_26 : f32 to vector<128x128xf32>
    %87 = arith.select %82, %86, %72 : vector<128x128xi1>, vector<128x128xf32>
    %cst_27 = arith.constant dense<0x7F800000> : vector<128xf32>
    %88 = vector.multi_reduction <minimumf>, %87, %cst_27 [1] : vector<128x128xf32> to vector<128xf32>
    %89 = vector.shape_cast %88 : vector<128xf32> to vector<128x1xf32>
    %90 = vector.broadcast %89 : vector<128x1xf32> to vector<128x128xf32>
    %91 = arith.cmpf ole, %87, %90 : vector<128x128xf32>
    %cst_28 = arith.constant 1.280000e+02 : f32
    %92 = vector.broadcast %cst_28 : f32 to vector<128x128xf32>
    %93 = arith.select %91, %15, %92 : vector<128x128xi1>, vector<128x128xf32>
    %cst_29 = arith.constant dense<0x7F800000> : vector<128xf32>
    %94 = vector.multi_reduction <minimumf>, %93, %cst_29 [1] : vector<128x128xf32> to vector<128xf32>
    %95 = vector.shape_cast %94 : vector<128xf32> to vector<128x1xf32>
    %96 = vector.broadcast %95 : vector<128x1xf32> to vector<128x128xf32>
    %97 = arith.cmpf oeq, %15, %96 : vector<128x128xf32>
    %98 = arith.extui %97 : vector<128x128xi1> to vector<128x128xi32>
    %99 = arith.sitofp %98 : vector<128x128xi32> to vector<128x128xf32>
    %100 = arith.addf %85, %99 : vector<128x128xf32>
    %cst_30 = arith.constant dense<0.000000e+00> : vector<128x3xf32>
    %101 = tpu.matmul %100, %8, %cst_30 {dimension_numbers = #tpu.dot_dimension_numbers<[1], [0], [0], [1], [0, 0, 1, 1], [], []>, precision = #tpu.contract_precision<fp32>} : vector<128x128xf32>, vector<128x3xf32>, vector<128x3xf32> -> vector<128x3xf32>
    %cst_31 = arith.constant dense<0.000000e+00> : vector<128x3xf32>
    %102 = tpu.matmul %100, %10, %cst_31 {dimension_numbers = #tpu.dot_dimension_numbers<[1], [0], [0], [1], [0, 0, 1, 1], [], []>, precision = #tpu.contract_precision<fp32>} : vector<128x128xf32>, vector<128x3xf32>, vector<128x3xf32> -> vector<128x3xf32>
    %cst_32 = arith.constant 2.500000e-01 : f32
    %103 = vector.broadcast %cst_32 : f32 to vector<128x3xf32>
    %104 = arith.mulf %101, %103 : vector<128x3xf32>
    %105 = arith.subf %104, %2 : vector<128x3xf32>
    %cst_33 = arith.constant 2.500000e-01 : f32
    %106 = vector.broadcast %cst_33 : f32 to vector<128x3xf32>
    %107 = arith.mulf %102, %106 : vector<128x3xf32>
    %108 = arith.subf %107, %4 : vector<128x3xf32>
    %109 = arith.subf %105, %108 : vector<128x3xf32>
    %110 = arith.mulf %109, %109 : vector<128x3xf32>
    %cst_34 = arith.constant dense<0.000000e+00> : vector<128xf32>
    %111 = vector.multi_reduction <add>, %110, %cst_34 [1] : vector<128x3xf32> to vector<128xf32>
    %112 = vector.shape_cast %111 : vector<128xf32> to vector<128x1xf32>
    %113 = tpu.iota {dimensions = array<i32: 0>} : vector<128x1xi32>
    %114 = vector.broadcast %0 : i32 to vector<128x1xi32>
    %115 = arith.addi %113, %114 : vector<128x1xi32>
    %c64_i32_35 = arith.constant 64 : i32
    %116 = vector.broadcast %c64_i32_35 : i32 to vector<128x1xi32>
    %117 = arith.cmpi slt, %115, %116 : vector<128x1xi32>
    %cst_36 = arith.constant 0.000000e+00 : f32
    %118 = vector.broadcast %cst_36 : f32 to vector<128x1xf32>
    %119 = arith.select %117, %112, %118 : vector<128x1xi1>, vector<128x1xf32>
    %120 = vector.shape_cast %119 : vector<128x1xf32> to vector<1x128x1xf32>
    %cst_37 = arith.constant dense<0.000000e+00> : vector<1xf32>
    %121 = vector.multi_reduction <add>, %120, %cst_37 [1, 2] : vector<1x128x1xf32> to vector<1xf32>
    %122 = vector.shape_cast %121 : vector<1xf32> to vector<1x1x1xf32>
    %123 = vector.extract %122[0, 0, 0] : f32 from vector<1x1x1xf32>
    %124 = vector.broadcast %123 : f32 to vector<1x1x1x1xf32>
    %c0_38 = arith.constant 0 : index
    %c0_39 = arith.constant 0 : index
    %c0_40 = arith.constant 0 : index
    %c0_41 = arith.constant 0 : index
    %125 = vector.load %arg7[%c0_38, %c0_39, %c0_40, %c0_41] : memref<1x1x1x1xf32, #tpu.memory_space<vmem>>, vector<1x1x1x1xf32>
    tpu.vector_store %arg7[%c0_38, %c0_39, %c0_40, %c0_41], %124 {strides = array<i32>} : memref<1x1x1x1xf32, #tpu.memory_space<vmem>>, vector<1x1x1x1xf32>,
    return
  }
  func.func @transform_0(%arg0: i32, %arg1: i32) -> (i32, i32, i32) {
    %c0_i32 = arith.constant 0 : i32
    %c0_i32_0 = arith.constant 0 : i32
    return %arg0, %arg1, %c0_i32 : i32, i32, i32
  }
  func.func @transform_1(%arg0: i32, %arg1: i32) -> (i32, i32, i32) {
    %c0_i32 = arith.constant 0 : i32
    %c0_i32_0 = arith.constant 0 : i32
    return %arg0, %arg1, %c0_i32 : i32, i32, i32
  }
  func.func @transform_2(%arg0: i32, %arg1: i32) -> (i32, i32, i32) {
    %c0_i32 = arith.constant 0 : i32
    %c0_i32_0 = arith.constant 0 : i32
    %c0_i32_1 = arith.constant 0 : i32
    return %arg0, %c0_i32, %c0_i32_0 : i32, i32, i32
  }
  func.func @transform_3(%arg0: i32, %arg1: i32) -> (i32, i32, i32) {
    %c0_i32 = arith.constant 0 : i32
    %c0_i32_0 = arith.constant 0 : i32
    %c0_i32_1 = arith.constant 0 : i32
    return %arg0, %c0_i32, %c0_i32_0 : i32, i32, i32
  }
  func.func @transform_4(%arg0: i32, %arg1: i32) -> (i32, i32, i32) {
    %c0_i32 = arith.constant 0 : i32
    %c0_i32_0 = arith.constant 0 : i32
    %c0_i32_1 = arith.constant 0 : i32
    return %arg0, %c0_i32, %c0_i32_0 : i32, i32, i32
  }
  func.func @transform_5(%arg0: i32, %arg1: i32) -> (i32, i32, i32, i32) {
    %c0_i32 = arith.constant 0 : i32
    %c0_i32_0 = arith.constant 0 : i32
    %c0_i32_1 = arith.constant 0 : i32
    return %arg0, %arg1, %c0_i32, %c0_i32_0 : i32, i32, i32, i32
  }
}

</mosaic_0001>

<bundles_post_ra>
// kernel: tpu_custom_call.1
= control target key start
LH: loop header
LB: loop body
LE: loop exit
PB: predicated region body
PF: predicated region fallthrough
CT: control target
= control target key end

     0   :  { %s3689_s18 = smov 0   ;;  %s3691_s19 = smov 0   ;;  %s5818_s0 = inlined_call_operand.vmem [shape: f32[2,128,3], index: 0, kind: input, shape index: {}]   ;;  %s5819_s1 = inlined_call_operand.vmem [shape: f32[2,128,3], index: 1, kind: input, shape index: {}]   ;;  %s5820_s2 = inlined_call_operand.vmem [shape: f32[2,3,128], index: 2, kind: input, shape index: {}]   ;;  %s5821_s3 = inlined_call_operand.vmem [shape: f32[2,128,3], index: 3, kind: input, shape index: {}]   ;;  %s5822_s4 = inlined_call_operand.vmem [shape: f32[2,128,3], index: 4, kind: input, shape index: {}]   ;;  %s5823_s5 = inlined_call_operand.vmem [shape: f32[2,1,1,1], index: 5, kind: output, shape index: {}]  }
   0x1   :  { %s3693_s20 = smov 0  }
   0x2 LB: > { %s27_s21 = sadd.s32 1, %s3649_s19  ;;  %p3491_p0 = scmp.ge.s32.totalorder %s3653_s20, 1  ;;  %s3653_s20 = sphi %s3693_s20, %s15_s20   ;;  %s3649_s19 = sphi %s3691_s19, %s6058_s19   ;;  %s3645_s18 = sphi %s3689_s18, %s6057_s18  }
   0x3   : > { %p29_p1 = scmp.ge.s32.totalorder %s27_s21, 2  ;;  %p254_p2 = scmp.lt.s32.totalorder %s3653_s20, 3 }
   0x5   : > { %s6060_s21 = smov (%p29_p1, %s27_s21), 0  ;;  %p255_p3 = pnand %p3491_p0, %p254_p2 }
   0x7   : > { %258 = sbr.rel (%p255_p3) target bundleno = 2220 (0x8ac), region = 40 }
   0xc   : > { %p311_p4 = scmp.lt.s32.totalorder %s3645_s18, 1  ;;  %v3655_v0 = vmov 2   ;;  %v3656_v1 = vmov 1   ;;  %v3657_v5 = vmov 0   ;;  %v416_v13 = vlaneseq }
   0xd   : > { %3602 = vset.pattern.permute.xlu1 %v3655_v0  ;;  %3604 = vset.pattern.permute.xlu2 %v3656_v1  ;;  %v5827_v34 = vmov 0.0  }
   0xe   : > { %3601 = vset.pattern.permute.xlu0 %v3656_v1  ;;  %s6062_s18 = smov (!%p311_p4, %s3645_s18), 1  ;;  %v3751_v18 = vshrl.u32 %v416_v13, 7  ;;  %v3757_v21 = vand.u32 127, %v416_v13 }
   0xf   : > { %s3713_s22 = sshll.u32 %s6062_s18, 7  ;;  %s3496_s26 = sshll.u32 %s6062_s18, 2 }
  0x10   : > { %s3719_s25 = scalar_lea.vmem %s5818_s0, %s3713_s22  ;;  %s333_s29 = scalar_lea.vmem %s5820_s2, %s3496_s26  ;;  %v420_v22 = vadd.s32 8, %v3751_v18  ;;  %vm453_vm0 = vcmp.ge.s32.totalorder %v3757_v21, 64  ;;  %vm454_vm3 = vcmp.eq.s32.totalorder %v3757_v21, %v3751_v18  ;;  %v422_v55 = vadd.s32 24, %v3751_v18 }
  0x11   : > { %v352_v2 = vld [vmem:[%s3719_s25 + $0x8] sm:$0xff]  ;;  %v351_v3 = vld [vmem:[%s3719_s25] sm:$0xff]  ;;  %v353_v6 = vld [vmem:[%s3719_s25 + $0x10] sm:$0xff]  ;;  %v421_v63 = vadd.s32 16, %v3751_v18  ;;  %s4526_s7 = scalar_lea.vmem %s5821_s3, %s3713_s22  ;;  %s5036_s10 = scalar_lea.vmem %s5822_s4, %s3713_s22 }
  0x12   : > { %620 = vperm.xlu2 %3604, %v352_v2   ;;  %729 = vperm.xlu1 %3602, %v351_v3   ;;  %v355_v4 = vld [vmem:[%s3719_s25 + $0x20] sm:$0xff]  ;;  %v354_v7 = vld [vmem:[%s3719_s25 + $0x18] sm:$0xff]  ;;  %v357_v8 = vld [vmem:[%s3719_s25 + $0x30] sm:$0xff]  ;;  %vm455_vm1 = vcmp.eq.s32.totalorder %v3757_v21, %v420_v22  ;;  %vm457_vm5 = vcmp.eq.s32.totalorder %v3757_v21, %v422_v55  ;;  %s5728_s13 = scalar_lea.vmem %s5819_s1, %s3713_s22  ;;  %s349_s16 = scalar_lea.vmem %s5823_s5, %s6062_s18 }
  0x13   : > { %616 = vperm.xlu0 %3601, %v351_v3   ;;  %v358_v9 = vld [vmem:[%s3719_s25 + $0x38] sm:$0xff]  ;;  %v356_v10 = vld [vmem:[%s3719_s25 + $0x28] sm:$0xff]  ;;  %v3743_v11 = vld [vmem:[%s3719_s25 + $0x40] sm:$0xff]  ;;  %vm456_vm7 = vcmp.eq.s32.totalorder %v3757_v21, %v421_v63  ;;  %v425_v63 = vadd.s32 48, %v3751_v18 }
  0x14   : > { %v383_v17 = vld [vmem:[%s333_s29] sm:$0x7]  ;;  %vm471_vm2 = vmor %vm453_vm0, %vm455_vm1  ;;  %v361_v55 = vld [vmem:[%s3719_s25 + $0x50] sm:$0xff] }
  0x15   : > { %v3753_v19 = vperm.slane %v383_v17, 1  ;;  %v3755_v20 = vperm.slane %v383_v17, 2  ;;  %v3760_v23 = vperm.slane %v383_v17, 0  ;;  %v487_v35 = vsel %vm471_vm2, 1e+37, %v5827_v34  ;;  %vm470_vm4 = vmor %vm453_vm0, %vm454_vm3 }
  0x16   : > { %v486_v48 = vsel %vm470_vm4, 1e+37, %v5827_v34  ;;  %vm473_vm6 = vmor %vm453_vm0, %vm457_vm5  ;;  %v423_v17 = vadd.s32 32, %v3751_v18  ;;  %vm460_vm13 = vcmp.eq.s32.totalorder %v3757_v21, %v425_v63 }
  0x17   : > { %vm472_vm8 = vmor %vm453_vm0, %vm456_vm7 }
  0x18   : > { %vm458_vm9 = vcmp.eq.s32.totalorder %v3757_v21, %v423_v17  ;;  %vm476_vm14 = vmor %vm453_vm0, %vm460_vm13 }
  0x19   : > { %vm474_vm10 = vmor %vm453_vm0, %vm458_vm9 }
  0x1a   : > { %3605 = vset.pattern.permute.xlu2 %v3655_v0  ;;  %3603 = vset.pattern.permute.xlu1 %v3657_v5 }
  0x1b   : > { %632 = vperm.xlu0 %3601, %v355_v4   ;;  %733 = vperm.xlu2 %3605, %v352_v2  }
  0x1c   : > { %509 = vperm.xlu1 %3603, %v352_v2  }
  0x23   : > { %3609 = vset.pattern.permute.xlu0 %v3657_v5  ;;  %3606 = vset.pattern.permute.xlu2 %v3656_v1 }
  0x24   : > { %514 = vperm.xlu1 %3603, %v353_v6   ;;  %504 = vperm.xlu0 %3609, %v351_v3  }
  0x25   : > { %624 = vperm.xlu2 %3606, %v353_v6  }
  0x2c   : > { %519 = vperm.xlu1 %3603, %v354_v7   ;;  %534 = vperm.xlu0 %3609, %v357_v8  }
  0x2d   : > { %628 = vperm.xlu2 %3606, %v354_v7  }
  0x34   : > { %3607 = vset.pattern.permute.xlu1 %v3655_v0  ;;  %539 = vperm.xlu0 %3609, %v358_v9  }
  0x35   : > { %3608 = vset.pattern.permute.xlu2 %v3657_v5  ;;  %741 = vperm.xlu1 %3607, %v354_v7   ;;  %v489_v7 = vsel %vm473_vm6, 1e+37, %v5827_v34 }
  0x36   : > { %524 = vperm.xlu2 %3608, %v355_v4  }
  0x3c   : > { %3613 = vset.pattern.permute.xlu0 %v3655_v0 }
  0x3d   : > { %745 = vperm.xlu1 %3607, %v355_v4   ;;  %737 = vperm.xlu0 %3613, %v353_v6  }
  0x3e   : > { %529 = vperm.xlu2 %3608, %v356_v10  }
  0x45   : > { %3610 = vset.pattern.permute.xlu1 %v3656_v1 }
  0x46   : > { %636 = vperm.xlu1 %3610, %v356_v10   ;;  %3611 = vset.pattern.permute.xlu2 %v3655_v0 }
  0x47   : > { %749 = vperm.xlu2 %3611, %v356_v10  }
  0x4e   : > { %640 = vperm.xlu1 %3610, %v357_v8  }
  0x4f   : > { %3617 = vset.pattern.permute.xlu2 %v3656_v1 }
  0x56   : > { %3612 = vset.pattern.permute.xlu1 %v3655_v0 }
  0x57   : > { %753 = vperm.xlu1 %3612, %v357_v8  }
  0x5f   : > { %3614 = vset.pattern.permute.xlu1 %v3656_v1 }
  0x60   : > { %644 = vperm.xlu1 %3614, %v358_v9  }
  0x68   : > { %3615 = vset.pattern.permute.xlu1 %v3655_v0 }
  0x69   : > { %757 = vperm.xlu1 %3615, %v358_v9  }
  0x6c   : > { %v621_v12 = vpop.permute.xlu2 %620 }
  0x6d   : > { %v681_v24 = vsub.f32 %v621_v12, %v3753_v19 }
  0x6f   : > { %v697_v29 = vmul.f32 %v681_v24, %v681_v24 }
  0x71   : > { %761 = vperm.xlu1 %3615, %v3743_v11  }
  0x75   : > { %v734_v14 = vpop.permute.xlu2 %733 }
  0x76   : > { %v794_v25 = vsub.f32 %v734_v14, %v3755_v20 }
  0x78   : > { %v810_v31 = vmul.f32 %v794_v25, %v794_v25 }
  0x79   : > { %3616 = vset.pattern.permute.xlu1 %v3656_v1 }
  0x7f   : > { %v625_v27 = vpop.permute.xlu2 %624 }
  0x80   : > { %v682_v2 = vsub.f32 %v625_v27, %v3753_v19 }
  0x82   : > { %v698_v9 = vmul.f32 %v682_v2, %v682_v2 }
  0x84   : > { %v730_v15 = vpop.permute.xlu1 %729 }
  0x85   : > { %v617_v16 = vpop.permute.xlu0 %616  ;;  %v793_v37 = vsub.f32 %v730_v15, %v3755_v20 }
  0x86   : > { %v680_v36 = vsub.f32 %v617_v16, %v3753_v19 }
  0x87   : > { %v629_v43 = vpop.permute.xlu2 %628  ;;  %v809_v45 = vmul.f32 %v793_v37, %v793_v37 }
  0x88   : > { %v696_v44 = vmul.f32 %v680_v36, %v680_v36  ;;  %v683_v53 = vsub.f32 %v629_v43, %v3753_v19 }
  0x8a   : > { %v699_v57 = vmul.f32 %v683_v53, %v683_v53 }
  0x8d   : > { %v3764_v26 = vpop.permute.xlu0 %632 }
  0x8e   : > { %v510_v28 = vpop.permute.xlu1 %509  ;;  %v684_v22 = vsub.f32 %v3764_v26, %v3753_v19 }
  0x8f   : > { %v584_v30 = vsub.f32 %v510_v28, %v3760_v23  ;;  %v488_v28 = vsel %vm472_vm8, 1e+37, %v5827_v34 }
  0x90   : > { %v525_v56 = vpop.permute.xlu2 %524 }
  0x91   : > { %v600_v32 = vmul.f32 %v584_v30, %v584_v30  ;;  %v587_v15 = vsub.f32 %v525_v56, %v3760_v23  ;;  %v3839_v56 = vld [vmem:[%s3719_s25 + $0x68] sm:$0xff] }
  0x93   : > { %v713_v33 = vadd.f32 %v697_v29, %v600_v32  ;;  %v603_v29 = vmul.f32 %v587_v15, %v587_v15  ;;  %v424_v32 = vadd.s32 40, %v3751_v18 }
  0x95   : > { %v826_v38 = vadd.f32 %v810_v31, %v713_v33  ;;  %vm459_vm11 = vcmp.eq.s32.totalorder %v3757_v21, %v424_v32 }
  0x96   : > { %v505_v39 = vpop.permute.xlu0 %504  ;;  %v515_v40 = vpop.permute.xlu1 %514  ;;  %vm475_vm12 = vmor %vm453_vm0, %vm459_vm11 }
  0x97   : > { %v583_v41 = vsub.f32 %v505_v39, %v3760_v23  ;;  %v3777_v42 = vadd.f32 %v826_v38, %v487_v35  ;;  %v585_v3 = vsub.f32 %v515_v40, %v3760_v23  ;;  %v700_v35 = vmul.f32 %v684_v22, %v684_v22 }
  0x98   : > { %v530_v6 = vpop.permute.xlu2 %529 }
  0x99   : > { %v599_v46 = vmul.f32 %v583_v41, %v583_v41  ;;  %859 = vmin.xlane.f32.xlu0 %v3777_v42  ;;  %v601_v10 = vmul.f32 %v585_v3, %v585_v3  ;;  %v588_v33 = vsub.f32 %v530_v6, %v3760_v23  ;;  %v716_v38 = vadd.f32 %v700_v35, %v603_v29 }
  0x9b   : > { %v712_v47 = vadd.f32 %v696_v44, %v599_v46  ;;  %v714_v24 = vadd.f32 %v698_v9, %v601_v10  ;;  %v604_v40 = vmul.f32 %v588_v33, %v588_v33  ;;  %v490_v46 = vsel %vm474_vm10, 1e+37, %v5827_v34 }
  0x9d   : > { %v825_v49 = vadd.f32 %v809_v45, %v712_v47 }
  0x9e   : > { %v3783_v50 = vpop.permute.xlu0 %534  ;;  %v520_v51 = vpop.permute.xlu1 %519 }
  0x9f   : > { %v3785_v52 = vadd.f32 %v825_v49, %v486_v48  ;;  %v586_v54 = vsub.f32 %v520_v51, %v3760_v23  ;;  %v491_v49 = vsel %vm475_vm12, 1e+37, %v5827_v34  ;;  %v589_v2 = vsub.f32 %v3783_v50, %v3760_v23 }
  0xa1   : > { %857 = vmin.xlane.f32.xlu2 %v3785_v52  ;;  %v602_v58 = vmul.f32 %v586_v54, %v586_v54  ;;  %v750_v31 = vpop.permute.xlu2 %749  ;;  %v360_v54 = vld [vmem:[%s3719_s25 + $0x48] sm:$0xff]  ;;  %v605_v6 = vmul.f32 %v589_v2, %v589_v2 }
  0xa2   : > { %v798_v26 = vsub.f32 %v750_v31, %v3755_v20 }
  0xa3   : > { %v715_v61 = vadd.f32 %v699_v57, %v602_v58  ;;  %v363_v57 = vld [vmem:[%s3719_s25 + $0x60] sm:$0xff] }
  0xa4   : > { %v814_v45 = vmul.f32 %v798_v26, %v798_v26  ;;  %v3887_v26 = vld [vmem:[%s3719_s25 + $0x58] sm:$0xff] }
  0xa6   : > { %v3792_v59 = vpop.permute.xlu0 %539 }
  0xa7   : > { %v742_v60 = vpop.permute.xlu1 %741  ;;  %v590_v10 = vsub.f32 %v3792_v59, %v3760_v23 }
  0xa8   : > { %v796_v62 = vsub.f32 %v742_v60, %v3755_v20 }
  0xaa   : > { %v812_v4 = vmul.f32 %v796_v62, %v796_v62 }
  0xac   : > { %v828_v8 = vadd.f32 %v812_v4, %v715_v61 }
  0xae   : > { %v3802_v12 = vadd.f32 %v828_v8, %v489_v7 }
  0xaf   : > { %v746_v13 = vpop.permute.xlu1 %745  ;;  %v738_v14 = vpop.permute.xlu0 %737 }
  0xb0   : > { %v795_v16 = vsub.f32 %v738_v14, %v3755_v20  ;;  %863 = vmin.xlane.f32.xlu1 %v3802_v12  ;;  %v797_v25 = vsub.f32 %v746_v13, %v3755_v20  ;;  %v492_v14 = vsel %vm476_vm14, 1e+37, %v5827_v34 }
  0xb2   : > { %v811_v27 = vmul.f32 %v795_v16, %v795_v16  ;;  %v813_v36 = vmul.f32 %v797_v25, %v797_v25  ;;  %v606_v16 = vmul.f32 %v590_v10, %v590_v10 }
  0xb4   : > { %v827_v30 = vadd.f32 %v811_v27, %v714_v24  ;;  %v829_v43 = vadd.f32 %v813_v36, %v716_v38  ;;  %v3881_v36 = vld [vmem:[%s3719_s25 + $0x70] sm:$0xff] }
  0xb6   : > { %v3817_v37 = vadd.f32 %v827_v30, %v488_v28  ;;  %v3828_v48 = vadd.f32 %v829_v43, %v490_v46  ;;  %v3872_v28 = vcvt.s32.f32 %v3757_v21 }
  0xb8   : > { %v637_v39 = vpop.permute.xlu1 %636  ;;  %861 = vmin.xlane.f32.xlu2 %v3817_v37 }
  0xb9   : > { %v685_v41 = vsub.f32 %v637_v39, %v3753_v19  ;;  %v3894_v39 = vld [vmem:[%s3719_s25 + $0x78] sm:$0xff] }
  0xbb   : > { %v701_v44 = vmul.f32 %v685_v41, %v685_v41 }
  0xbd   : > { %v717_v47 = vadd.f32 %v701_v44, %v604_v40 }
  0xbf   : > { %v830_v51 = vadd.f32 %v814_v45, %v717_v47 }
  0xc0   : > { %865 = vmin.xlane.f32.xlu2 %v3828_v48  ;;  %v641_v58 = vpop.permute.xlu1 %640 }
  0xc1   : > { %v3832_v53 = vadd.f32 %v830_v51, %v491_v49  ;;  %v686_v62 = vsub.f32 %v641_v58, %v3753_v19  ;;  %v428_v51 = vadd.s32 72, %v3751_v18 }
  0xc3   : > { %867 = vmin.xlane.f32.xlu0 %v3832_v53  ;;  %v702_v4 = vmul.f32 %v686_v62, %v686_v62  ;;  %vm463_vm6 = vcmp.eq.s32.totalorder %v3757_v21, %v428_v51 }
  0xc4   : > { %vm479_vm7 = vmor %vm453_vm0, %vm463_vm6 }
  0xc5   : > { %v718_v8 = vadd.f32 %v702_v4, %v605_v6 }
  0xc9   : > { %648 = vperm.xlu1 %3616, %v3743_v11   ;;  %v754_v60 = vpop.permute.xlu1 %753 }
  0xca   : > { %v799_v3 = vsub.f32 %v754_v60, %v3755_v20 }
  0xd1   : > { %652 = vperm.xlu1 %3616, %v360_v54  }
  0xd2   : > { %v645_v61 = vpop.permute.xlu1 %644 }
  0xd3   : > { %v687_v9 = vsub.f32 %v645_v61, %v3753_v19 }
  0xd5   : > { %v703_v15 = vmul.f32 %v687_v9, %v687_v9 }
  0xd7   : > { %765 = vperm.xlu0 %3613, %v360_v54   ;;  %v719_v24 = vadd.f32 %v703_v15, %v606_v16  ;;  %v429_v15 = vadd.s32 80, %v3751_v18 }
  0xd8   : > { %656 = vperm.xlu2 %3617, %v361_v55  }
  0xd9   : > { %668 = vperm.xlu1 %3616, %v3839_v56   ;;  %vm464_vm10 = vcmp.eq.s32.totalorder %v3757_v21, %v429_v15 }
  0xda   : > { %vm480_vm11 = vmor %vm453_vm0, %vm464_vm10 }
  0xdb   : > { %v758_v7 = vpop.permute.xlu1 %757 }
  0xdc   : > { %v800_v13 = vsub.f32 %v758_v7, %v3755_v20 }
  0xde   : > { %v816_v17 = vmul.f32 %v800_v13, %v800_v13 }
  0xdf   : > { %769 = vperm.xlu0 %3613, %v361_v55  }
  0xe0   : > { %664 = vperm.xlu2 %3617, %v363_v57   ;;  %v832_v25 = vadd.f32 %v816_v17, %v719_v24 }
  0xe1   : > { %3619 = vset.pattern.permute.xlu1 %v3657_v5 }
  0xe3   : > { %v3891_v38 = vpop.permute.xlu1 %761 }
  0xe7   : > { %777 = vperm.xlu0 %3613, %v363_v57  }
  0xe8   : > { %3618 = vset.pattern.permute.xlu2 %v3657_v5  ;;  %v815_v5 = vmul.f32 %v799_v3, %v799_v3  ;;  %v495_v3 = vsel %vm479_vm7, 1e+37, %v5827_v34 }
  0xea   : > { %v831_v50 = vadd.f32 %v815_v5, %v718_v8 }
  0xec   : > { %v3862_v22 = vadd.f32 %v831_v50, %v492_v14 }
  0xef   : > { %781 = vperm.xlu0 %3613, %v3839_v56  }
  0xf7   : > { %3620 = vset.pattern.permute.xlu0 %v3656_v1  ;;  %v426_v1 = vadd.s32 56, %v3751_v18 }
  0xf9   : > { %vm461_vm15 = vcmp.eq.s32.totalorder %v3757_v21, %v426_v1 }
  0xfa   : > { %vm477_vm1 = vmor %vm453_vm0, %vm461_vm15 }
  0xfb   : > { %v493_v59 = vsel %vm477_vm1, 1e+37, %v5827_v34 }
  0xfc   : > { %v3868_v27 = vadd.f32 %v832_v25, %v493_v59 }
 0x109   : > { %869 = vmin.xlane.f32.xlu2 %v3862_v22 }
 0x10c   : > { %v860_v31 = vpop.xlane.xlu0 %859 }
 0x10d   : > { %vm890_vm3 = vcmp.le.f32.partialorder %v3777_v42, %v860_v31  ;;  %v496_v31 = vsel %vm480_vm11, 1e+37, %v5827_v34 }
 0x10e   : > { %v906_v32 = vsel %vm890_vm3, %v3872_v28, 128.0 }
 0x111   : > { %871 = vmin.xlane.f32.xlu2 %v3868_v27 }
 0x114   : > { %v858_v29 = vpop.xlane.xlu2 %857 }
 0x115   : > { %vm889_vm2 = vcmp.le.f32.partialorder %v3785_v52, %v858_v29 }
 0x116   : > { %v905_v30 = vsel %vm889_vm2, %v3872_v28, 128.0 }
 0x117   : > { %921 = vmin.xlane.f32.xlu1 %v905_v30  ;;  %v427_v30 = vadd.s32 64, %v3751_v18 }
 0x119   : > { %vm462_vm12 = vcmp.eq.s32.totalorder %v3757_v21, %v427_v30 }
 0x11a   : > { %vm478_vm13 = vmor %vm453_vm0, %vm462_vm12 }
 0x11f   : > { %923 = vmin.xlane.f32.xlu1 %v906_v32 }
 0x123   : > { %v864_v41 = vpop.xlane.xlu1 %863 }
 0x124   : > { %vm892_vm5 = vcmp.le.f32.partialorder %v3802_v12, %v864_v41  ;;  %v801_v41 = vsub.f32 %v3891_v38, %v3755_v20  ;;  %v432_v38 = vadd.s32 104, %v3751_v18 }
 0x125   : > { %v908_v43 = vsel %vm892_vm5, %v3872_v28, 128.0 }
 0x126   : > { %vm467_vm14 = vcmp.eq.s32.totalorder %v3757_v21, %v432_v38 }
 0x127   : > { %vm483_vm15 = vmor %vm453_vm0, %vm467_vm14 }
 0x129   : > { %549 = vperm.xlu2 %3618, %v360_v54  }
 0x12b   : > { %v862_v33 = vpop.xlane.xlu2 %861 }
 0x12c   : > { %vm891_vm4 = vcmp.le.f32.partialorder %v3817_v37, %v862_v33 }
 0x12d   : > { %v907_v35 = vsel %vm891_vm4, %v3872_v28, 128.0 }
 0x12e   : > { %925 = vmin.xlane.f32.xlu1 %v907_v35 }
 0x131   : > { %554 = vperm.xlu2 %3618, %v361_v55  }
 0x133   : > { %v3897_v40 = vpop.xlane.xlu2 %865 }
 0x134   : > { %vm893_vm1 = vcmp.le.f32.partialorder %v3828_v48, %v3897_v40 }
 0x136   : > { %v868_v47 = vpop.xlane.xlu0 %867 }
 0x137   : > { %vm894_vm8 = vcmp.le.f32.partialorder %v3832_v53, %v868_v47 }
 0x138   : > { %v910_v7 = vsel %vm894_vm8, %v3872_v28, 128.0 }
 0x139   : > { %564 = vperm.xlu2 %3618, %v363_v57  }
 0x13b   : > { %v649_v46 = vpop.permute.xlu1 %648 }
 0x13c   : > { %v688_v32 = vsub.f32 %v649_v46, %v3753_v19 }
 0x141   : > { %574 = vperm.xlu2 %3618, %v3881_v36  }
 0x143   : > { %v653_v55 = vpop.permute.xlu1 %652 }
 0x147   : > { %544 = vperm.xlu1 %3619, %v3743_v11   ;;  %v657_v11 = vpop.permute.xlu2 %656 }
 0x148   : > { %v690_v10 = vsub.f32 %v657_v11, %v3753_v19 }
 0x149   : > { %3621 = vset.pattern.permute.xlu2 %v3655_v0  ;;  %v766_v54 = vpop.permute.xlu0 %765 }
 0x14a   : > { %v802_v58 = vsub.f32 %v766_v54, %v3755_v20  ;;  %v706_v16 = vmul.f32 %v690_v10, %v690_v10  ;;  %v817_v54 = vmul.f32 %v801_v41, %v801_v41  ;;  %v499_v10 = vsel %vm483_vm15, 1e+37, %v5827_v34 }
 0x14b   : > { %v669_v5 = vpop.permute.xlu1 %668 }
 0x14c   : > { %v818_v63 = vmul.f32 %v802_v58, %v802_v58 }
 0x14f   : > { %559 = vperm.xlu1 %3619, %v3887_v26   ;;  %v3901_v44 = vpop.permute.xlu2 %664 }
 0x151   : > { %v770_v14 = vpop.permute.xlu0 %769 }
 0x152   : > { %v803_v24 = vsub.f32 %v770_v14, %v3755_v20 }
 0x154   : > { %v819_v59 = vmul.f32 %v803_v24, %v803_v24 }
 0x157   : > { %569 = vperm.xlu1 %3619, %v3839_v56   ;;  %v689_v56 = vsub.f32 %v653_v55, %v3753_v19  ;;  %v494_v55 = vsel %vm478_vm13, 1e+37, %v5827_v34 }
 0x159   : > { %v705_v61 = vmul.f32 %v689_v56, %v689_v56  ;;  %v778_v51 = vpop.permute.xlu0 %777 }
 0x15f   : > { %579 = vperm.xlu1 %3619, %v3894_v39  }
 0x16a   : > { %927 = vmin.xlane.f32.xlu2 %v908_v43  ;;  %v704_v43 = vmul.f32 %v688_v32, %v688_v32 }
 0x17c   : > { %v3903_v45 = vpop.xlane.xlu2 %869 }
 0x17d   : > { %vm895_vm2 = vcmp.le.f32.partialorder %v3862_v22, %v3903_v45 }
 0x17e   : > { %v911_v40 = vsel %vm895_vm2, %v3872_v28, 128.0 }
 0x182   : > { %773 = vperm.xlu2 %3621, %v3887_v26  }
 0x184   : > { %v3906_v49 = vpop.xlane.xlu2 %871 }
 0x185   : > { %vm896_vm15 = vcmp.le.f32.partialorder %v3868_v27, %v3906_v49 }
 0x18a   : > { %785 = vperm.xlu2 %3621, %v3881_v36   ;;  %v3923_v8 = vpop.xlane.xlu1 %921 }
 0x18b   : > { %vm953_vm9 = vcmp.eq.f32.partialorder %v3872_v28, %v3923_v8 }
 0x18c   : > { %v550_v57 = vpop.permute.xlu2 %549  ;;  %v3931_v1 = vsel %vm953_vm9, 1e+37, %v3785_v52 }
 0x18d   : > { %v592_v60 = vsub.f32 %v550_v57, %v3760_v23 }
 0x18f   : > { %v608_v62 = vmul.f32 %v592_v60, %v592_v60  ;;  %v782_v60 = vpop.permute.xlu0 %781 }
 0x191   : > { %v721_v2 = vadd.f32 %v705_v61, %v608_v62  ;;  %v693_v61 = vsub.f32 %v669_v5, %v3753_v19 }
 0x192   : > { %789 = vperm.xlu2 %3621, %v3894_v39   ;;  %v3935_v50 = vpop.xlane.xlu1 %923 }
 0x193   : > { %v834_v4 = vadd.f32 %v818_v63, %v721_v2  ;;  %v806_v63 = vsub.f32 %v782_v60, %v3755_v20  ;;  %vm954_vm12 = vcmp.eq.f32.partialorder %v3872_v28, %v3935_v50 }
 0x194   : > { %v555_v9 = vpop.permute.xlu2 %554 }
 0x195   : > { %v3918_v6 = vadd.f32 %v834_v4, %v495_v3  ;;  %v593_v13 = vsub.f32 %v555_v9, %v3760_v23  ;;  %v709_v3 = vmul.f32 %v693_v61, %v693_v61 }
 0x197   : > { %875 = vmin.xlane.f32.xlu1 %v3918_v6  ;;  %v609_v17 = vmul.f32 %v593_v13, %v593_v13 }
 0x199   : > { %v722_v25 = vadd.f32 %v706_v16, %v609_v17  ;;  %v909_v16 = vsel %vm893_vm1, %v3872_v28, 128.0  ;;  %v692_v17 = vsub.f32 %v3901_v44, %v3753_v19 }
 0x19b   : > { %v835_v29 = vadd.f32 %v819_v59, %v722_v25 }
 0x19c   : > { %v565_v5 = vpop.permute.xlu2 %564 }
 0x19d   : > { %v3948_v35 = vadd.f32 %v835_v29, %v496_v31  ;;  %v595_v15 = vsub.f32 %v565_v5, %v3760_v23 }
 0x19f   : > { %931 = vmin.xlane.f32.xlu1 %v910_v7  ;;  %v822_v7 = vmul.f32 %v806_v63, %v806_v63  ;;  %v611_v24 = vmul.f32 %v595_v15, %v595_v15 }
 0x1a1   : > { %v3941_v52 = vpop.xlane.xlu1 %925 }
 0x1a2   : > { %vm955_vm5 = vcmp.eq.f32.partialorder %v3872_v28, %v3941_v52 }
 0x1a3   : > { %v4000_v45 = vsel %vm955_vm5, 1e+37, %v3817_v37  ;;  %v430_v37 = vadd.s32 88, %v3751_v18 }
 0x1a4   : > { %v575_v30 = vpop.permute.xlu2 %574 }
 0x1a5   : > { %vm465_vm7 = vcmp.eq.s32.totalorder %v3757_v21, %v430_v37  ;;  %v597_v61 = vsub.f32 %v575_v30, %v3760_v23 }
 0x1a6   : > { %vm481_vm8 = vmor %vm453_vm0, %vm465_vm7 }
 0x1a7   : > { %1017 = vmin.xlane.f32.xlu1 %v3931_v1 }
 0x1b9   : > { %v545_v33 = vpop.permute.xlu1 %544 }
 0x1ba   : > { %v591_v11 = vsub.f32 %v545_v33, %v3760_v23 }
 0x1bb   : > { %877 = vmin.xlane.f32.xlu2 %v3948_v35 }
 0x1bc   : > { %v607_v47 = vmul.f32 %v591_v11, %v591_v11 }
 0x1be   : > { %v720_v46 = vadd.f32 %v704_v43, %v607_v47 }
 0x1c0   : > { %v833_v56 = vadd.f32 %v817_v54, %v720_v46 }
 0x1c1   : > { %v560_v57 = vpop.permute.xlu1 %559 }
 0x1c2   : > { %v3958_v58 = vadd.f32 %v833_v56, %v494_v55  ;;  %v594_v11 = vsub.f32 %v560_v57, %v3760_v23  ;;  %v433_v56 = vadd.s32 112, %v3751_v18  ;;  %v497_v57 = vsel %vm481_vm8, 1e+37, %v5827_v34 }
 0x1c4   : > { %873 = vmin.xlane.f32.xlu0 %v3958_v58  ;;  %v610_v46 = vmul.f32 %v594_v11, %v594_v11  ;;  %vm468_vm10 = vcmp.eq.s32.totalorder %v3757_v21, %v433_v56 }
 0x1c5   : > { %vm484_vm11 = vmor %vm453_vm0, %vm468_vm10 }
 0x1c9   : > { %v570_v62 = vpop.permute.xlu1 %569 }
 0x1ca   : > { %v596_v2 = vsub.f32 %v570_v62, %v3760_v23 }
 0x1cc   : > { %v612_v4 = vmul.f32 %v596_v2, %v596_v2 }
 0x1ce   : > { %v725_v9 = vadd.f32 %v709_v3, %v612_v4 }
 0x1d0   : > { %v838_v13 = vadd.f32 %v822_v7, %v725_v9  ;;  %v613_v9 = vmul.f32 %v597_v61, %v597_v61 }
 0x1d1   : > { %v580_v47 = vpop.permute.xlu1 %579 }
 0x1d2   : > { %v3969_v14 = vadd.f32 %v838_v13, %v499_v10  ;;  %v434_v13 = vadd.s32 120, %v3751_v18 }
 0x1d4   : > { %883 = vmin.xlane.f32.xlu2 %v3969_v14  ;;  %vm469_vm13 = vcmp.eq.s32.totalorder %v3757_v21, %v434_v13 }
 0x1d5   : > { %vm485_vm14 = vmor %vm453_vm0, %vm469_vm13 }
 0x1d8   : > { %660 = vperm.xlu0 %3620, %v3887_v26   ;;  %v431_v26 = vadd.s32 96, %v3751_v18 }
 0x1da   : > { %vm466_vm3 = vcmp.eq.s32.totalorder %v3757_v21, %v431_v26 }
 0x1db   : > { %vm482_vm4 = vmor %vm453_vm0, %vm466_vm3 }
 0x1dc   : > { %v498_v59 = vsel %vm482_vm4, 1e+37, %v5827_v34 }
 0x1dd   : > { %v4003_v31 = vpop.xlane.xlu2 %927 }
 0x1de   : > { %vm956_vm6 = vcmp.eq.f32.partialorder %v3872_v28, %v4003_v31 }
 0x1df   : > { %v4011_v32 = vsel %vm956_vm6, 1e+37, %v3802_v12 }
 0x1e0   : > { %672 = vperm.xlu0 %3620, %v3881_v36   ;;  %v805_v36 = vsub.f32 %v778_v51, %v3755_v20 }
 0x1e2   : > { %v821_v25 = vmul.f32 %v805_v36, %v805_v36 }
 0x1e5   : > { %v774_v41 = vpop.permute.xlu2 %773 }
 0x1e6   : > { %v804_v43 = vsub.f32 %v774_v41, %v3755_v20 }
 0x1e8   : > { %676 = vperm.xlu0 %3620, %v3894_v39   ;;  %v708_v39 = vmul.f32 %v692_v17, %v692_v17  ;;  %v820_v55 = vmul.f32 %v804_v43, %v804_v43  ;;  %v598_v17 = vsub.f32 %v580_v47, %v3760_v23 }
 0x1ea   : > { %v614_v23 = vmul.f32 %v598_v17, %v598_v17 }
 0x1ed   : > { %v786_v60 = vpop.permute.xlu2 %785 }
 0x1ee   : > { %v807_v3 = vsub.f32 %v786_v60, %v3755_v20 }
 0x1f0   : > { %3622 = vset.pattern.permute.xlu0 %v3655_v0  ;;  %v724_v0 = vadd.f32 %v708_v39, %v611_v24  ;;  %v823_v5 = vmul.f32 %v807_v3, %v807_v3 }
 0x1f2   : > { %v837_v44 = vadd.f32 %v821_v25, %v724_v0  ;;  %v4048_v25 = vsel %vm954_vm12, 1e+37, %v3777_v42  ;;  %v912_v42 = vsel %vm896_vm15, %v3872_v28, 128.0 }
 0x1f4   : > { %v3991_v29 = vadd.f32 %v837_v44, %v498_v59  ;;  %v501_v59 = vsel %vm485_vm14, 1e+37, %v5827_v34 }
 0x1f5   : > { %v790_v24 = vpop.permute.xlu2 %789 }
 0x1f6   : > { %v808_v39 = vsub.f32 %v790_v24, %v3755_v20 }
 0x20a   : > { %v876_v63 = vpop.xlane.xlu1 %875 }
 0x20b   : > { %vm898_vm2 = vcmp.le.f32.partialorder %v3918_v6, %v876_v63 }
 0x20c   : > { %v914_v49 = vsel %vm898_vm2, %v3872_v28, 128.0 }
 0x212   : > { %929 = vmin.xlane.f32.xlu0 %v909_v16  ;;  %v500_v16 = vsel %vm484_vm11, 1e+37, %v5827_v34  ;;  %v4042_v18 = vpop.xlane.xlu1 %931 }
 0x213   : > { %vm958_vm7 = vcmp.eq.f32.partialorder %v3872_v28, %v4042_v18 }
 0x21a   : > { %933 = vmin.xlane.f32.xlu0 %v911_v40  ;;  %v1018_v37 = vpop.xlane.xlu1 %1017 }
 0x21b   : > { %vm1049_vm1 = vcmp.le.f32.partialorder %v3931_v1, %v1018_v37  ;;  %v3502_v37 = vsel %vm954_vm12, 1.0, %v5827_v34 }
 0x21c   : > { %v1065_v11 = vsel %vm1049_vm1, %v3872_v28, 128.0 }
 0x222   : > { %881 = vmin.xlane.f32.xlu0 %v3991_v29 }
 0x22a   : > { %1021 = vmin.xlane.f32.xlu0 %v4000_v45 }
 0x22e   : > { %v878_v43 = vpop.xlane.xlu2 %877 }
 0x22f   : > { %vm899_vm3 = vcmp.le.f32.partialorder %v3948_v35, %v878_v43 }
 0x230   : > { %v915_v47 = vsel %vm899_vm3, %v3872_v28, 128.0 }
 0x232   : > { %1023 = vmin.xlane.f32.xlu0 %v4011_v32 }
 0x237   : > { %v874_v33 = vpop.xlane.xlu0 %873 }
 0x238   : > { %vm897_vm0 = vcmp.le.f32.partialorder %v3958_v58, %v874_v33 }
 0x239   : > { %v913_v21 = vsel %vm897_vm0, %v3872_v28, 128.0 }
 0x24a   : > { %v661_v51 = vpop.permute.xlu0 %660 }
 0x24b   : > { %v691_v54 = vsub.f32 %v661_v51, %v3753_v19 }
 0x24d   : > { %v707_v12 = vmul.f32 %v691_v54, %v691_v54  ;;  %v4086_v54 = vsel %vm958_vm7, 1e+37, %v3832_v53 }
 0x24f   : > { %v723_v38 = vadd.f32 %v707_v12, %v610_v46 }
 0x251   : > { %v836_v62 = vadd.f32 %v820_v55, %v723_v38  ;;  %v884_v55 = vpop.xlane.xlu2 %883 }
 0x252   : > { %v673_v2 = vpop.permute.xlu0 %672  ;;  %vm902_vm14 = vcmp.le.f32.partialorder %v3969_v14, %v884_v55  ;;  %v3503_v55 = vsel %vm955_vm5, 1.0, %v5827_v34 }
 0x253   : > { %v694_v4 = vsub.f32 %v673_v2, %v3753_v19  ;;  %v4027_v7 = vadd.f32 %v836_v62, %v497_v57  ;;  %v918_v3 = vsel %vm902_vm14, %v3872_v28, 128.0 }
 0x255   : > { %v710_v10 = vmul.f32 %v694_v4, %v694_v4  ;;  %879 = vmin.xlane.f32.xlu1 %v4027_v7 }
 0x257   : > { %v726_v15 = vadd.f32 %v710_v10, %v613_v9 }
 0x259   : > { %v839_v26 = vadd.f32 %v823_v5, %v726_v15 }
 0x25a   : > { %v677_v36 = vpop.permute.xlu0 %676 }
 0x25b   : > { %v695_v0 = vsub.f32 %v677_v36, %v3753_v19  ;;  %v4040_v40 = vadd.f32 %v839_v26, %v500_v16  ;;  %v824_v19 = vmul.f32 %v808_v39, %v808_v39 }
 0x25d   : > { %v711_v44 = vmul.f32 %v695_v0, %v695_v0  ;;  %1019 = vmin.xlane.f32.xlu1 %v4048_v25  ;;  %885 = vmin.xlane.f32.xlu2 %v4040_v40 }
 0x25f   : > { %v727_v20 = vadd.f32 %v711_v44, %v614_v23 }
 0x261   : > { %v840_v30 = vadd.f32 %v824_v19, %v727_v20 }
 0x263   : > { %v4057_v41 = vadd.f32 %v840_v30, %v501_v59 }
 0x265   : > { %935 = vmin.xlane.f32.xlu1 %v912_v42  ;;  %887 = vmin.xlane.f32.xlu2 %v4057_v41 }
 0x26d   : > { %937 = vmin.xlane.f32.xlu1 %v913_v21  ;;  %1081 = vmin.xlane.f32.xlu2 %v1065_v11 }
 0x275   : > { %939 = vmin.xlane.f32.xlu1 %v914_v49 }
 0x27d   : > { %941 = vmin.xlane.f32.xlu1 %v915_v47 }
 0x285   : > { %v4069_v51 = vpop.xlane.xlu0 %929 }
 0x286   : > { %vm957_vm4 = vcmp.eq.f32.partialorder %v3872_v28, %v4069_v51 }
 0x287   : > { %v4077_v33 = vsel %vm957_vm4, 1e+37, %v3828_v48 }
 0x288   : > { %1025 = vmin.xlane.f32.xlu0 %v4077_v33 }
 0x28d   : > { %v4089_v46 = vpop.xlane.xlu0 %933 }
 0x28e   : > { %vm959_vm8 = vcmp.eq.f32.partialorder %v3872_v28, %v4089_v46 }
 0x28f   : > { %v4097_v48 = vsel %vm959_vm8, 1e+37, %v3862_v22 }
 0x290   : > { %1027 = vmin.xlane.f32.xlu0 %v4086_v54 }
 0x295   : > { %v882_v56 = vpop.xlane.xlu0 %881 }
 0x296   : > { %vm901_vm11 = vcmp.le.f32.partialorder %v3991_v29, %v882_v56 }
 0x297   : > { %v917_v22 = vsel %vm901_vm11, %v3872_v28, 128.0 }
 0x298   : > { %1029 = vmin.xlane.f32.xlu0 %v4097_v48 }
 0x29d   : > { %v1022_v61 = vpop.xlane.xlu0 %1021 }
 0x29e   : > { %vm1051_vm15 = vcmp.le.f32.partialorder %v4000_v45, %v1022_v61 }
 0x29f   : > { %v1067_v4 = vsel %vm1051_vm15, %v3872_v28, 128.0 }
 0x2a5   : > { %v1024_v9 = vpop.xlane.xlu0 %1023 }
 0x2a6   : > { %vm1052_vm2 = vcmp.le.f32.partialorder %v4011_v32, %v1024_v9 }
 0x2a7   : > { %v1068_v8 = vsel %vm1052_vm2, %v3872_v28, 128.0 }
 0x2c8   : > { %v880_v12 = vpop.xlane.xlu1 %879 }
 0x2c9   : > { %vm900_vm10 = vcmp.le.f32.partialorder %v4027_v7, %v880_v12 }
 0x2ca   : > { %v916_v53 = vsel %vm900_vm10, %v3872_v28, 128.0 }
 0x2cb   : > { %943 = vmin.xlane.f32.xlu1 %v916_v53 }
 0x2d0   : > { %v1020_v38 = vpop.xlane.xlu1 %1019  ;;  %v886_v60 = vpop.xlane.xlu2 %885 }
 0x2d1   : > { %vm1050_vm13 = vcmp.le.f32.partialorder %v4048_v25, %v1020_v38  ;;  %vm903_vm0 = vcmp.le.f32.partialorder %v4040_v40, %v886_v60 }
 0x2d2   : > { %v1066_v57 = vsel %vm1050_vm13, %v3872_v28, 128.0  ;;  %v919_v16 = vsel %vm903_vm0, %v3872_v28, 128.0 }
 0x2d3   : > { %1083 = vmin.xlane.f32.xlu2 %v1066_v57  ;;  %945 = vmin.xlane.f32.xlu1 %v917_v22  ;;  %v3504_v57 = vsel %vm956_vm6, 1.0, %v5827_v34 }
 0x2d8   : > { %v4108_v62 = vpop.xlane.xlu1 %935  ;;  %v888_v63 = vpop.xlane.xlu2 %887 }
 0x2d9   : > { %vm960_vm1 = vcmp.eq.f32.partialorder %v3872_v28, %v4108_v62 }
 0x2da   : > { %v4116_v2 = vsel %vm960_vm1, 1e+37, %v3868_v27  ;;  %v3501_v27 = vsel %vm953_vm9, 1.0, %v5827_v34  ;;  %vm904_vm9 = vcmp.le.f32.partialorder %v4057_v41, %v888_v63 }
 0x2db   : > { %1031 = vmin.xlane.f32.xlu0 %v4116_v2  ;;  %947 = vmin.xlane.f32.xlu1 %v918_v3  ;;  %v920_v24 = vsel %vm904_vm9, %v3872_v28, 128.0 }
 0x2dc   : > { %1085 = vmin.xlane.f32.xlu2 %v1067_v4 }
 0x2e0   : > { %v4123_v10 = vpop.xlane.xlu1 %937  ;;  %v1082_v13 = vpop.xlane.xlu2 %1081 }
 0x2e1   : > { %vm961_vm3 = vcmp.eq.f32.partialorder %v3872_v28, %v4123_v10  ;;  %vm1113_vm10 = vcmp.eq.f32.partialorder %v3872_v28, %v1082_v13 }
 0x2e2   : > { %v4136_v5 = vsel %vm961_vm3, 1e+37, %v3958_v58  ;;  %v3517_v15 = vsel %vm1113_vm10, 1.0, %v5827_v34  ;;  %v4166_v39 = vsel %vm1113_vm10, 1e+37, %v3931_v1 }
 0x2e3   : > { %v4142_v17 = vadd.f32 %v3517_v15, %v3501_v27  ;;  %1033 = vmin.xlane.f32.xlu0 %v4136_v5  ;;  %949 = vmin.xlane.f32.xlu1 %v919_v16 }
 0x2e4   : > { %1087 = vmin.xlane.f32.xlu2 %v1068_v8 }
 0x2e8   : > { %v4147_v26 = vpop.xlane.xlu1 %939 }
 0x2e9   : > { %vm962_vm11 = vcmp.eq.f32.partialorder %v3872_v28, %v4147_v26 }
 0x2ea   : > { %v4155_v58 = vsel %vm962_vm11, 1e+37, %v3918_v6 }
 0x2eb   : > { %1035 = vmin.xlane.f32.xlu0 %v4155_v58  ;;  %951 = vmin.xlane.f32.xlu1 %v920_v24 }
 0x2f0   : > { %v4159_v36 = vpop.xlane.xlu1 %941 }
 0x2f1   : > { %vm963_vm13 = vcmp.eq.f32.partialorder %v3872_v28, %v4159_v36 }
 0x2f2   : > { %v4172_v6 = vsel %vm963_vm13, 1e+37, %v3948_v35  ;;  %v3511_v26 = vsel %vm963_vm13, 1.0, %v5827_v34 }
 0x2f3   : > { %1037 = vmin.xlane.f32.xlu0 %v4172_v6  ;;  %1193 = vmin.xlane.f32.xlu1 %v4166_v39 }
 0x2fb   : > { %v1026_v0 = vpop.xlane.xlu0 %1025 }
 0x2fc   : > { %vm1053_vm14 = vcmp.le.f32.partialorder %v4077_v33, %v1026_v0 }
 0x2fd   : > { %v1069_v23 = vsel %vm1053_vm14, %v3872_v28, 128.0 }
 0x2fe   : > { %1089 = vmin.xlane.f32.xlu2 %v1069_v23  ;;  %v3506_v23 = vsel %vm958_vm7, 1.0, %v5827_v34 }
 0x303   : > { %v1028_v44 = vpop.xlane.xlu0 %1027 }
 0x304   : > { %vm1054_vm15 = vcmp.le.f32.partialorder %v4086_v54, %v1028_v44 }
 0x305   : > { %v1070_v1 = vsel %vm1054_vm15, %v3872_v28, 128.0 }
 0x306   : > { %1091 = vmin.xlane.f32.xlu2 %v1070_v1 }
 0x30b   : > { %v1030_v19 = vpop.xlane.xlu0 %1029 }
 0x30c   : > { %vm1055_vm0 = vcmp.le.f32.partialorder %v4097_v48, %v1030_v19  ;;  %v3507_v19 = vsel %vm959_vm8, 1.0, %v5827_v34 }
 0x30d   : > { %v1071_v35 = vsel %vm1055_vm0, %v3872_v28, 128.0 }
 0x30e   : > { %1093 = vmin.xlane.f32.xlu2 %v1071_v35 }
 0x33e   : > { %v4182_v20 = vpop.xlane.xlu1 %943 }
 0x33f   : > { %vm964_vm2 = vcmp.eq.f32.partialorder %v3872_v28, %v4182_v20 }
 0x340   : > { %v4190_v59 = vsel %vm964_vm2, 1e+37, %v4027_v7 }
 0x341   : > { %1039 = vmin.xlane.f32.xlu0 %v4190_v59 }
 0x346   : > { %v1084_v30 = vpop.xlane.xlu2 %1083  ;;  %v4193_v42 = vpop.xlane.xlu1 %945 }
 0x347   : > { %vm1114_vm10 = vcmp.eq.f32.partialorder %v3872_v28, %v1084_v30  ;;  %vm965_vm9 = vcmp.eq.f32.partialorder %v3872_v28, %v4193_v42 }
 0x348   : > { %v3518_v21 = vsel %vm1114_vm10, 1.0, %v5827_v34  ;;  %v4204_v7 = vsel %vm1114_vm10, 1e+37, %v4048_v25  ;;  %v4210_v11 = vsel %vm965_vm9, 1e+37, %v3991_v29 }
 0x349   : > { %v4212_v49 = vadd.f32 %v3518_v21, %v3502_v37  ;;  %1195 = vmin.xlane.f32.xlu1 %v4204_v7  ;;  %1041 = vmin.xlane.f32.xlu0 %v4210_v11 }
 0x34e   : > { %v4216_v43 = vpop.xlane.xlu1 %947  ;;  %v1032_v50 = vpop.xlane.xlu0 %1031 }
 0x34f   : > { %vm966_vm12 = vcmp.eq.f32.partialorder %v3872_v28, %v4216_v43  ;;  %v1086_v25 = vpop.xlane.xlu2 %1085  ;;  %vm1056_vm14 = vcmp.le.f32.partialorder %v4116_v2, %v1032_v50 }
 0x350   : > { %v4225_v29 = vsel %vm966_vm12, 1e+37, %v3969_v14  ;;  %vm1115_vm15 = vcmp.eq.f32.partialorder %v3872_v28, %v1086_v25  ;;  %v1072_v47 = vsel %vm1056_vm14, %v3872_v28, 128.0 }
 0x351   : > { %v3519_v12 = vsel %vm1115_vm15, 1.0, %v5827_v34  ;;  %v4235_v56 = vsel %vm1115_vm15, 1e+37, %v4000_v45  ;;  %1043 = vmin.xlane.f32.xlu0 %v4225_v29  ;;  %1095 = vmin.xlane.f32.xlu2 %v1072_v47 }
 0x352   : > { %v4238_v53 = vadd.f32 %v3519_v12, %v3503_v55  ;;  %1197 = vmin.xlane.f32.xlu1 %v4235_v56  ;;  %v3508_v55 = vsel %vm960_vm1, 1.0, %v5827_v34 }
 0x356   : > { %v4241_v14 = vpop.xlane.xlu1 %949  ;;  %v1034_v38 = vpop.xlane.xlu0 %1033 }
 0x357   : > { %vm967_vm0 = vcmp.eq.f32.partialorder %v3872_v28, %v4241_v14  ;;  %v1088_v52 = vpop.xlane.xlu2 %1087  ;;  %vm1057_vm5 = vcmp.le.f32.partialorder %v4136_v5, %v1034_v38 }
 0x358   : > { %v4250_v45 = vsel %vm967_vm0, 1e+37, %v4040_v40  ;;  %vm1116_vm10 = vcmp.eq.f32.partialorder %v3872_v28, %v1088_v52  ;;  %v1073_v60 = vsel %vm1057_vm5, %v3872_v28, 128.0 }
 0x359   : > { %v3520_v22 = vsel %vm1116_vm10, 1.0, %v5827_v34  ;;  %v4260_v61 = vsel %vm1116_vm10, 1e+37, %v4011_v32  ;;  %1045 = vmin.xlane.f32.xlu0 %v4250_v45  ;;  %1097 = vmin.xlane.f32.xlu2 %v1073_v60 }
 0x35a   : > { %v4263_v63 = vadd.f32 %v3520_v22, %v3504_v57  ;;  %1199 = vmin.xlane.f32.xlu1 %v4260_v61 }
 0x35e   : > { %v4266_v40 = vpop.xlane.xlu1 %951  ;;  %v1036_v3 = vpop.xlane.xlu0 %1035 }
 0x35f   : > { %vm968_vm14 = vcmp.eq.f32.partialorder %v3872_v28, %v4266_v40  ;;  %vm1058_vm6 = vcmp.le.f32.partialorder %v4155_v58, %v1036_v3 }
 0x360   : > { %v4275_v31 = vsel %vm968_vm14, 1e+37, %v4057_v41  ;;  %v1074_v32 = vsel %vm1058_vm6, %v3872_v28, 128.0  ;;  %v3505_v41 = vsel %vm957_vm4, 1.0, %v5827_v34 }
 0x361   : > { %1047 = vmin.xlane.f32.xlu0 %v4275_v31  ;;  %1099 = vmin.xlane.f32.xlu2 %v1074_v32  ;;  %v3509_v32 = vsel %vm961_vm3, 1.0, %v5827_v34 }
 0x366   : > { %v1194_v4 = vpop.xlane.xlu1 %1193  ;;  %v1038_v9 = vpop.xlane.xlu0 %1037 }
 0x367   : > { %vm1225_vm15 = vcmp.le.f32.partialorder %v4166_v39, %v1194_v4  ;;  %vm1059_vm5 = vcmp.le.f32.partialorder %v4172_v6, %v1038_v9 }
 0x368   : > { %v1241_v13 = vsel %vm1225_vm15, %v3872_v28, 128.0  ;;  %v1075_v27 = vsel %vm1059_vm5, %v3872_v28, 128.0 }
 0x369   : > { %1257 = vmin.xlane.f32.xlu0 %v1241_v13  ;;  %1101 = vmin.xlane.f32.xlu2 %v1075_v27 }
 0x371   : > { %v1090_v15 = vpop.xlane.xlu2 %1089 }
 0x372   : > { %vm1117_vm10 = vcmp.eq.f32.partialorder %v3872_v28, %v1090_v15 }
 0x373   : > { %v3521_v16 = vsel %vm1117_vm10, 1.0, %v5827_v34  ;;  %v4290_v8 = vsel %vm1117_vm10, 1e+37, %v4077_v33 }
 0x374   : > { %v4292_v24 = vadd.f32 %v3521_v16, %v3505_v41  ;;  %1201 = vmin.xlane.f32.xlu1 %v4290_v8 }
 0x379   : > { %v1092_v0 = vpop.xlane.xlu2 %1091 }
 0x37a   : > { %vm1118_vm6 = vcmp.eq.f32.partialorder %v3872_v28, %v1092_v0 }
 0x37b   : > { %v3522_v51 = vsel %vm1118_vm6, 1.0, %v5827_v34  ;;  %v4302_v44 = vsel %vm1118_vm6, 1e+37, %v4086_v54 }
 0x37c   : > { %v4304_v1 = vadd.f32 %v3522_v51, %v3506_v23  ;;  %1203 = vmin.xlane.f32.xlu1 %v4302_v44 }
 0x381   : > { %v1094_v33 = vpop.xlane.xlu2 %1093 }
 0x382   : > { %vm1119_vm4 = vcmp.eq.f32.partialorder %v3872_v28, %v1094_v33 }
 0x383   : > { %v3523_v18 = vsel %vm1119_vm4, 1.0, %v5827_v34  ;;  %v4314_v35 = vsel %vm1119_vm4, 1e+37, %v4097_v48 }
 0x384   : > { %v4316_v30 = vadd.f32 %v3523_v18, %v3507_v19  ;;  %1205 = vmin.xlane.f32.xlu1 %v4314_v35 }
 0x3b4   : > { %v1040_v54 = vpop.xlane.xlu0 %1039 }
 0x3b5   : > { %vm1060_vm7 = vcmp.le.f32.partialorder %v4190_v59, %v1040_v54 }
 0x3b6   : > { %v1076_v37 = vsel %vm1060_vm7, %v3872_v28, 128.0 }
 0x3b7   : > { %1103 = vmin.xlane.f32.xlu2 %v1076_v37 }
 0x3bc   : > { %v1196_v21 = vpop.xlane.xlu1 %1195  ;;  %v1042_v50 = vpop.xlane.xlu0 %1041 }
 0x3bd   : > { %vm1226_vm15 = vcmp.le.f32.partialorder %v4204_v7, %v1196_v21  ;;  %vm1061_vm8 = vcmp.le.f32.partialorder %v4210_v11, %v1042_v50 }
 0x3be   : > { %v1242_v46 = vsel %vm1226_vm15, %v3872_v28, 128.0  ;;  %v1077_v48 = vsel %vm1061_vm8, %v3872_v28, 128.0 }
 0x3bf   : > { %1259 = vmin.xlane.f32.xlu0 %v1242_v46  ;;  %1105 = vmin.xlane.f32.xlu2 %v1077_v48 }
 0x3c4   : > { %v1096_v25 = vpop.xlane.xlu2 %1095  ;;  %v1044_v47 = vpop.xlane.xlu0 %1043 }
 0x3c5   : > { %v1198_v12 = vpop.xlane.xlu1 %1197  ;;  %vm1120_vm5 = vcmp.eq.f32.partialorder %v3872_v28, %v1096_v25  ;;  %vm1062_vm10 = vcmp.le.f32.partialorder %v4225_v29, %v1044_v47  ;;  %v3512_v47 = vsel %vm964_vm2, 1.0, %v5827_v34 }
 0x3c6   : > { %vm1227_vm6 = vcmp.le.f32.partialorder %v4235_v56, %v1198_v12  ;;  %v3524_v38 = vsel %vm1120_vm5, 1.0, %v5827_v34  ;;  %v4334_v52 = vsel %vm1120_vm5, 1e+37, %v4116_v2  ;;  %v1078_v60 = vsel %vm1062_vm10, %v3872_v28, 128.0 }
 0x3c7   : > { %v4337_v57 = vadd.f32 %v3524_v38, %v3508_v55  ;;  %v1243_v22 = vsel %vm1227_vm6, %v3872_v28, 128.0  ;;  %1207 = vmin.xlane.f32.xlu1 %v4334_v52  ;;  %1107 = vmin.xlane.f32.xlu2 %v1078_v60 }
 0x3c8   : > { %1261 = vmin.xlane.f32.xlu0 %v1243_v22 }
 0x3cc   : > { %v1098_v62 = vpop.xlane.xlu2 %1097  ;;  %v1046_v3 = vpop.xlane.xlu0 %1045 }
 0x3cd   : > { %v1200_v4 = vpop.xlane.xlu1 %1199  ;;  %vm1121_vm1 = vcmp.eq.f32.partialorder %v3872_v28, %v1098_v62  ;;  %vm1063_vm4 = vcmp.le.f32.partialorder %v4250_v45, %v1046_v3  ;;  %v3513_v62 = vsel %vm965_vm9, 1.0, %v5827_v34 }
 0x3ce   : > { %vm1228_vm7 = vcmp.le.f32.partialorder %v4260_v61, %v1200_v4  ;;  %v3525_v2 = vsel %vm1121_vm1, 1.0, %v5827_v34  ;;  %v4350_v9 = vsel %vm1121_vm1, 1e+37, %v4136_v5  ;;  %v1079_v13 = vsel %vm1063_vm4, %v3872_v28, 128.0 }
 0x3cf   : > { %v4353_v27 = vadd.f32 %v3525_v2, %v3509_v32  ;;  %v1244_v15 = vsel %vm1228_vm7, %v3872_v28, 128.0  ;;  %1209 = vmin.xlane.f32.xlu1 %v4350_v9  ;;  %1109 = vmin.xlane.f32.xlu2 %v1079_v13  ;;  %v3510_v5 = vsel %vm962_vm11, 1.0, %v5827_v34 }
 0x3d0   : > { %1263 = vmin.xlane.f32.xlu0 %v1244_v15 }
 0x3d4   : > { %v1100_v10 = vpop.xlane.xlu2 %1099  ;;  %v1048_v41 = vpop.xlane.xlu0 %1047 }
 0x3d5   : > { %vm1122_vm3 = vcmp.eq.f32.partialorder %v3872_v28, %v1100_v10  ;;  %vm1064_vm15 = vcmp.le.f32.partialorder %v4275_v31, %v1048_v41 }
 0x3d6   : > { %v3526_v16 = vsel %vm1122_vm3, 1.0, %v5827_v34  ;;  %v4365_v0 = vsel %vm1122_vm3, 1e+37, %v4155_v58  ;;  %v1080_v23 = vsel %vm1064_vm15, %v3872_v28, 128.0 }
 0x3d7   : > { %v4368_v51 = vadd.f32 %v3526_v16, %v3510_v5  ;;  %1211 = vmin.xlane.f32.xlu1 %v4365_v0  ;;  %1111 = vmin.xlane.f32.xlu2 %v1080_v23 }
 0x3dc   : > { %v1102_v33 = vpop.xlane.xlu2 %1101  ;;  %v1258_v19 = vpop.xlane.xlu0 %1257 }
 0x3dd   : > { %vm1123_vm11 = vcmp.eq.f32.partialorder %v3872_v28, %v1102_v33  ;;  %vm1289_vm8 = vcmp.eq.f32.partialorder %v3872_v28, %v1258_v19  ;;  %v3515_v33 = vsel %vm967_vm0, 1.0, %v5827_v34 }
 0x3de   : > { %v3527_v58 = vsel %vm1123_vm11, 1.0, %v5827_v34  ;;  %v4379_v18 = vsel %vm1123_vm11, 1e+37, %v4172_v6  ;;  %v3533_v54 = vsel %vm1289_vm8, 1.0, %v5827_v34  ;;  %v4383_v37 = vsel %vm1289_vm8, 1e+37, %v4166_v39 }
 0x3df   : > { %v4385_v21 = vadd.f32 %v3527_v58, %v3511_v26  ;;  %v4388_v50 = vadd.f32 %v3533_v54, %v4142_v17  ;;  %1213 = vmin.xlane.f32.xlu1 %v4379_v18  ;;  %1369 = vmin.xlane.f32.xlu2 %v4383_v37 }
 0x3e7   : > { %v1202_v36 = vpop.xlane.xlu1 %1201 }
 0x3e8   : > { %vm1229_vm13 = vcmp.le.f32.partialorder %v4290_v8, %v1202_v36 }
 0x3e9   : > { %v1245_v6 = vsel %vm1229_vm13, %v3872_v28, 128.0 }
 0x3ea   : > { %1265 = vmin.xlane.f32.xlu0 %v1245_v6 }
 0x3ef   : > { %v1204_v46 = vpop.xlane.xlu1 %1203 }
 0x3f0   : > { %vm1230_vm5 = vcmp.le.f32.partialorder %v4302_v44, %v1204_v46  ;;  %v3516_v46 = vsel %vm968_vm14, 1.0, %v5827_v34 }
 0x3f1   : > { %v1246_v39 = vsel %vm1230_vm5, %v3872_v28, 128.0 }
 0x3f2   : > { %1267 = vmin.xlane.f32.xlu0 %v1246_v39 }
 0x3f7   : > { %v1206_v48 = vpop.xlane.xlu1 %1205 }
 0x3f8   : > { %vm1231_vm10 = vcmp.le.f32.partialorder %v4314_v35, %v1206_v48 }
 0x3f9   : > { %v1247_v17 = vsel %vm1231_vm10, %v3872_v28, 128.0 }
 0x3fa   : > { %1269 = vmin.xlane.f32.xlu0 %v1247_v17 }
 0x42a   : > { %v1104_v25 = vpop.xlane.xlu2 %1103 }
 0x42b   : > { %vm1124_vm6 = vcmp.eq.f32.partialorder %v3872_v28, %v1104_v25 }
 0x42c   : > { %v3528_v55 = vsel %vm1124_vm6, 1.0, %v5827_v34  ;;  %v4405_v12 = vsel %vm1124_vm6, 1e+37, %v4190_v59 }
 0x42d   : > { %v4407_v38 = vadd.f32 %v3528_v55, %v3512_v47  ;;  %1215 = vmin.xlane.f32.xlu1 %v4405_v12 }
 0x432   : > { %v1106_v60 = vpop.xlane.xlu2 %1105  ;;  %v1260_v22 = vpop.xlane.xlu0 %1259 }
 0x433   : > { %vm1125_vm1 = vcmp.eq.f32.partialorder %v3872_v28, %v1106_v60  ;;  %vm1290_vm2 = vcmp.eq.f32.partialorder %v3872_v28, %v1260_v22 }
 0x434   : > { %v3529_v20 = vsel %vm1125_vm1, 1.0, %v5827_v34  ;;  %v4418_v59 = vsel %vm1125_vm1, 1e+37, %v4210_v11  ;;  %v3534_v3 = vsel %vm1290_vm2, 1.0, %v5827_v34  ;;  %v4422_v32 = vsel %vm1290_vm2, 1e+37, %v4204_v7 }
 0x435   : > { %5894 = vst [vmem:[#allocation2_spill] sm:$0xff] %v4418_v59  ;;  %v4424_v4 = vadd.f32 %v3529_v20, %v3513_v62  ;;  %v4427_v2 = vadd.f32 %v3534_v3, %v4212_v49  ;;  %1217 = vmin.xlane.f32.xlu1 %v4418_v59  ;;  %1371 = vmin.xlane.f32.xlu2 %v4422_v32  ;;  %v3514_v11 = vsel %vm966_vm12, 1.0, %v5827_v34 }
 0x437   : > { %5895 = vst [vmem:[#allocation3_spill] sm:$0xff] %v4424_v4 }
 0x438   : > { %5896 = vst [vmem:[#allocation4_spill] sm:$0xff] %v4427_v2 }
 0x43a   : > { %v1208_v42 = vpop.xlane.xlu1 %1207  ;;  %v1108_v13 = vpop.xlane.xlu2 %1107 }
 0x43b   : > { %vm1232_vm9 = vcmp.le.f32.partialorder %v4334_v52, %v1208_v42  ;;  %vm1126_vm4 = vcmp.eq.f32.partialorder %v3872_v28, %v1108_v13  ;;  %v1262_v7 = vpop.xlane.xlu0 %1261 }
 0x43c   : > { %v3530_v15 = vsel %vm1126_vm4, 1.0, %v5827_v34  ;;  %v4439_v49 = vsel %vm1126_vm4, 1e+37, %v4225_v29  ;;  %vm1291_vm7 = vcmp.eq.f32.partialorder %v3872_v28, %v1262_v7  ;;  %v1248_v10 = vsel %vm1232_vm9, %v3872_v28, 128.0  ;;  %v397_v7 = vld [vmem:[%s4526_s7 + $0x68] sm:$0xff] }
 0x43d   : > { %v4443_v41 = vadd.f32 %v3530_v15, %v3514_v11  ;;  %v3535_v5 = vsel %vm1291_vm7, 1.0, %v5827_v34  ;;  %1271 = vmin.xlane.f32.xlu0 %v1248_v10  ;;  %1219 = vmin.xlane.f32.xlu1 %v4439_v49  ;;  %v4448_v43 = vsel %vm1291_vm7, 1e+37, %v4235_v56  ;;  %v398_v11 = vld [vmem:[%s4526_s7 + $0x70] sm:$0xff] }
 0x43e   : > { %v4451_v16 = vadd.f32 %v3535_v5, %v4238_v53  ;;  %1373 = vmin.xlane.f32.xlu2 %v4448_v43  ;;  %v4545_v5 = vand.u32 4294901760, %v397_v7 }
 0x43f   : > { %5897 = vst [vmem:[#allocation5_spill] sm:$0xff] %v4443_v41 }
 0x440   : > { %5898 = vst [vmem:[#allocation6_spill] sm:$0xff] %v4451_v16 }
 0x442   : > { %v1210_v29 = vpop.xlane.xlu1 %1209  ;;  %v1110_v23 = vpop.xlane.xlu2 %1109 }
 0x443   : > { %vm1233_vm12 = vcmp.le.f32.partialorder %v4350_v9, %v1210_v29  ;;  %vm1127_vm3 = vcmp.eq.f32.partialorder %v3872_v28, %v1110_v23  ;;  %v1264_v19 = vpop.xlane.xlu0 %1263  ;;  %v396_v29 = vld [vmem:[%s4526_s7 + $0x60] sm:$0xff] }
 0x444   : > { %v3531_v56 = vsel %vm1127_vm3, 1.0, %v5827_v34  ;;  %v4462_v26 = vsel %vm1127_vm3, 1e+37, %v4250_v45  ;;  %vm1292_vm15 = vcmp.eq.f32.partialorder %v3872_v28, %v1264_v19  ;;  %v1249_v53 = vsel %vm1233_vm12, %v3872_v28, 128.0 }
 0x445   : > { %v4466_v58 = vadd.f32 %v3531_v56, %v3515_v33  ;;  %v3536_v54 = vsel %vm1292_vm15, 1.0, %v5827_v34  ;;  %1273 = vmin.xlane.f32.xlu0 %v1249_v53  ;;  %1221 = vmin.xlane.f32.xlu1 %v4462_v26  ;;  %v4471_v14 = vsel %vm1292_vm15, 1e+37, %v4260_v61  ;;  %v4555_v19 = vsub.f32 %v397_v7, %v4545_v5  ;;  %v395_v53 = vld [vmem:[%s4526_s7 + $0x58] sm:$0xff] }
 0x446   : > { %v4474_v36 = vadd.f32 %v3536_v54, %v4263_v63  ;;  %1375 = vmin.xlane.f32.xlu2 %v4471_v14  ;;  %v4558_v56 = vand.u32 4294901760, %v396_v29 }
 0x447   : > { %5899 = vst [vmem:[#allocation7_spill] sm:$0xff] %v4466_v58 }
 0x448   : > { %5900 = vst [vmem:[#allocation8_spill] sm:$0xff] %v4474_v36  ;;  %v385_v36 = vld [vmem:[%s4526_s7 + $0x8] sm:$0xff] }
 0x449   : > { %v4697_v16 = vand.u32 4294901760, %v385_v36 }
 0x44a   : > { %v1212_v45 = vpop.xlane.xlu1 %1211  ;;  %v1112_v6 = vpop.xlane.xlu2 %1111 }
 0x44b   : > { %vm1234_vm0 = vcmp.le.f32.partialorder %v4365_v0, %v1212_v45  ;;  %vm1128_vm11 = vcmp.eq.f32.partialorder %v3872_v28, %v1112_v6  ;;  %v5830_v6 = vand.u32 4294901760, %v4555_v19 }
 0x44c   : > { %v3532_v39 = vsel %vm1128_vm11, 1.0, %v5827_v34  ;;  %v4485_v61 = vsel %vm1128_vm11, 1e+37, %v4275_v31  ;;  %v1250_v63 = vsel %vm1234_vm0, %v3872_v28, 128.0 }
 0x44d   : > { %v4488_v48 = vadd.f32 %v3532_v39, %v3516_v46  ;;  %1275 = vmin.xlane.f32.xlu0 %v1250_v63  ;;  %1223 = vmin.xlane.f32.xlu1 %v4485_v61  ;;  %v4568_v46 = vsub.f32 %v396_v29, %v4558_v56  ;;  %v4572_v39 = vand.u32 4294901760, %v395_v53  ;;  %v394_v63 = vld [vmem:[%s4526_s7 + $0x50] sm:$0xff] }
 0x44f   : > { %5901 = vst [vmem:[#allocation9_spill] sm:$0xff] %v4488_v48 }
 0x452   : > { %v1214_v17 = vpop.xlane.xlu1 %1213  ;;  %v1370_v25 = vpop.xlane.xlu2 %1369 }
 0x453   : > { %vm1235_vm8 = vcmp.le.f32.partialorder %v4379_v18, %v1214_v17  ;;  %vm1401_vm13 = vcmp.le.f32.partialorder %v4383_v37, %v1370_v25  ;;  %v1705_v25 = vsub.f32 %v4555_v19, %v5830_v6 }
 0x454   : > { %v1417_v40 = vsel %vm1401_vm13, %v3872_v28, 128.0  ;;  %v1251_v47 = vsel %vm1235_vm8, %v3872_v28, 128.0 }
 0x455   : > { %1277 = vmin.xlane.f32.xlu0 %v1251_v47  ;;  %1433 = vmin.xlane.f32.xlu1 %v1417_v40  ;;  %v5826_v40 = vand.u32 4294901760, %v4568_v46  ;;  %v4581_v47 = vand.u32 4294901760, %v394_v63 }
 0x45d   : > { %v1266_v31 = vpop.xlane.xlu0 %1265 }
 0x45e   : > { %vm1293_vm14 = vcmp.eq.f32.partialorder %v3872_v28, %v1266_v31  ;;  %v4584_v31 = vsub.f32 %v395_v53, %v4572_v39 }
 0x45f   : > { %v3537_v55 = vsel %vm1293_vm14, 1.0, %v5827_v34  ;;  %v4498_v60 = vsel %vm1293_vm14, 1e+37, %v4290_v8 }
 0x460   : > { %v4501_v22 = vadd.f32 %v3537_v55, %v4292_v24  ;;  %1377 = vmin.xlane.f32.xlu2 %v4498_v60  ;;  %v393_v55 = vld [vmem:[%s4526_s7 + $0x48] sm:$0xff] }
 0x462   : > { %5902 = vst [vmem:[#allocation10_spill] sm:$0xff] %v4501_v22 }
 0x465   : > { %v1268_v37 = vpop.xlane.xlu0 %1267 }
 0x466   : > { %vm1294_vm5 = vcmp.eq.f32.partialorder %v3872_v28, %v1268_v37  ;;  %v1706_v37 = vand.u32 4294901760, %v1705_v25 }
 0x467   : > { %v3538_v62 = vsel %vm1294_vm5, 1.0, %v5827_v34  ;;  %v4507_v20 = vsel %vm1294_vm5, 1e+37, %v4302_v44  ;;  %v399_v44 = vld [vmem:[%s4526_s7 + $0x78] sm:$0xff] }
 0x468   : > { %v4510_v3 = vadd.f32 %v3538_v62, %v4304_v1  ;;  %1379 = vmin.xlane.f32.xlu2 %v4507_v20  ;;  %v4529_v1 = vand.u32 4294901760, %v399_v44  ;;  %v1711_v62 = vsub.f32 %v4568_v46, %v5826_v40  ;;  %v389_v40 = vld [vmem:[%s4526_s7 + $0x28] sm:$0xff] }
 0x469   : > { %v4643_v6 = vand.u32 4294901760, %v389_v40 }
 0x46a   : > { %5903 = vst [vmem:[#allocation11_spill] sm:$0xff] %v4510_v3  ;;  %1981 = vmatpush.msra.mxu3 %v4529_v1  ;;  %1530 = vmatpush.msra.mxu0 %v4529_v1  ;;  %v1712_v7 = vand.u32 4294901760, %v1711_v62  ;;  %v390_v62 = vld [vmem:[%s4526_s7 + $0x30] sm:$0xff] }
 0x46d   : > { %v1270_v8 = vpop.xlane.xlu0 %1269 }
 0x46e   : > { %vm1295_vm10 = vcmp.eq.f32.partialorder %v3872_v28, %v1270_v8  ;;  %v4593_v8 = vsub.f32 %v394_v63, %v4581_v47 }
 0x46f   : > { %v3539_v24 = vsel %vm1295_vm10, 1.0, %v5827_v34  ;;  %v4516_v42 = vsel %vm1295_vm10, 1e+37, %v4314_v35  ;;  %v4533_v35 = vsub.f32 %v399_v44, %v4529_v1  ;;  %v5825_v44 = vand.u32 4294901760, %v4584_v31 }
 0x470   : > { %v4519_v13 = vadd.f32 %v3539_v24, %v4316_v30  ;;  %1381 = vmin.xlane.f32.xlu2 %v4516_v42  ;;  %v4535_v30 = vand.u32 4294901760, %v398_v11  ;;  %v4595_v24 = vand.u32 4294901760, %v393_v55  ;;  %v5824_v29 = vand.u32 4294901760, %v4593_v8 }
 0x471   : > { %v5833_v15 = vand.u32 4294901760, %v4533_v35  ;;  %1853 = vmatpush.msra.mxu2 %v4533_v35 }
 0x472   : > { %5904 = vst [vmem:[#allocation12_spill] sm:$0xff] %v4519_v13  ;;  %v4542_v10 = vsub.f32 %v398_v11, %v4535_v30  ;;  %1983 = vmatpush.msra.mxu3 %v4535_v30  ;;  %1532 = vmatpush.msra.mxu0 %v4535_v30  ;;  %v392_v11 = vld [vmem:[%s4526_s7 + $0x40] sm:$0xff]  ;;  %v1723_v63 = vsub.f32 %v4593_v8, %v5824_v29 }
 0x473   : > { %v1693_v23 = vsub.f32 %v4533_v35, %v5833_v15  ;;  %v4605_v53 = vand.u32 4294901760, %v392_v11 }
 0x474   : > { %v5832_v33 = vand.u32 4294901760, %v4542_v10  ;;  %1856 = vmatpush.msra.mxu2 %v4542_v10  ;;  %1985 = vmatpush.msra.mxu3 %v4545_v5 }
 0x475   : > { %1534 = vmatpush.msra.mxu0 %v4545_v5  ;;  %v1694_v54 = vand.u32 4294901760, %v1693_v23  ;;  %v4603_v23 = vsub.f32 %v393_v55, %v4595_v24  ;;  %v4619_v25 = vsub.f32 %v392_v11, %v4605_v53 }
 0x476   : > { %v1699_v45 = vsub.f32 %v4542_v10, %v5832_v33  ;;  %1859 = vmatpush.msra.mxu2 %v4555_v19  ;;  %1987 = vmatpush.msra.mxu3 %v4558_v56  ;;  %v4656_v33 = vsub.f32 %v389_v40, %v4643_v6 }
 0x477   : > { %1536 = vmatpush.msra.mxu0 %v4558_v56  ;;  %1695 = vmatpush.msra.mxu1 %v1694_v54  ;;  %v1717_v54 = vsub.f32 %v4584_v31, %v5825_v44  ;;  %v5831_v44 = vand.u32 4294901760, %v4619_v25 }
 0x478   : > { %v1700_v17 = vand.u32 4294901760, %v1699_v45  ;;  %1862 = vmatpush.msra.mxu2 %v4568_v46  ;;  %1989 = vmatpush.msra.mxu3 %v4572_v39  ;;  %v391_v45 = vld [vmem:[%s4526_s7 + $0x38] sm:$0xff]  ;;  %v5836_v13 = vand.u32 4294901760, %v4656_v33 }
 0x479   : > { %1538 = vmatpush.msra.mxu0 %v4572_v39  ;;  %v4621_v55 = vand.u32 4294901760, %v391_v45 }
 0x47a   : > { %1701 = vmatpush.msra.mxu1 %v1700_v17  ;;  %1865 = vmatpush.msra.mxu2 %v4584_v31  ;;  %v5829_v17 = vand.u32 4294901760, %v4603_v23 }
 0x47b   : > { %1991 = vmatpush.msra.mxu3 %v4581_v47  ;;  %1540 = vmatpush.msra.mxu0 %v4581_v47  ;;  %v4632_v11 = vsub.f32 %v391_v45, %v4621_v55 }
 0x47c   : > { %1707 = vmatpush.msra.mxu1 %v1706_v37  ;;  %1868 = vmatpush.msra.mxu2 %v4593_v8  ;;  %v1718_v37 = vand.u32 4294901760, %v1717_v54  ;;  %v1729_v29 = vsub.f32 %v4603_v23, %v5829_v17  ;;  %v4636_v54 = vand.u32 4294901760, %v390_v62 }
 0x47d   : > { %1993 = vmatpush.msra.mxu3 %v4595_v24  ;;  %1542 = vmatpush.msra.mxu0 %v4595_v24  ;;  %v5834_v17 = vand.u32 4294901760, %v4632_v11 }
 0x47e   : > { %1713 = vmatpush.msra.mxu1 %v1712_v7  ;;  %1871 = vmatpush.msra.mxu2 %v4603_v23  ;;  %v1724_v7 = vand.u32 4294901760, %v1723_v63  ;;  %v1730_v34 = vand.u32 4294901760, %v1729_v29  ;;  %v1735_v63 = vsub.f32 %v4619_v25, %v5831_v44  ;;  %v4648_v45 = vsub.f32 %v390_v62, %v4636_v54  ;;  %v388_v29 = vld [vmem:[%s4526_s7 + $0x20] sm:$0xff] }
 0x47f   : > { %1995 = vmatpush.msra.mxu3 %v4605_v53  ;;  %1544 = vmatpush.msra.mxu0 %v4605_v53  ;;  %v1741_v44 = vsub.f32 %v4632_v11, %v5834_v17  ;;  %v4658_v15 = vand.u32 4294901760, %v388_v29 }
 0x480   : > { %1719 = vmatpush.msra.mxu1 %v1718_v37  ;;  %1874 = vmatpush.msra.mxu2 %v4619_v25  ;;  %v1736_v37 = vand.u32 4294901760, %v1735_v63  ;;  %v5835_v62 = vand.u32 4294901760, %v4648_v45 }
 0x481   : > { %1997 = vmatpush.msra.mxu3 %v4621_v55  ;;  %1546 = vmatpush.msra.mxu0 %v4621_v55  ;;  %v1742_v63 = vand.u32 4294901760, %v1741_v44  ;;  %v4667_v17 = vsub.f32 %v388_v29, %v4658_v15  ;;  %v386_v44 = vld [vmem:[%s4526_s7 + $0x10] sm:$0xff]  ;;  %v1753_v29 = vsub.f32 %v4656_v33, %v5836_v13 }
 0x482   : > { %1725 = vmatpush.msra.mxu1 %v1724_v7  ;;  %1877 = vmatpush.msra.mxu2 %v4632_v11  ;;  %v387_v7 = vld [vmem:[%s4526_s7 + $0x18] sm:$0xff] }
 0x483   : > { %1999 = vmatpush.msra.mxu3 %v4636_v54  ;;  %1548 = vmatpush.msra.mxu0 %v4636_v54  ;;  %v4669_v40 = vand.u32 4294901760, %v387_v7  ;;  %v5837_v22 = vand.u32 4294901760, %v4667_v17  ;;  %v1754_v13 = vand.u32 4294901760, %v1753_v29 }
 0x484   : > { %1731 = vmatpush.msra.mxu1 %v1730_v34  ;;  %1880 = vmatpush.msra.mxu2 %v4648_v45  ;;  %v1747_v34 = vsub.f32 %v4648_v45, %v5835_v62 }
 0x485   : > { %2001 = vmatpush.msra.mxu3 %v4643_v6  ;;  %1550 = vmatpush.msra.mxu0 %v4643_v6  ;;  %v4684_v48 = vsub.f32 %v387_v7, %v4669_v40  ;;  %v1759_v7 = vsub.f32 %v4667_v17, %v5837_v22 }
 0x486   : > { %1737 = vmatpush.msra.mxu1 %v1736_v37  ;;  %1883 = vmatpush.msra.mxu2 %v4656_v33  ;;  %v1748_v62 = vand.u32 4294901760, %v1747_v34  ;;  %v384_v34 = vld [vmem:[%s4526_s7] sm:$0xff] }
 0x487   : > { %2003 = vmatpush.msra.mxu3 %v4658_v15  ;;  %1552 = vmatpush.msra.mxu0 %v4658_v15  ;;  %v5838_v58 = vand.u32 4294901760, %v4684_v48  ;;  %v1760_v41 = vand.u32 4294901760, %v1759_v7  ;;  %v4711_v22 = vand.u32 4294901760, %v384_v34 }
 0x488   : > { %1743 = vmatpush.msra.mxu1 %v1742_v63  ;;  %1886 = vmatpush.msra.mxu2 %v4667_v17 }
 0x489   : > { %2005 = vmatpush.msra.mxu3 %v4669_v40  ;;  %v1765_v29 = vsub.f32 %v4684_v48, %v5838_v58  ;;  %1554 = vmatpush.msra.mxu0 %v4669_v40  ;;  %v4719_v4 = vsub.f32 %v384_v34, %v4711_v22 }
 0x48a   : > { %1749 = vmatpush.msra.mxu1 %v1748_v62  ;;  %1889 = vmatpush.msra.mxu2 %v4684_v48 }
 0x48c   : > { %1755 = vmatpush.msra.mxu1 %v1754_v13 }
 0x48e   : > { %1761 = vmatpush.msra.mxu1 %v1760_v41 }
 0x4a0   : > { %v1216_v3 = vpop.xlane.xlu1 %1215 }
 0x4a1   : > { %vm1236_vm6 = vcmp.le.f32.partialorder %v4405_v12, %v1216_v3  ;;  %v4690_v3 = vand.u32 4294901760, %v386_v44 }
 0x4a2   : > { %v1252_v37 = vsel %vm1236_vm6, %v3872_v28, 128.0 }
 0x4a3   : > { %1279 = vmin.xlane.f32.xlu0 %v1252_v37  ;;  %v4701_v63 = vsub.f32 %v386_v44, %v4690_v3  ;;  %v4709_v37 = vsub.f32 %v385_v36, %v4697_v16  ;;  %2007 = vmatpush.msra.mxu3 %v4690_v3  ;;  %v1766_v44 = vand.u32 4294901760, %v1765_v29  ;;  %v1782_v29 = vand.u32 4294901760, %v4719_v4 }
 0x4a4   : > { %1556 = vmatpush.msra.mxu0 %v4690_v3 }
 0x4a5   : > { %v5839_v62 = vand.u32 4294901760, %v4701_v63  ;;  %1892 = vmatpush.msra.mxu2 %v4701_v63  ;;  %v5840_v7 = vand.u32 4294901760, %v4709_v37  ;;  %2009 = vmatpush.msra.mxu3 %v4697_v16 }
 0x4a6   : > { %1558 = vmatpush.msra.mxu0 %v4697_v16  ;;  %1767 = vmatpush.msra.mxu1 %v1766_v44  ;;  %v5906_v44 = vand.u32 4294901760, %v4542_v10 }
 0x4a7   : > { %v1771_v13 = vsub.f32 %v4701_v63, %v5839_v62  ;;  %1895 = vmatpush.msra.mxu2 %v4709_v37  ;;  %v1777_v34 = vsub.f32 %v4709_v37, %v5840_v7  ;;  %2011 = vmatpush.msra.mxu3 %v4711_v22  ;;  %v5905_v7 = vand.u32 4294901760, %v4533_v35  ;;  %v5908_v35 = vmov 0.0  }
 0x4a8   : > { %v1218_v36 = vpop.xlane.xlu1 %1217  ;;  %v1372_v58 = vpop.xlane.xlu2 %1371  ;;  %1560 = vmatpush.msra.mxu0 %v4711_v22 }
 0x4a9   : > { %vm1237_vm1 = vcmp.le.f32.partialorder %v4418_v59, %v1218_v36  ;;  %vm1402_vm2 = vcmp.le.f32.partialorder %v4422_v32, %v1372_v58  ;;  %v1772_v2 = vand.u32 4294901760, %v1771_v13  ;;  %1898 = vmatpush.msra.mxu2 %v4719_v4  ;;  %v1778_v32 = vand.u32 4294901760, %v1777_v34 }
 0x4aa   : > { %v1418_v41 = vsel %vm1402_vm2, %v3872_v28, 128.0  ;;  %v1253_v62 = vsel %vm1237_vm1, %v3872_v28, 128.0  ;;  %v1783_v58 = vsub.f32 %v4719_v4, %v1782_v29  ;;  %2112 = vmatpush.msrb.mxu0 %v5905_v7 }
 0x4ab   : > { %1281 = vmin.xlane.f32.xlu0 %v1253_v62  ;;  %1435 = vmin.xlane.f32.xlu1 %v1418_v41 }
 0x4ac   : > { %1773 = vmatpush.msra.mxu1 %v1772_v2  ;;  %v1784_v36 = vand.u32 4294901760, %v1783_v58  ;;  %2116 = vmatpush.msrb.mxu0 %v5906_v44  ;;  %v5907_v2 = vand.u32 4294901760, %v4555_v19  ;;  %v5911_v19 = vand.u32 4294901760, %v4593_v8 }
 0x4ae   : > { %1779 = vmatpush.msra.mxu1 %v1778_v32  ;;  %2120 = vmatpush.msrb.mxu0 %v5907_v2 }
 0x4b0   : > { %v1220_v13 = vpop.xlane.xlu1 %1219  ;;  %v1272_v59 = vpop.xlane.xlu0 %1271  ;;  %1785 = vmatpush.msra.mxu1 %v1784_v36 }
 0x4b1   : > { %vm1238_vm9 = vcmp.le.f32.partialorder %v4439_v49, %v1220_v13  ;;  %v1374_v62 = vpop.xlane.xlu2 %1373  ;;  %vm1296_vm4 = vcmp.eq.f32.partialorder %v3872_v28, %v1272_v59  ;;  %v5909_v59 = vand.u32 4294901760, %v4568_v46 }
 0x4b2   : > { %2239 = vmatpush.msrb.mxu1 %v4529_v1  ;;  %vm1403_vm7 = vcmp.le.f32.partialorder %v4448_v43, %v1374_v62  ;;  %v3540_v7 = vsel %vm1296_vm4, 1.0, %v5908_v35  ;;  %v4754_v10 = vsel %vm1296_vm4, 1e+37, %v4334_v52  ;;  %v1254_v34 = vsel %vm1238_vm9, %v3872_v28, 128.0 }
 0x4b3   : > { %v1419_v41 = vsel %vm1403_vm7, %v3872_v28, 128.0  ;;  %v4759_v32 = vadd.f32 %v3540_v7, %v4337_v57  ;;  %1283 = vmin.xlane.f32.xlu0 %v1254_v34  ;;  %1383 = vmin.xlane.f32.xlu2 %v4754_v10  ;;  %v5910_v52 = vand.u32 4294901760, %v4584_v31  ;;  %v5923_v7 = vld [vmem:[#allocation2_spill] sm:$0xff] }
 0x4b4   : > { %1437 = vmin.xlane.f32.xlu1 %v1419_v41  ;;  %2241 = vmatpush.msrb.mxu1 %v4535_v30 }
 0x4b5   : > { %2124 = vmatpush.msrb.mxu0 %v5909_v59  ;;  %v5925_v59 = vld [vmem:[#allocation3_spill] sm:$0xff] }
 0x4b6   : > { %2243 = vmatpush.msrb.mxu1 %v4545_v5 }
 0x4b7   : > { %2128 = vmatpush.msrb.mxu0 %v5910_v52 }
 0x4b8   : > { %v1222_v43 = vpop.xlane.xlu1 %1221  ;;  %v1274_v1 = vpop.xlane.xlu0 %1273  ;;  %2245 = vmatpush.msrb.mxu1 %v4558_v56 }
 0x4b9   : > { %vm1239_vm12 = vcmp.le.f32.partialorder %v4462_v26, %v1222_v43  ;;  %v1376_v57 = vpop.xlane.xlu2 %1375  ;;  %vm1297_vm3 = vcmp.eq.f32.partialorder %v3872_v28, %v1274_v1  ;;  %2132 = vmatpush.msrb.mxu0 %v5911_v19 }
 0x4ba   : > { %vm1404_vm15 = vcmp.le.f32.partialorder %v4471_v14, %v1376_v57  ;;  %v3541_v30 = vsel %vm1297_vm3, 1.0, %v5908_v35  ;;  %v4776_v5 = vsel %vm1297_vm3, 1e+37, %v4350_v9  ;;  %v1255_v46 = vsel %vm1239_vm12, %v3872_v28, 128.0  ;;  %2247 = vmatpush.msrb.mxu1 %v4572_v39 }
 0x4bb   : > { %v1420_v56 = vsel %vm1404_vm15, %v3872_v28, 128.0  ;;  %v4782_v31 = vadd.f32 %v3541_v30, %v4353_v27  ;;  %1285 = vmin.xlane.f32.xlu0 %v1255_v46  ;;  %1385 = vmin.xlane.f32.xlu2 %v4776_v5  ;;  %v5912_v14 = vand.u32 4294901760, %v4603_v23  ;;  %v5913_v9 = vand.u32 4294901760, %v4619_v25 }
 0x4bc   : > { %1439 = vmin.xlane.f32.xlu1 %v1420_v56  ;;  %2249 = vmatpush.msrb.mxu1 %v4581_v47  ;;  %v5914_v27 = vand.u32 4294901760, %v4632_v11  ;;  %v5916_v11 = vand.u32 4294901760, %v4656_v33 }
 0x4bd   : > { %2136 = vmatpush.msrb.mxu0 %v5912_v14 }
 0x4be   : > { %2251 = vmatpush.msrb.mxu1 %v4595_v24 }
 0x4bf   : > { %2140 = vmatpush.msrb.mxu0 %v5913_v9 }
 0x4c0   : > { %v1224_v39 = vpop.xlane.xlu1 %1223  ;;  %v1276_v8 = vpop.xlane.xlu0 %1275  ;;  %2253 = vmatpush.msrb.mxu1 %v4605_v53  ;;  %v5915_v53 = vand.u32 4294901760, %v4648_v45  ;;  %v5919_v45 = vand.u32 4294901760, %v4701_v63 }
 0x4c1   : > { %vm1240_vm0 = vcmp.le.f32.partialorder %v4485_v61, %v1224_v39  ;;  %vm1298_vm11 = vcmp.eq.f32.partialorder %v3872_v28, %v1276_v8  ;;  %2144 = vmatpush.msrb.mxu0 %v5914_v27  ;;  %v5928_v39 = vld [vmem:[#allocation5_spill] sm:$0xff]  ;;  %v5929_v27 = vld [vmem:[#allocation6_spill] sm:$0xff] }
 0x4c2   : > { %v3542_v47 = vsel %vm1298_vm11, 1.0, %v5908_v35  ;;  %v4798_v23 = vsel %vm1298_vm11, 1e+37, %v4365_v0  ;;  %v1256_v24 = vsel %vm1240_vm0, %v3872_v28, 128.0  ;;  %2255 = vmatpush.msrb.mxu1 %v4621_v55  ;;  %v5917_v55 = vand.u32 4294901760, %v4667_v17 }
 0x4c3   : > { %v4803_v25 = vadd.f32 %v3542_v47, %v4368_v51  ;;  %1287 = vmin.xlane.f32.xlu0 %v1256_v24  ;;  %1387 = vmin.xlane.f32.xlu2 %v4798_v23 }
 0x4c4   : > { %2148 = vmatpush.msrb.mxu0 %v5915_v53  ;;  %2257 = vmatpush.msrb.mxu1 %v4636_v54 }
 0x4c6   : > { %2152 = vmatpush.msrb.mxu0 %v5916_v11  ;;  %2259 = vmatpush.msrb.mxu1 %v4643_v6  ;;  %v5918_v6 = vand.u32 4294901760, %v4684_v48 }
 0x4c8   : > { %v1434_v0 = vpop.xlane.xlu1 %1433  ;;  %v1278_v58 = vpop.xlane.xlu0 %1277  ;;  %2156 = vmatpush.msrb.mxu0 %v5917_v55  ;;  %2261 = vmatpush.msrb.mxu1 %v4658_v15 }
 0x4c9   : > { %vm1465_vm8 = vcmp.eq.f32.partialorder %v3872_v28, %v1434_v0  ;;  %vm1299_vm13 = vcmp.eq.f32.partialorder %v3872_v28, %v1278_v58 }
 0x4ca   : > { %v3549_v51 = vsel %vm1465_vm8, 1.0, %v5908_v35  ;;  %v3543_v54 = vsel %vm1299_vm13, 1.0, %v5908_v35  ;;  %v4820_v33 = vsel %vm1299_vm13, 1e+37, %v4379_v18  ;;  %2160 = vmatpush.msrb.mxu0 %v5918_v6  ;;  %2263 = vmatpush.msrb.mxu1 %v4669_v40  ;;  %v5920_v18 = vand.u32 4294901760, %v4709_v37 }
 0x4cb   : > { %v1513_v17 = vadd.f32 %v3549_v51, %v4388_v50  ;;  %v4827_v15 = vadd.f32 %v3543_v54, %v4385_v21  ;;  %1389 = vmin.xlane.f32.xlu2 %v4820_v33 }
 0x4cc   : > { %2164 = vmatpush.msrb.mxu0 %v5919_v45  ;;  %2265 = vmatpush.msrb.mxu1 %v4690_v3 }
 0x4cd   : > { %v4833_v36 = vand.u32 4294901760, %v1513_v17 }
 0x4ce   : > { %2168 = vmatpush.msrb.mxu0 %v5920_v18  ;;  %2267 = vmatpush.msrb.mxu1 %v4697_v16  ;;  %v5933_v18 = vld [vmem:[#allocation8_spill] sm:$0xff] }
 0x4cf   : > { %v4839_v48 = vsub.f32 %v1513_v17, %v4833_v36  ;;  %1787 = vmatmul.f32.vlgmr.msra.gmra.mxu1 %v4833_v36  ;;  %v5931_v17 = vld [vmem:[#allocation7_spill] sm:$0xff] }
 0x4d0   : > { %2269 = vmatpush.msrb.mxu1 %v4711_v22  ;;  %2172 = vmatpush.msrb.mxu0 %v1782_v29 }
 0x4d1   : > { %5921 = vst [vmem:[#allocation13_spill] sm:$0xff] %v4839_v48  ;;  %1901 = vmatmul.f32.vlgmr.msra.gmra.mxu2 %v4839_v48  ;;  %v4847_v21 = vand.u32 4294901760, %v4839_v48 }
 0x4d3   : > { %5922 = vst [vmem:[#allocation14_spill] sm:$0xff] %v4847_v21  ;;  %2015 = vmatmul.f32.vlgmr.msra.gmra.mxu3 %v4847_v21  ;;  %v1378_v50 = vpop.xlane.xlu2 %1377  ;;  %v1564_v16 = vsub.f32 %v4839_v48, %v4847_v21 }
 0x4d4   : > { %vm1405_vm14 = vcmp.le.f32.partialorder %v4498_v60, %v1378_v50 }
 0x4d5   : > { %v1421_v40 = vsel %vm1405_vm14, %v3872_v28, 128.0  ;;  %v4854_v3 = vand.u32 4294901760, %v1564_v16 }
 0x4d6   : > { %1441 = vmin.xlane.f32.xlu1 %v1421_v40 }
 0x4d7   : > { %1566 = vmatmul.f32.vlgmr.msra.gmra.mxu0 %v4854_v3 }
 0x4db   : > { %v1380_v4 = vpop.xlane.xlu2 %1379 }
 0x4dc   : > { %vm1406_vm5 = vcmp.le.f32.partialorder %v4507_v20, %v1380_v4 }
 0x4dd   : > { %v1422_v22 = vsel %vm1406_vm5, %v3872_v28, 128.0 }
 0x4de   : > { %1443 = vmin.xlane.f32.xlu1 %v1422_v22 }
 0x4e3   : > { %v1382_v63 = vpop.xlane.xlu2 %1381 }
 0x4e4   : > { %vm1407_vm10 = vcmp.le.f32.partialorder %v4516_v42, %v1382_v63 }
 0x4e5   : > { %v1423_v37 = vsel %vm1407_vm10, %v3872_v28, 128.0 }
 0x4e6   : > { %1445 = vmin.xlane.f32.xlu2 %v1423_v37 }
 0x516   : > { %v1280_v60 = vpop.xlane.xlu0 %1279 }
 0x517   : > { %vm1300_vm6 = vcmp.eq.f32.partialorder %v3872_v28, %v1280_v60 }
 0x518   : > { %v3544_v29 = vsel %vm1300_vm6, 1.0, %v5908_v35  ;;  %v4864_v44 = vsel %vm1300_vm6, 1e+37, %v4405_v12  ;;  %v5924_v12 = vld [vmem:[#allocation4_spill] sm:$0xff] }
 0x519   : > { %v4867_v13 = vadd.f32 %v3544_v29, %v4407_v38  ;;  %1391 = vmin.xlane.f32.xlu0 %v4864_v44 }
 0x51e   : > { %v1436_v20 = vpop.xlane.xlu1 %1435  ;;  %v1282_v62 = vpop.xlane.xlu0 %1281 }
 0x51f   : > { %vm1466_vm1 = vcmp.eq.f32.partialorder %v3872_v28, %v1436_v20  ;;  %vm1301_vm2 = vcmp.eq.f32.partialorder %v3872_v28, %v1282_v62  ;;  %v5936_v62 = vld [vmem:[#allocation9_spill] sm:$0xff] }
 0x520   : > { %v3550_v42 = vsel %vm1466_vm1, 1.0, %v5908_v35  ;;  %v3545_v2 = vsel %vm1301_vm2, 1.0, %v5908_v35  ;;  %v4875_v34 = vsel %vm1301_vm2, 1e+37, %v5923_v7 }
 0x521   : > { %v1514_v41 = vadd.f32 %v3550_v42, %v5924_v12  ;;  %v4879_v38 = vadd.f32 %v3545_v2, %v5925_v59  ;;  %1393 = vmin.xlane.f32.xlu1 %v4875_v34  ;;  %v5937_v59 = vld [vmem:[#allocation10_spill] sm:$0xff] }
 0x523   : > { %v4882_v52 = vand.u32 4294901760, %v1514_v41 }
 0x525   : > { %v4885_v43 = vsub.f32 %v1514_v41, %v4882_v52  ;;  %1791 = vmatmul.f32.gmra.mxu1 %v4882_v52 }
 0x526   : > { %v1384_v1 = vpop.xlane.xlu2 %1383  ;;  %v1284_v57 = vpop.xlane.xlu0 %1283 }
 0x527   : > { %5926 = vst [vmem:[#allocation2_spill] sm:$0xff] %v4885_v43  ;;  %v1438_v19 = vpop.xlane.xlu1 %1437  ;;  %vm1408_vm9 = vcmp.le.f32.partialorder %v4754_v10, %v1384_v1  ;;  %vm1302_vm4 = vcmp.eq.f32.partialorder %v3872_v28, %v1284_v57  ;;  %1906 = vmatmul.f32.gmra.mxu2 %v4885_v43  ;;  %v4892_v30 = vand.u32 4294901760, %v4885_v43 }
 0x528   : > { %vm1467_vm7 = vcmp.eq.f32.partialorder %v3872_v28, %v1438_v19  ;;  %v1424_v46 = vsel %vm1408_vm9, %v3872_v28, 128.0  ;;  %v3546_v56 = vsel %vm1302_vm4, 1.0, %v5908_v35  ;;  %v4898_v14 = vsel %vm1302_vm4, 1e+37, %v4439_v49 }
 0x529   : > { %5927 = vst [vmem:[#allocation4_spill] sm:$0xff] %v4892_v30  ;;  %v3551_v9 = vsel %vm1467_vm7, 1.0, %v5908_v35  ;;  %v4902_v10 = vadd.f32 %v3546_v56, %v5928_v39  ;;  %2021 = vmatmul.f32.gmra.mxu3 %v4892_v30  ;;  %1447 = vmin.xlane.f32.xlu0 %v1424_v46  ;;  %v1572_v8 = vsub.f32 %v4885_v43, %v4892_v30 }
 0x52a   : > { %v1515_v47 = vadd.f32 %v3551_v9, %v5929_v27  ;;  %1395 = vmin.xlane.f32.xlu2 %v4898_v14  ;;  %v5940_v9 = vld [vmem:[#allocation11_spill] sm:$0xff] }
 0x52b   : > { %v4909_v24 = vand.u32 4294901760, %v1572_v8 }
 0x52c   : > { %v4911_v53 = vand.u32 4294901760, %v1515_v47 }
 0x52d   : > { %1574 = vmatmul.f32.gmra.mxu0 %v4909_v24 }
 0x52e   : > { %v4915_v49 = vsub.f32 %v1515_v47, %v4911_v53  ;;  %1795 = vmatmul.f32.gmra.mxu1 %v4911_v53  ;;  %v1386_v11 = vpop.xlane.xlu2 %1385  ;;  %v1286_v0 = vpop.xlane.xlu0 %1285 }
 0x52f   : > { %v1440_v58 = vpop.xlane.xlu1 %1439  ;;  %vm1409_vm12 = vcmp.le.f32.partialorder %v4776_v5, %v1386_v11  ;;  %vm1303_vm3 = vcmp.eq.f32.partialorder %v3872_v28, %v1286_v0 }
 0x530   : > { %5930 = vst [vmem:[#allocation3_spill] sm:$0xff] %v4915_v49  ;;  %vm1468_vm15 = vcmp.eq.f32.partialorder %v3872_v28, %v1440_v58  ;;  %v1425_v55 = vsel %vm1409_vm12, %v3872_v28, 128.0  ;;  %v3547_v51 = vsel %vm1303_vm3, 1.0, %v5908_v35  ;;  %v4924_v54 = vsel %vm1303_vm3, 1e+37, %v4462_v26  ;;  %1911 = vmatmul.f32.gmra.mxu2 %v4915_v49 }
 0x531   : > { %v3552_v6 = vsel %vm1468_vm15, 1.0, %v5908_v35  ;;  %v4929_v45 = vadd.f32 %v3547_v51, %v5931_v17  ;;  %v4932_v5 = vand.u32 4294901760, %v4915_v49  ;;  %1449 = vmin.xlane.f32.xlu1 %v1425_v55  ;;  %1397 = vmin.xlane.f32.xlu0 %v4924_v54  ;;  %v5943_v51 = vld [vmem:[#allocation12_spill] sm:$0xff] }
 0x532   : > { %v1516_v50 = vadd.f32 %v3552_v6, %v5933_v18 }
 0x533   : > { %5932 = vst [vmem:[#allocation5_spill] sm:$0xff] %v4932_v5  ;;  %2027 = vmatmul.f32.gmra.mxu3 %v4932_v5  ;;  %v1580_v26 = vsub.f32 %v4915_v49, %v4932_v5  ;;  %v405_v5 = vld [vmem:[%s5036_s10 + $0x28] sm:$0xff] }
 0x534   : > { %v4939_v16 = vand.u32 4294901760, %v1516_v50 }
 0x535   : > { %v4941_v40 = vand.u32 4294901760, %v1580_v26 }
 0x536   : > { %v4944_v4 = vsub.f32 %v1516_v50, %v4939_v16  ;;  %1799 = vmatmul.f32.gmra.mxu1 %v4939_v16  ;;  %v1388_v22 = vpop.xlane.xlu2 %1387  ;;  %v1288_v63 = vpop.xlane.xlu0 %1287 }
 0x537   : > { %1582 = vmatmul.f32.gmra.mxu0 %v4941_v40  ;;  %vm1410_vm0 = vcmp.le.f32.partialorder %v4798_v23, %v1388_v22  ;;  %vm1304_vm11 = vcmp.eq.f32.partialorder %v3872_v28, %v1288_v63 }
 0x538   : > { %5934 = vst [vmem:[#allocation6_spill] sm:$0xff] %v4944_v4  ;;  %v1426_v37 = vsel %vm1410_vm0, %v3872_v28, 128.0  ;;  %v3548_v60 = vsel %vm1304_vm11, 1.0, %v5908_v35  ;;  %v4953_v29 = vsel %vm1304_vm11, 1e+37, %v4485_v61  ;;  %1916 = vmatmul.f32.gmra.mxu2 %v4944_v4  ;;  %v4957_v20 = vand.u32 4294901760, %v4944_v4 }
 0x539   : > { %v4960_v42 = vadd.f32 %v3548_v60, %v5936_v62  ;;  %1451 = vmin.xlane.f32.xlu2 %v1426_v37  ;;  %1399 = vmin.xlane.f32.xlu1 %v4953_v29 }
 0x53a   : > { %5935 = vst [vmem:[#allocation7_spill] sm:$0xff] %v4957_v20  ;;  %v1588_v23 = vsub.f32 %v4944_v4, %v4957_v20 }
 0x53b   : > { %2033 = vmatmul.f32.gmra.mxu3 %v4957_v20 }
 0x53c   : > { %v4966_v2 = vand.u32 4294901760, %v1588_v23 }
 0x53e   : > { %v1390_v61 = vpop.xlane.xlu2 %1389 }
 0x53f   : > { %1590 = vmatmul.f32.gmra.mxu0 %v4966_v2  ;;  %vm1411_vm8 = vcmp.le.f32.partialorder %v4820_v33, %v1390_v61 }
 0x540   : > { %v1427_v7 = vsel %vm1411_vm8, %v3872_v28, 128.0 }
 0x541   : > { %1453 = vmin.xlane.f32.xlu0 %v1427_v7  ;;  %v415_v7 = vld [vmem:[%s5036_s10 + $0x78] sm:$0xff] }
 0x549   : > { %v1442_v12 = vpop.xlane.xlu1 %1441 }
 0x54a   : > { %vm1469_vm13 = vcmp.eq.f32.partialorder %v3872_v28, %v1442_v12 }
 0x54b   : > { %v3553_v41 = vsel %vm1469_vm13, 1.0, %v5908_v35 }
 0x54c   : > { %v1517_v1 = vadd.f32 %v3553_v41, %v5937_v59  ;;  %v5039_v41 = vand.u32 4294901760, %v415_v7 }
 0x54e   : > { %v4974_v57 = vand.u32 4294901760, %v1517_v1  ;;  %2336 = vmatpush.msrb.mxu2 %v5039_v41  ;;  %v5046_v59 = vsub.f32 %v415_v7, %v5039_v41  ;;  %2787 = vmatpush.msra.mxu1 %v5039_v41 }
 0x550   : > { %v4977_v19 = vsub.f32 %v1517_v1, %v4974_v57  ;;  %1803 = vmatmul.f32.gmra.mxu1 %v4974_v57  ;;  %2659 = vmatpush.msra.mxu0 %v5046_v59 }
 0x551   : > { %v1444_v46 = vpop.xlane.xlu1 %1443 }
 0x552   : > { %5938 = vst [vmem:[#allocation8_spill] sm:$0xff] %v4977_v19  ;;  %vm1470_vm14 = vcmp.eq.f32.partialorder %v3872_v28, %v1444_v46  ;;  %1921 = vmatmul.f32.gmra.mxu2 %v4977_v19  ;;  %v4983_v33 = vand.u32 4294901760, %v4977_v19 }
 0x553   : > { %v3554_v56 = vsel %vm1470_vm14, 1.0, %v5908_v35  ;;  %vm3237_vm14 = vcmask 23552  }
 0x554   : > { %5939 = vst [vmem:[#allocation9_spill] sm:$0xff] %v4983_v33  ;;  %v1518_v39 = vadd.f32 %v3554_v56, %v5940_v9  ;;  %2039 = vmatmul.f32.gmra.mxu3 %v4983_v33  ;;  %v1596_v8 = vsub.f32 %v4977_v19, %v4983_v33  ;;  %v5845_v56 = vand.u32 4294901760, %v5046_v59  ;;  %v414_v9 = vld [vmem:[%s5036_s10 + $0x70] sm:$0xff] }
 0x556   : > { %v4990_v27 = vand.u32 4294901760, %v1518_v39  ;;  %v4992_v47 = vand.u32 4294901760, %v1596_v8  ;;  %v5059_v8 = vand.u32 4294901760, %v414_v9  ;;  %v5259_v43 = vpop.f32.mrf.mxu3 }
 0x557   : > { %5965 = vst [vmem:[#allocation34_spill] sm:$0xff] %v5259_v43 }
 0x558   : > { %v4995_v11 = vsub.f32 %v1518_v39, %v4990_v27  ;;  %1598 = vmatmul.f32.gmra.mxu0 %v4992_v47  ;;  %1807 = vmatmul.f32.gmra.mxu1 %v4990_v27  ;;  %v2499_v39 = vsub.f32 %v5046_v59, %v5845_v56 }
 0x559   : > { %v1446_v0 = vpop.xlane.xlu2 %1445  ;;  %2338 = vmatpush.msrb.mxu2 %v5059_v8  ;;  %2789 = vmatpush.msra.mxu1 %v5059_v8 }
 0x55a   : > { %5941 = vst [vmem:[#allocation10_spill] sm:$0xff] %v4995_v11  ;;  %vm1471_vm5 = vcmp.eq.f32.partialorder %v3872_v28, %v1446_v0  ;;  %1926 = vmatmul.f32.gmra.mxu2 %v4995_v11  ;;  %v5002_v58 = vand.u32 4294901760, %v4995_v11 }
 0x55b   : > { %v3555_v55 = vsel %vm1471_vm5, 1.0, %v5908_v35  ;;  %vm3318_vm5 = vcmask 7168  }
 0x55c   : > { %5942 = vst [vmem:[#allocation11_spill] sm:$0xff] %v5002_v58  ;;  %v1519_v6 = vadd.f32 %v3555_v55, %v5943_v51  ;;  %2045 = vmatmul.f32.gmra.mxu3 %v5002_v58  ;;  %v1604_v17 = vsub.f32 %v4995_v11, %v5002_v58 }
 0x55e   : > { %v5009_v18 = vand.u32 4294901760, %v1519_v6  ;;  %v5011_v50 = vand.u32 4294901760, %v1604_v17  ;;  %v5068_v17 = vsub.f32 %v414_v9, %v5059_v8 }
 0x560   : > { %v5014_v26 = vsub.f32 %v1519_v6, %v5009_v18  ;;  %1606 = vmatmul.f32.gmra.mxu0 %v5011_v50  ;;  %1811 = vmatmul.f32.gmra.mxu1 %v5009_v18  ;;  %v2500_v6 = vand.u32 4294901760, %v2499_v39 }
 0x561   : > { %2662 = vmatpush.msra.mxu0 %v5068_v17 }
 0x562   : > { %5944 = vst [vmem:[#allocation12_spill] sm:$0xff] %v5014_v26  ;;  %1931 = vmatmul.f32.gmra.mxu2 %v5014_v26  ;;  %v5020_v22 = vand.u32 4294901760, %v5014_v26  ;;  %2501 = vmatpush.msrb.mxu3 %v2500_v6 }
 0x564   : > { %5945 = vst [vmem:[#allocation15_spill] sm:$0xff] %v5020_v22  ;;  %2051 = vmatmul.f32.gmra.mxu3 %v5020_v22  ;;  %v1612_v63 = vsub.f32 %v5014_v26, %v5020_v22  ;;  %v406_v26 = vld [vmem:[%s5036_s10 + $0x30] sm:$0xff] }
 0x565   : > { %v5208_v22 = vand.u32 4294901760, %v406_v26 }
 0x566   : > { %v5025_v37 = vand.u32 4294901760, %v1612_v63 }
 0x567   : > { %v5221_v58 = vsub.f32 %v406_v26, %v5208_v22 }
 0x568   : > { %1614 = vmatmul.f32.gmra.mxu0 %v5025_v37 }
 0x58c   : > { %v1392_v60 = vpop.xlane.xlu0 %1391 }
 0x58d   : > { %vm1412_vm10 = vcmp.le.f32.partialorder %v4864_v44, %v1392_v60 }
 0x58e   : > { %v1428_v62 = vsel %vm1412_vm10, %v3872_v28, 128.0  ;;  %vm3360_vm10 = vcmask 0  }
 0x58f   : > { %1455 = vmin.xlane.f32.xlu2 %v1428_v62 }
 0x594   : > { %v1394_v23 = vpop.xlane.xlu1 %1393 }
 0x595   : > { %vm1413_vm6 = vcmp.le.f32.partialorder %v4875_v34, %v1394_v23 }
 0x596   : > { %v1429_v61 = vsel %vm1413_vm6, %v3872_v28, 128.0 }
 0x597   : > { %1457 = vmin.xlane.f32.xlu1 %v1429_v61  ;;  %v5843_v61 = vand.u32 4294901760, %v5068_v17 }
 0x59c   : > { %v1448_v12 = vpop.xlane.xlu0 %1447 }
 0x59d   : > { %v1396_v44 = vpop.xlane.xlu2 %1395  ;;  %vm1472_vm1 = vcmp.eq.f32.partialorder %v3872_v28, %v1448_v12 }
 0x59e   : > { %vm1414_vm2 = vcmp.le.f32.partialorder %v4898_v14, %v1396_v44  ;;  %v3556_v34 = vsel %vm1472_vm1, 1.0, %v5908_v35  ;;  %v2505_v44 = vsub.f32 %v5068_v17, %v5843_v61 }
 0x59f   : > { %v1430_v1 = vsel %vm1414_vm2, %v3872_v28, 128.0  ;;  %v1520_v46 = vadd.f32 %v3556_v34, %v4759_v32  ;;  %v413_v32 = vld [vmem:[%s5036_s10 + $0x68] sm:$0xff] }
 0x5a0   : > { %1459 = vmin.xlane.f32.xlu0 %v1430_v1  ;;  %v5070_v63 = vand.u32 4294901760, %v413_v32 }
 0x5a1   : > { %v5053_v14 = vand.u32 4294901760, %v1520_v46 }
 0x5a2   : > { %2340 = vmatpush.msrb.mxu2 %v5070_v63  ;;  %v5084_v7 = vsub.f32 %v413_v32, %v5070_v63  ;;  %2791 = vmatpush.msra.mxu1 %v5070_v63 }
 0x5a3   : > { %v5062_v0 = vsub.f32 %v1520_v46, %v5053_v14  ;;  %1815 = vmatmul.f32.gmra.mxu1 %v5053_v14  ;;  %v2506_v46 = vand.u32 4294901760, %v2505_v44 }
 0x5a4   : > { %v1450_v55 = vpop.xlane.xlu1 %1449  ;;  %v1398_v51 = vpop.xlane.xlu0 %1397  ;;  %v5842_v34 = vand.u32 4294901760, %v5084_v7  ;;  %2665 = vmatpush.msra.mxu0 %v5084_v7 }
 0x5a5   : > { %5946 = vst [vmem:[#allocation16_spill] sm:$0xff] %v5062_v0  ;;  %vm1473_vm9 = vcmp.eq.f32.partialorder %v3872_v28, %v1450_v55  ;;  %vm1415_vm4 = vcmp.le.f32.partialorder %v4924_v54, %v1398_v51  ;;  %1936 = vmatmul.f32.gmra.mxu2 %v5062_v0  ;;  %v5077_v60 = vand.u32 4294901760, %v5062_v0  ;;  %2507 = vmatpush.msrb.mxu3 %v2506_v46 }
 0x5a6   : > { %v3557_v62 = vsel %vm1473_vm9, 1.0, %v5908_v35  ;;  %v1431_v23 = vsel %vm1415_vm4, %v3872_v28, 128.0  ;;  %v2511_v9 = vsub.f32 %v5084_v7, %v5842_v34 }
 0x5a7   : > { %5947 = vst [vmem:[#allocation17_spill] sm:$0xff] %v5077_v60  ;;  %v1521_v12 = vadd.f32 %v3557_v62, %v4782_v31  ;;  %2057 = vmatmul.f32.gmra.mxu3 %v5077_v60  ;;  %1461 = vmin.xlane.f32.xlu2 %v1431_v23  ;;  %v1620_v54 = vsub.f32 %v5062_v0, %v5077_v60  ;;  %v412_v62 = vld [vmem:[%s5036_s10 + $0x60] sm:$0xff] }
 0x5a8   : > { %v2512_v55 = vand.u32 4294901760, %v2511_v9 }
 0x5a9   : > { %v5096_v1 = vand.u32 4294901760, %v1521_v12  ;;  %v5098_v31 = vand.u32 4294901760, %v1620_v54 }
 0x5aa   : > { %2513 = vmatpush.msrb.mxu3 %v2512_v55 }
 0x5ab   : > { %5948 = vst [vmem:[#allocation18_spill] sm:$0xff] %v5096_v1  ;;  %v5105_v39 = vsub.f32 %v1521_v12, %v5096_v1  ;;  %1622 = vmatmul.f32.gmra.mxu0 %v5098_v31  ;;  %1819 = vmatmul.f32.gmra.mxu1 %v5096_v1  ;;  %v5117_v12 = vand.u32 4294901760, %v412_v62 }
 0x5ac   : > { %v1452_v32 = vpop.xlane.xlu2 %1451  ;;  %v1400_v51 = vpop.xlane.xlu1 %1399 }
 0x5ad   : > { %5949 = vst [vmem:[#allocation19_spill] sm:$0xff] %v5105_v39  ;;  %vm1474_vm7 = vcmp.eq.f32.partialorder %v3872_v28, %v1452_v32  ;;  %1941 = vmatmul.f32.gmra.mxu2 %v5105_v39  ;;  %v5112_v6 = vand.u32 4294901760, %v5105_v39  ;;  %vm1416_vm12 = vcmp.le.f32.partialorder %v4953_v29, %v1400_v51  ;;  %v5126_v9 = vsub.f32 %v412_v62, %v5117_v12 }
 0x5ae   : > { %v3558_v23 = vsel %vm1474_vm7, 1.0, %v5908_v35  ;;  %v1432_v44 = vsel %vm1416_vm12, %v3872_v28, 128.0  ;;  %2342 = vmatpush.msrb.mxu2 %v5117_v12  ;;  %2793 = vmatpush.msra.mxu1 %v5117_v12 }
 0x5af   : > { %5950 = vst [vmem:[#allocation20_spill] sm:$0xff] %v5112_v6  ;;  %v1522_v54 = vadd.f32 %v3558_v23, %v4803_v25  ;;  %2063 = vmatmul.f32.gmra.mxu3 %v5112_v6  ;;  %v1628_v46 = vsub.f32 %v5105_v39, %v5112_v6  ;;  %1463 = vmin.xlane.f32.xlu1 %v1432_v44  ;;  %v5844_v25 = vand.u32 4294901760, %v5126_v9  ;;  %v407_v6 = vld [vmem:[%s5036_s10 + $0x38] sm:$0xff] }
 0x5b0   : > { %2668 = vmatpush.msra.mxu0 %v5126_v9 }
 0x5b1   : > { %v5128_v32 = vand.u32 4294901760, %v1522_v54  ;;  %v5130_v29 = vand.u32 4294901760, %v1628_v46  ;;  %v2517_v62 = vsub.f32 %v5126_v9, %v5844_v25 }
 0x5b3   : > { %5951 = vst [vmem:[#allocation21_spill] sm:$0xff] %v5128_v32  ;;  %v5136_v55 = vsub.f32 %v1522_v54, %v5128_v32  ;;  %1630 = vmatmul.f32.gmra.mxu0 %v5130_v29  ;;  %1823 = vmatmul.f32.gmra.mxu1 %v5128_v32  ;;  %v2518_v44 = vand.u32 4294901760, %v2517_v62 }
 0x5b4   : > { %5952 = vst [vmem:[#allocation22_spill] sm:$0xff] %v5130_v29  ;;  %v1454_v51 = vpop.xlane.xlu0 %1453 }
 0x5b5   : > { %5953 = vst [vmem:[#allocation23_spill] sm:$0xff] %v5136_v55  ;;  %vm1475_vm3 = vcmp.eq.f32.partialorder %v3872_v28, %v1454_v51  ;;  %1946 = vmatmul.f32.gmra.mxu2 %v5136_v55  ;;  %v5146_v23 = vand.u32 4294901760, %v5136_v55  ;;  %2519 = vmatpush.msrb.mxu3 %v2518_v44  ;;  %v411_v51 = vld [vmem:[%s5036_s10 + $0x58] sm:$0xff] }
 0x5b6   : > { %v3559_v54 = vsel %vm1475_vm3, 1.0, %v5908_v35 }
 0x5b7   : > { %5954 = vst [vmem:[#allocation24_spill] sm:$0xff] %v5146_v23  ;;  %v1523_v46 = vadd.f32 %v3559_v54, %v4827_v15  ;;  %2069 = vmatmul.f32.gmra.mxu3 %v5146_v23  ;;  %v1636_v34 = vsub.f32 %v5136_v55, %v5146_v23  ;;  %v5163_v15 = vand.u32 4294901760, %v411_v51  ;;  %v410_v55 = vld [vmem:[%s5036_s10 + $0x50] sm:$0xff] }
 0x5b8   : > { %v5186_v39 = vand.u32 4294901760, %v410_v55 }
 0x5b9   : > { %v5153_v61 = vand.u32 4294901760, %v1523_v46  ;;  %v5155_v25 = vand.u32 4294901760, %v1636_v34  ;;  %v5170_v54 = vsub.f32 %v411_v51, %v5163_v15  ;;  %2795 = vmatpush.msra.mxu1 %v5163_v15  ;;  %2344 = vmatpush.msrb.mxu2 %v5163_v15 }
 0x5bb   : > { %5955 = vst [vmem:[#allocation25_spill] sm:$0xff] %v5153_v61  ;;  %v5159_v56 = vsub.f32 %v1523_v46, %v5153_v61  ;;  %1638 = vmatmul.f32.gmra.mxu0 %v5155_v25  ;;  %1827 = vmatmul.f32.gmra.mxu1 %v5153_v61  ;;  %v5850_v44 = vand.u32 4294901760, %v5170_v54 }
 0x5bc   : > { %5956 = vst [vmem:[#allocation26_spill] sm:$0xff] %v5155_v25  ;;  %2671 = vmatpush.msra.mxu0 %v5170_v54  ;;  %2346 = vmatpush.msrb.mxu2 %v5186_v39  ;;  %v400_v25 = vld [vmem:[%s5036_s10] sm:$0xff] }
 0x5bd   : > { %5957 = vst [vmem:[#allocation27_spill] sm:$0xff] %v5159_v56  ;;  %1951 = vmatmul.f32.gmra.mxu2 %v5159_v56  ;;  %v5167_v62 = vand.u32 4294901760, %v5159_v56  ;;  %v2523_v51 = vsub.f32 %v5170_v54, %v5850_v44  ;;  %2797 = vmatpush.msra.mxu1 %v5186_v39 }
 0x5bf   : > { %5958 = vst [vmem:[#allocation28_spill] sm:$0xff] %v5167_v62  ;;  %2075 = vmatmul.f32.gmra.mxu3 %v5167_v62  ;;  %v1644_v34 = vsub.f32 %v5159_v56, %v5167_v62  ;;  %v2524_v23 = vand.u32 4294901760, %v2523_v51  ;;  %v5190_v56 = vsub.f32 %v410_v55, %v5186_v39  ;;  %v409_v51 = vld [vmem:[%s5036_s10 + $0x48] sm:$0xff]  ;;  %v408_v62 = vld [vmem:[%s5036_s10 + $0x40] sm:$0xff]  ;;  %v5205_v55 = vand.u32 4294901760, %v407_v6 }
 0x5c0   : > { %v5203_v60 = vand.u32 4294901760, %v408_v62 }
 0x5c1   : > { %v5179_v46 = vand.u32 4294901760, %v1644_v34  ;;  %2525 = vmatpush.msrb.mxu3 %v2524_v23  ;;  %v5858_v34 = vand.u32 4294901760, %v5190_v56  ;;  %2674 = vmatpush.msra.mxu0 %v5190_v56  ;;  %v5201_v23 = vand.u32 4294901760, %v409_v51 }
 0x5c3   : > { %5959 = vst [vmem:[#allocation29_spill] sm:$0xff] %v5179_v46  ;;  %1646 = vmatmul.f32.gmra.mxu0 %v5179_v46  ;;  %v2529_v44 = vsub.f32 %v5190_v56, %v5858_v34  ;;  %2348 = vmatpush.msrb.mxu2 %v5201_v23  ;;  %v5212_v11 = vsub.f32 %v409_v51, %v5201_v23 }
 0x5c4   : > { %v5215_v34 = vsub.f32 %v408_v62, %v5203_v60  ;;  %2799 = vmatpush.msra.mxu1 %v5201_v23 }
 0x5c5   : > { %v2530_v0 = vand.u32 4294901760, %v2529_v44  ;;  %v5218_v44 = vsub.f32 %v407_v6, %v5205_v55  ;;  %v5863_v19 = vand.u32 4294901760, %v5212_v11  ;;  %2350 = vmatpush.msrb.mxu2 %v5203_v60  ;;  %2677 = vmatpush.msra.mxu0 %v5212_v11 }
 0x5c6   : > { %2801 = vmatpush.msra.mxu1 %v5203_v60 }
 0x5c7   : > { %2531 = vmatpush.msrb.mxu3 %v2530_v0  ;;  %v5865_v0 = vand.u32 4294901760, %v5215_v34  ;;  %v5866_v51 = vand.u32 4294901760, %v5218_v44  ;;  %v2535_v26 = vsub.f32 %v5212_v11, %v5863_v19  ;;  %2352 = vmatpush.msrb.mxu2 %v5205_v55  ;;  %v5960_v19 = vand.u32 4294901760, %v5221_v58 }
 0x5c8   : > { %2680 = vmatpush.msra.mxu0 %v5215_v34  ;;  %2803 = vmatpush.msra.mxu1 %v5205_v55 }
 0x5c9   : > { %v2541_v6 = vsub.f32 %v5215_v34, %v5865_v0  ;;  %v2547_v33 = vsub.f32 %v5218_v44, %v5866_v51  ;;  %v2536_v62 = vand.u32 4294901760, %v2535_v26  ;;  %2354 = vmatpush.msrb.mxu2 %v5208_v22  ;;  %v2553_v20 = vsub.f32 %v5221_v58, %v5960_v19  ;;  %v5250_v26 = vpop.f32.mrf.mxu1  ;;  %v5256_v19 = vpop.f32.mrf.mxu2 }
 0x5ca   : > { %2683 = vmatpush.msra.mxu0 %v5218_v44  ;;  %2805 = vmatpush.msra.mxu1 %v5208_v22  ;;  %5961 = vst [vmem:[#allocation30_spill] sm:$0xff] %v5250_v26 }
 0x5cb   : > { %v2542_v4 = vand.u32 4294901760, %v2541_v6  ;;  %2537 = vmatpush.msrb.mxu3 %v2536_v62  ;;  %v2548_v0 = vand.u32 4294901760, %v2547_v33  ;;  %v2554_v51 = vand.u32 4294901760, %v2553_v20  ;;  %v5252_v6 = vpop.f32.mrf.mxu0  ;;  %5964 = vst [vmem:[#allocation33_spill] sm:$0xff] %v5256_v19  ;;  %v5261_v62 = vand.u32 4294901760, %v405_v5 }
 0x5cc   : > { %2686 = vmatpush.msra.mxu0 %v5221_v58  ;;  %5962 = vst [vmem:[#allocation31_spill] sm:$0xff] %v5252_v6 }
 0x5cd   : > { %2543 = vmatpush.msrb.mxu3 %v2542_v4  ;;  %2356 = vmatpush.msrb.mxu2 %v5261_v62  ;;  %v5265_v4 = vsub.f32 %v405_v5, %v5261_v62  ;;  %v5280_v5 = vpop.f32.mrf.mxu3 }
 0x5ce   : > { %2807 = vmatpush.msra.mxu1 %v5261_v62  ;;  %5969 = vst [vmem:[#allocation38_spill] sm:$0xff] %v5280_v5 }
 0x5cf   : > { %2549 = vmatpush.msrb.mxu3 %v2548_v0  ;;  %v5870_v20 = vand.u32 4294901760, %v5265_v4  ;;  %2689 = vmatpush.msra.mxu0 %v5265_v4 }
 0x5d1   : > { %2555 = vmatpush.msrb.mxu3 %v2554_v51  ;;  %v5254_v49 = vpop.f32.mrf.mxu1  ;;  %v2559_v0 = vsub.f32 %v5265_v4, %v5870_v20  ;;  %v5275_v51 = vpop.f32.mrf.mxu2 }
 0x5d2   : > { %5963 = vst [vmem:[#allocation32_spill] sm:$0xff] %v5254_v49  ;;  %v404_v49 = vld [vmem:[%s5036_s10 + $0x20] sm:$0xff] }
 0x5d3   : > { %v5270_v33 = vpop.f32.mrf.mxu0  ;;  %5967 = vst [vmem:[#allocation36_spill] sm:$0xff] %v5275_v51  ;;  %v2560_v19 = vand.u32 4294901760, %v2559_v0  ;;  %v5282_v26 = vand.u32 4294901760, %v404_v49 }
 0x5d4   : > { %5966 = vst [vmem:[#allocation35_spill] sm:$0xff] %v5270_v33 }
 0x5d5   : > { %2561 = vmatpush.msrb.mxu3 %v2560_v19  ;;  %2358 = vmatpush.msrb.mxu2 %v5282_v26  ;;  %v5286_v33 = vsub.f32 %v404_v49, %v5282_v26  ;;  %v403_v19 = vld [vmem:[%s5036_s10 + $0x18] sm:$0xff]  ;;  %v5303_v30 = vpop.f32.mrf.mxu3 }
 0x5d6   : > { %2809 = vmatpush.msra.mxu1 %v5282_v26  ;;  %v5299_v6 = vand.u32 4294901760, %v403_v19  ;;  %5973 = vst [vmem:[#allocation42_spill] sm:$0xff] %v5303_v30 }
 0x5d7   : > { %v5873_v20 = vand.u32 4294901760, %v5286_v33  ;;  %2692 = vmatpush.msra.mxu0 %v5286_v33 }
 0x5d8   : > { %2360 = vmatpush.msrb.mxu2 %v5299_v6  ;;  %v5307_v48 = vsub.f32 %v403_v19, %v5299_v6  ;;  %2811 = vmatpush.msra.mxu1 %v5299_v6 }
 0x5d9   : > { %v5278_v43 = vpop.f32.mrf.mxu1  ;;  %v5297_v51 = vpop.f32.mrf.mxu2 }
 0x5da   : > { %5968 = vst [vmem:[#allocation37_spill] sm:$0xff] %v5278_v43  ;;  %v2565_v43 = vsub.f32 %v5286_v33, %v5873_v20  ;;  %v5876_v20 = vand.u32 4294901760, %v5307_v48  ;;  %2695 = vmatpush.msra.mxu0 %v5307_v48 }
 0x5db   : > { %v5294_v0 = vpop.f32.mrf.mxu0  ;;  %5971 = vst [vmem:[#allocation40_spill] sm:$0xff] %v5297_v51  ;;  %v402_v51 = vld [vmem:[%s5036_s10 + $0x10] sm:$0xff] }
 0x5dc   : > { %5970 = vst [vmem:[#allocation39_spill] sm:$0xff] %v5294_v0  ;;  %v2566_v5 = vand.u32 4294901760, %v2565_v43  ;;  %v2571_v43 = vsub.f32 %v5307_v48, %v5876_v20  ;;  %v5316_v0 = vand.u32 4294901760, %v402_v51 }
 0x5de   : > { %2567 = vmatpush.msrb.mxu3 %v2566_v5  ;;  %v2572_v5 = vand.u32 4294901760, %v2571_v43  ;;  %2362 = vmatpush.msrb.mxu2 %v5316_v0  ;;  %v5326_v46 = vsub.f32 %v402_v51, %v5316_v0 }
 0x5df   : > { %2813 = vmatpush.msra.mxu1 %v5316_v0 }
 0x5e0   : > { %2573 = vmatpush.msrb.mxu3 %v2572_v5  ;;  %v5882_v43 = vand.u32 4294901760, %v5326_v46  ;;  %2698 = vmatpush.msra.mxu0 %v5326_v46 }
 0x5e1   : > { %v5301_v49 = vpop.f32.mrf.mxu1  ;;  %v5329_v20 = vpop.f32.mrf.mxu2 }
 0x5e2   : > { %5972 = vst [vmem:[#allocation41_spill] sm:$0xff] %v5301_v49  ;;  %v2577_v51 = vsub.f32 %v5326_v46, %v5882_v43 }
 0x5e3   : > { %v5319_v30 = vpop.f32.mrf.mxu0  ;;  %5976 = vst [vmem:[#allocation45_spill] sm:$0xff] %v5329_v20 }
 0x5e4   : > { %5974 = vst [vmem:[#allocation43_spill] sm:$0xff] %v5319_v30  ;;  %v2578_v5 = vand.u32 4294901760, %v2577_v51  ;;  %v5361_v51 = vand.u32 4294901760, %v400_v25 }
 0x5e6   : > { %2579 = vmatpush.msrb.mxu3 %v2578_v5  ;;  %v5377_v1 = vsub.f32 %v400_v25, %v5361_v51 }
 0x5e9   : > { %v5321_v19 = vpop.f32.mrf.mxu1 }
 0x5ea   : > { %5975 = vst [vmem:[#allocation44_spill] sm:$0xff] %v5321_v19 }
 0x5eb   : > { %v5354_v32 = vpop.f32.mrf.mxu0 }
 0x5ec   : > { %5981 = vst [vmem:[#allocation50_spill] sm:$0xff] %v5354_v32 }
 0x5f1   : > { %v5370_v32 = vpop.f32.mrf.mxu1 }
 0x5f2   : > { %5983 = vst [vmem:[#allocation52_spill] sm:$0xff] %v5370_v32 }
 0x602   : > { %v1456_v49 = vpop.xlane.xlu2 %1455 }
 0x603   : > { %vm1476_vm15 = vcmp.eq.f32.partialorder %v3872_v28, %v1456_v49  ;;  %v5332_v49 = vpop.f32.mrf.mxu3 }
 0x604   : > { %v3560_v21 = vsel %vm1476_vm15, 1.0, %v5908_v35  ;;  %5977 = vst [vmem:[#allocation46_spill] sm:$0xff] %v5332_v49 }
 0x605   : > { %v1524_v61 = vadd.f32 %v3560_v21, %v4867_v13  ;;  %v401_v21 = vld [vmem:[%s5036_s10 + $0x8] sm:$0xff] }
 0x606   : > { %v5346_v20 = vand.u32 4294901760, %v401_v21 }
 0x607   : > { %v5336_v19 = vand.u32 4294901760, %v1524_v61 }
 0x608   : > { %2364 = vmatpush.msrb.mxu2 %v5346_v20  ;;  %v5359_v43 = vsub.f32 %v401_v21, %v5346_v20  ;;  %2815 = vmatpush.msra.mxu1 %v5346_v20 }
 0x609   : > { %5978 = vst [vmem:[#allocation47_spill] sm:$0xff] %v5336_v19  ;;  %v5342_v30 = vsub.f32 %v1524_v61, %v5336_v19  ;;  %1831 = vmatmul.f32.gmra.mxu1 %v5336_v19  ;;  %v5363_v19 = vpop.f32.mrf.mxu2 }
 0x60a   : > { %v1458_v13 = vpop.xlane.xlu1 %1457  ;;  %5982 = vst [vmem:[#allocation51_spill] sm:$0xff] %v5363_v19  ;;  %v5888_v21 = vand.u32 4294901760, %v5359_v43  ;;  %2366 = vmatpush.msrb.mxu2 %v5361_v51  ;;  %2701 = vmatpush.msra.mxu0 %v5359_v43  ;;  %v5986_v19 = vand.u32 4294901760, %v5046_v59 }
 0x60b   : > { %5979 = vst [vmem:[#allocation48_spill] sm:$0xff] %v5342_v30  ;;  %vm1477_vm0 = vcmp.eq.f32.partialorder %v3872_v28, %v1458_v13  ;;  %1956 = vmatmul.f32.gmra.mxu2 %v5342_v30  ;;  %v5351_v49 = vand.u32 4294901760, %v5342_v30  ;;  %v5372_v5 = vpop.f32.mrf.mxu3  ;;  %2817 = vmatpush.msra.mxu1 %v5361_v51 }
 0x60c   : > { %v3561_v61 = vsel %vm1477_vm0, 1.0, %v5908_v35  ;;  %5984 = vst [vmem:[#allocation53_spill] sm:$0xff] %v5372_v5  ;;  %2918 = vmatpush.msra.mxu2 %v5986_v19  ;;  %v2583_v32 = vsub.f32 %v5359_v43, %v5888_v21  ;;  %v5891_v5 = vand.u32 4294901760, %v5377_v1  ;;  %2704 = vmatpush.msra.mxu0 %v5377_v1  ;;  %v5987_v19 = vand.u32 4294901760, %v5068_v17 }
 0x60d   : > { %5980 = vst [vmem:[#allocation49_spill] sm:$0xff] %v5351_v49  ;;  %v1525_v13 = vadd.f32 %v3561_v61, %v4879_v38  ;;  %2081 = vmatmul.f32.gmra.mxu3 %v5351_v49  ;;  %v1652_v29 = vsub.f32 %v5342_v30, %v5351_v49  ;;  %v5988_v49 = vand.u32 4294901760, %v5084_v7  ;;  %v5423_v7 = vpop.f32.mrf.mxu1 }
 0x60e   : > { %v2589_v59 = vsub.f32 %v5377_v1, %v5891_v5  ;;  %2922 = vmatpush.msra.mxu2 %v5987_v19  ;;  %v5413_v19 = vpop.f32.mrf.mxu0 }
 0x60f   : > { %v5380_v38 = vand.u32 4294901760, %v1525_v13  ;;  %v5382_v61 = vand.u32 4294901760, %v1652_v29  ;;  %v2584_v29 = vand.u32 4294901760, %v2583_v32  ;;  %5989 = vst [vmem:[#allocation55_spill] sm:$0xff] %v5413_v19  ;;  %v5991_v19 = vand.u32 4294901760, %v5170_v54 }
 0x610   : > { %2926 = vmatpush.msra.mxu2 %v5988_v49 }
 0x611   : > { %5985 = vst [vmem:[#allocation54_spill] sm:$0xff] %v5380_v38  ;;  %v5393_v25 = vsub.f32 %v1525_v13, %v5380_v38  ;;  %1654 = vmatmul.f32.gmra.mxu0 %v5382_v61  ;;  %1835 = vmatmul.f32.gmra.mxu1 %v5380_v38  ;;  %v2590_v13 = vand.u32 4294901760, %v2589_v59  ;;  %v5990_v38 = vand.u32 4294901760, %v5126_v9 }
 0x612   : > { %2585 = vmatpush.msrb.mxu3 %v2584_v29 }
 0x613   : > { %v1460_v21 = vpop.xlane.xlu0 %1459  ;;  %1961 = vmatmul.f32.gmra.mxu2 %v5393_v25  ;;  %v5404_v30 = vand.u32 4294901760, %v5393_v25  ;;  %v5425_v49 = vpop.f32.mrf.mxu3 }
 0x614   : > { %vm1478_vm11 = vcmp.eq.f32.partialorder %v3872_v28, %v1460_v21  ;;  %2591 = vmatpush.msrb.mxu3 %v2590_v13  ;;  %2930 = vmatpush.msra.mxu2 %v5990_v38  ;;  %v5418_v21 = vpop.f32.mrf.mxu2  ;;  %v5994_v13 = vand.u32 4294901760, %v5215_v34 }
 0x615   : > { %v3562_v32 = vsel %vm1478_vm11, 1.0, %v5908_v35  ;;  %2087 = vmatmul.f32.gmra.mxu3 %v5404_v30  ;;  %v1660_v17 = vsub.f32 %v5393_v25, %v5404_v30 }
 0x616   : > { %v1526_v5 = vadd.f32 %v3562_v32, %v4902_v10  ;;  %3045 = vmatpush.msra.mxu3 %v5039_v41  ;;  %2934 = vmatpush.msra.mxu2 %v5991_v19  ;;  %v5992_v41 = vand.u32 4294901760, %v5190_v56  ;;  %v5458_v32 = vpop.f32.mrf.mxu0  ;;  %v5995_v19 = vand.u32 4294901760, %v5218_v44 }
 0x617   : > { %v5420_v29 = vand.u32 4294901760, %v1660_v17 }
 0x618   : > { %v5427_v59 = vand.u32 4294901760, %v1526_v5  ;;  %3047 = vmatpush.msra.mxu3 %v5059_v8  ;;  %2938 = vmatpush.msra.mxu2 %v5992_v41  ;;  %v5996_v41 = vand.u32 4294901760, %v5221_v58 }
 0x619   : > { %1662 = vmatmul.f32.gmra.mxu0 %v5420_v29 }
 0x61a   : > { %v5434_v10 = vsub.f32 %v1526_v5, %v5427_v59  ;;  %1839 = vmatmul.f32.gmra.mxu1 %v5427_v59  ;;  %v1462_v9 = vpop.xlane.xlu2 %1461  ;;  %3049 = vmatpush.msra.mxu3 %v5070_v63  ;;  %v5993_v5 = vand.u32 4294901760, %v5212_v11 }
 0x61b   : > { %vm1479_vm8 = vcmp.eq.f32.partialorder %v3872_v28, %v1462_v9 }
 0x61c   : > { %v3563_v54 = vsel %vm1479_vm8, 1.0, %v5908_v35  ;;  %1966 = vmatmul.f32.gmra.mxu2 %v5434_v10  ;;  %v5444_v38 = vand.u32 4294901760, %v5434_v10  ;;  %3051 = vmatpush.msra.mxu3 %v5117_v12  ;;  %v5464_v11 = vpop.f32.mrf.mxu2 }
 0x61d   : > { %v1527_v8 = vadd.f32 %v3563_v54, %v4929_v45  ;;  %2942 = vmatpush.msra.mxu2 %v5993_v5  ;;  %v5997_v54 = vand.u32 4294901760, %v5265_v4 }
 0x61e   : > { %2093 = vmatmul.f32.gmra.mxu3 %v5444_v38  ;;  %v1668_v56 = vsub.f32 %v5434_v10, %v5444_v38 }
 0x61f   : > { %v5453_v63 = vand.u32 4294901760, %v1527_v8  ;;  %3053 = vmatpush.msra.mxu3 %v5163_v15  ;;  %2946 = vmatpush.msra.mxu2 %v5994_v13  ;;  %v5472_v15 = vpop.f32.mrf.mxu3 }
 0x620   : > { %v5460_v45 = vpop.f32.mrf.mxu1  ;;  %v5462_v12 = vand.u32 4294901760, %v1668_v56 }
 0x621   : > { %v5467_v17 = vsub.f32 %v1527_v8, %v5453_v63  ;;  %3055 = vmatpush.msra.mxu3 %v5186_v39  ;;  %2950 = vmatpush.msra.mxu2 %v5995_v19 }
 0x622   : > { %1670 = vmatmul.f32.gmra.mxu0 %v5462_v12  ;;  %1843 = vmatmul.f32.gmra.mxu1 %v5453_v63  ;;  %v1464_v34 = vpop.xlane.xlu1 %1463 }
 0x623   : > { %v5477_v9 = vand.u32 4294901760, %v5467_v17  ;;  %3057 = vmatpush.msra.mxu3 %v5201_v23  ;;  %2954 = vmatpush.msra.mxu2 %v5996_v41  ;;  %vm1480_vm13 = vcmp.eq.f32.partialorder %v3872_v28, %v1464_v34  ;;  %v5998_v28 = vand.u32 4294901760, %v5286_v33  ;;  %v6000_v33 = vand.u32 4294901760, %v5326_v46 }
 0x624   : > { %1971 = vmatmul.f32.gmra.mxu2 %v5467_v17  ;;  %v3564_v39 = vsel %vm1480_vm13, 1.0, %v5908_v35  ;;  %v6002_v46 = vand.u32 4294901760, %v5377_v1 }
 0x625   : > { %v1676_v44 = vsub.f32 %v5467_v17, %v5477_v9  ;;  %3059 = vmatpush.msra.mxu3 %v5203_v60  ;;  %2958 = vmatpush.msra.mxu2 %v5997_v54  ;;  %v1528_v8 = vadd.f32 %v3564_v39, %v4960_v42  ;;  %v5999_v42 = vand.u32 4294901760, %v5307_v48  ;;  %v6001_v48 = vand.u32 4294901760, %v5359_v43 }
 0x626   : > { %2099 = vmatmul.f32.gmra.mxu3 %v5477_v9 }
 0x627   : > { %v5492_v58 = vand.u32 4294901760, %v1676_v44  ;;  %3061 = vmatpush.msra.mxu3 %v5205_v55  ;;  %2962 = vmatpush.msra.mxu2 %v5998_v28  ;;  %v5497_v35 = vand.u32 4294901760, %v1528_v8  ;;  %v6010_v28 = vld [vmem:[#allocation54_spill] sm:$0xff] }
 0x628   : > { %v5499_v23 = vpop.f32.mrf.mxu0  ;;  %v1820_v5 = vpop.f32.mrf.mxu1 }
 0x629   : > { %v5501_v60 = vpop.f32.mrf.mxu2  ;;  %3063 = vmatpush.msra.mxu3 %v5208_v22  ;;  %2966 = vmatpush.msra.mxu2 %v5999_v42  ;;  %v5507_v4 = vsub.f32 %v1528_v8, %v5497_v35 }
 0x62a   : > { %1678 = vmatmul.f32.gmra.mxu0 %v5492_v58  ;;  %1847 = vmatmul.f32.gmra.mxu1 %v5497_v35  ;;  %v5511_v55 = vpop.f32.mrf.mxu3 }
 0x62b   : > { %3065 = vmatpush.msra.mxu3 %v5261_v62  ;;  %2970 = vmatpush.msra.mxu2 %v6000_v33  ;;  %v5518_v22 = vand.u32 4294901760, %v5507_v4 }
 0x62c   : > { %1976 = vmatmul.f32.gmra.mxu2 %v5507_v4 }
 0x62d   : > { %3067 = vmatpush.msra.mxu3 %v5282_v26  ;;  %2974 = vmatpush.msra.mxu2 %v6001_v48  ;;  %v1684_v56 = vsub.f32 %v5507_v4, %v5518_v22 }
 0x62e   : > { %2105 = vmatmul.f32.gmra.mxu3 %v5518_v22 }
 0x62f   : > { %3069 = vmatpush.msra.mxu3 %v5299_v6  ;;  %2978 = vmatpush.msra.mxu2 %v6002_v46  ;;  %v5529_v19 = vand.u32 4294901760, %v1684_v56 }
 0x630   : > { %v1631_v62 = vpop.f32.mrf.mxu0  ;;  %v1824_v13 = vpop.f32.mrf.mxu1 }
 0x631   : > { %v1942_v34 = vpop.f32.mrf.mxu2  ;;  %3071 = vmatpush.msra.mxu3 %v5316_v0 }
 0x632   : > { %1686 = vmatmul.f32.gmra.mxu0 %v5529_v19  ;;  %2271 = vmatmul.f32.vlgmr.msrb.gmra.mxu1 %v4833_v36  ;;  %v2064_v26 = vpop.f32.mrf.mxu3 }
 0x633   : > { %3073 = vmatpush.msra.mxu3 %v5346_v20 }
 0x634   : > { %2372 = vmatmul.f32.vlgmr.msrb.gmra.mxu2 %v4854_v3 }
 0x635   : > { %3075 = vmatpush.msra.mxu3 %v5361_v51  ;;  %v6009_v51 = vld [vmem:[#allocation47_spill] sm:$0xff] }
 0x636   : > { %2593 = vmatmul.f32.vlgmr.msrb.gmra.mxu3 %v4833_v36 }
 0x638   : > { %v1639_v1 = vpop.f32.mrf.mxu0  ;;  %v1828_v6 = vpop.f32.mrf.mxu1 }
 0x639   : > { %v1947_v43 = vpop.f32.mrf.mxu2 }
 0x63a   : > { %2174 = vmatmul.f32.vlgmr.msrb.gmra.mxu0 %v4833_v36  ;;  %2275 = vmatmul.f32.gmra.mxu1 %v4882_v52  ;;  %v2070_v0 = vpop.f32.mrf.mxu3 }
 0x63c   : > { %2380 = vmatmul.f32.gmra.mxu2 %v4909_v24  ;;  %v6003_v24 = vld [vmem:[#allocation18_spill] sm:$0xff] }
 0x63e   : > { %2597 = vmatmul.f32.gmra.mxu3 %v4882_v52 }
 0x640   : > { %v1647_v41 = vpop.f32.mrf.mxu0 }
 0x641   : > { %v1952_v20 = vpop.f32.mrf.mxu2 }
 0x642   : > { %2178 = vmatmul.f32.gmra.mxu0 %v4882_v52  ;;  %2279 = vmatmul.f32.gmra.mxu1 %v4911_v53  ;;  %v2076_v3 = vpop.f32.mrf.mxu3 }
 0x644   : > { %2388 = vmatmul.f32.gmra.mxu2 %v4941_v40  ;;  %v6004_v40 = vld [vmem:[#allocation22_spill] sm:$0xff] }
 0x646   : > { %2601 = vmatmul.f32.gmra.mxu3 %v4911_v53 }
 0x64a   : > { %2182 = vmatmul.f32.gmra.mxu0 %v4911_v53  ;;  %2283 = vmatmul.f32.gmra.mxu1 %v4939_v16 }
 0x64c   : > { %2396 = vmatmul.f32.gmra.mxu2 %v4966_v2  ;;  %v6005_v2 = vld [vmem:[#allocation21_spill] sm:$0xff] }
 0x64e   : > { %2605 = vmatmul.f32.gmra.mxu3 %v4939_v16 }
 0x652   : > { %2186 = vmatmul.f32.gmra.mxu0 %v4939_v16  ;;  %2287 = vmatmul.f32.gmra.mxu1 %v4974_v57 }
 0x654   : > { %2404 = vmatmul.f32.gmra.mxu2 %v4992_v47  ;;  %v6006_v47 = vld [vmem:[#allocation26_spill] sm:$0xff] }
 0x656   : > { %2609 = vmatmul.f32.gmra.mxu3 %v4974_v57 }
 0x65a   : > { %2190 = vmatmul.f32.gmra.mxu0 %v4974_v57  ;;  %2291 = vmatmul.f32.gmra.mxu1 %v4990_v27 }
 0x65c   : > { %2412 = vmatmul.f32.gmra.mxu2 %v5011_v50  ;;  %v6007_v50 = vld [vmem:[#allocation25_spill] sm:$0xff] }
 0x65e   : > { %2613 = vmatmul.f32.gmra.mxu3 %v4990_v27 }
 0x662   : > { %2194 = vmatmul.f32.gmra.mxu0 %v4990_v27  ;;  %2295 = vmatmul.f32.gmra.mxu1 %v5009_v18 }
 0x664   : > { %2420 = vmatmul.f32.gmra.mxu2 %v5025_v37  ;;  %v6008_v37 = vld [vmem:[#allocation29_spill] sm:$0xff] }
 0x666   : > { %2617 = vmatmul.f32.gmra.mxu3 %v5009_v18 }
 0x66a   : > { %2198 = vmatmul.f32.gmra.mxu0 %v5009_v18  ;;  %2299 = vmatmul.f32.gmra.mxu1 %v5053_v14 }
 0x66c   : > { %2428 = vmatmul.f32.gmra.mxu2 %v5098_v31 }
 0x66e   : > { %2621 = vmatmul.f32.gmra.mxu3 %v5053_v14 }
 0x672   : > { %2202 = vmatmul.f32.gmra.mxu0 %v5053_v14  ;;  %2303 = vmatmul.f32.gmra.mxu1 %v6003_v24 }
 0x674   : > { %2436 = vmatmul.f32.gmra.mxu2 %v6004_v40  ;;  %v6012_v40 = vld [vmem:[#allocation13_spill] sm:$0xff] }
 0x676   : > { %2625 = vmatmul.f32.gmra.mxu3 %v6003_v24 }
 0x67a   : > { %2206 = vmatmul.f32.gmra.mxu0 %v6003_v24  ;;  %2307 = vmatmul.f32.gmra.mxu1 %v6005_v2 }
 0x67c   : > { %2444 = vmatmul.f32.gmra.mxu2 %v6006_v47  ;;  %v6013_v47 = vld [vmem:[#allocation4_spill] sm:$0xff] }
 0x67e   : > { %2629 = vmatmul.f32.gmra.mxu3 %v6005_v2 }
 0x682   : > { %2210 = vmatmul.f32.gmra.mxu0 %v6005_v2  ;;  %2311 = vmatmul.f32.gmra.mxu1 %v6007_v50 }
 0x684   : > { %2452 = vmatmul.f32.gmra.mxu2 %v6008_v37 }
 0x686   : > { %2633 = vmatmul.f32.gmra.mxu3 %v6007_v50  ;;  %v1832_v31 = vpop.f32.mrf.mxu1 }
 0x68a   : > { %2214 = vmatmul.f32.gmra.mxu0 %v6007_v50  ;;  %2315 = vmatmul.f32.gmra.mxu1 %v6009_v51 }
 0x68c   : > { %2460 = vmatmul.f32.gmra.mxu2 %v5382_v61 }
 0x68e   : > { %2637 = vmatmul.f32.gmra.mxu3 %v6009_v51  ;;  %v1655_v39 = vpop.f32.mrf.mxu0  ;;  %v1836_v44 = vpop.f32.mrf.mxu1 }
 0x68f   : > { %v1957_v54 = vpop.f32.mrf.mxu2 }
 0x690   : > { %v2082_v8 = vpop.f32.mrf.mxu3  ;;  %v6014_v54 = vld [vmem:[#allocation2_spill] sm:$0xff] }
 0x691   : > { %v6015_v8 = vld [vmem:[#allocation5_spill] sm:$0xff] }
 0x692   : > { %2218 = vmatmul.f32.gmra.mxu0 %v6009_v51  ;;  %2319 = vmatmul.f32.gmra.mxu1 %v6010_v28 }
 0x694   : > { %2468 = vmatmul.f32.gmra.mxu2 %v5420_v29 }
 0x696   : > { %2641 = vmatmul.f32.gmra.mxu3 %v6010_v28  ;;  %v1663_v5 = vpop.f32.mrf.mxu0 }
 0x697   : > { %v1840_v42 = vpop.f32.mrf.mxu1  ;;  %v1962_v33 = vpop.f32.mrf.mxu2 }
 0x698   : > { %v2088_v48 = vpop.f32.mrf.mxu3 }
 0x69a   : > { %2222 = vmatmul.f32.gmra.mxu0 %v6010_v28  ;;  %2323 = vmatmul.f32.gmra.mxu1 %v5427_v59 }
 0x69c   : > { %2476 = vmatmul.f32.gmra.mxu2 %v5462_v12 }
 0x69e   : > { %2645 = vmatmul.f32.gmra.mxu3 %v5427_v59 }
 0x69f   : > { %v1671_v61 = vpop.f32.mrf.mxu0  ;;  %v1844_v56 = vpop.f32.mrf.mxu1 }
 0x6a0   : > { %v1967_v46 = vpop.f32.mrf.mxu2  ;;  %v6016_v61 = vld [vmem:[#allocation3_spill] sm:$0xff] }
 0x6a1   : > { %v2094_v62 = vpop.f32.mrf.mxu3  ;;  %v6017_v56 = vld [vmem:[#allocation7_spill] sm:$0xff] }
 0x6a2   : > { %2226 = vmatmul.f32.gmra.mxu0 %v5427_v59  ;;  %2327 = vmatmul.f32.gmra.mxu1 %v5453_v63 }
 0x6a4   : > { %2484 = vmatmul.f32.gmra.mxu2 %v5492_v58  ;;  %v6011_v58 = vld [vmem:[#allocation14_spill] sm:$0xff] }
 0x6a6   : > { %2649 = vmatmul.f32.gmra.mxu3 %v5453_v63 }
 0x6a7   : > { %v1679_v29 = vpop.f32.mrf.mxu0  ;;  %v1848_v13 = vpop.f32.mrf.mxu1 }
 0x6a8   : > { %v1972_v34 = vpop.f32.mrf.mxu2 }
 0x6a9   : > { %v2100_v26 = vpop.f32.mrf.mxu3  ;;  %v6018_v34 = vld [vmem:[#allocation6_spill] sm:$0xff] }
 0x6aa   : > { %2230 = vmatmul.f32.gmra.mxu0 %v5453_v63  ;;  %2331 = vmatmul.f32.gmra.mxu1 %v5497_v35  ;;  %v6019_v26 = vld [vmem:[#allocation9_spill] sm:$0xff] }
 0x6ac   : > { %2492 = vmatmul.f32.gmra.mxu2 %v5529_v19 }
 0x6ae   : > { %2653 = vmatmul.f32.gmra.mxu3 %v5497_v35 }
 0x6af   : > { %v1687_v12 = vpop.f32.mrf.mxu0  ;;  %v5598_v1 = vpop.f32.mrf.mxu1 }
 0x6b0   : > { %v1977_v6 = vpop.f32.mrf.mxu2 }
 0x6b1   : > { %v2106_v43 = vpop.f32.mrf.mxu3 }
 0x6b2   : > { %2234 = vmatmul.f32.gmra.mxu0 %v5497_v35  ;;  %2821 = vmatmul.f32.vlgmr.msra.gmra.mxu1 %v6011_v58 }
 0x6b4   : > { %2980 = vmatmul.f32.vlgmr.msra.gmra.mxu2 %v4833_v36 }
 0x6b6   : > { %3077 = vmatmul.f32.vlgmr.msra.gmra.mxu3 %v4833_v36 }
 0x6b7   : > { %v5604_v0 = vpop.f32.mrf.mxu0  ;;  %v5606_v41 = vpop.f32.mrf.mxu1 }
 0x6b8   : > { %v2373_v19 = vpop.f32.mrf.mxu2 }
 0x6b9   : > { %v2594_v20 = vpop.f32.mrf.mxu3 }
 0x6ba   : > { %v5608_v3 = vadd.f32 %v2594_v20, %v2373_v19  ;;  %2707 = vmatmul.f32.vlgmr.msra.gmra.mxu0 %v6012_v40  ;;  %2827 = vmatmul.f32.gmra.mxu1 %v6013_v47  ;;  %v6020_v19 = vld [vmem:[#allocation8_spill] sm:$0xff]  ;;  %v6021_v20 = vld [vmem:[#allocation11_spill] sm:$0xff] }
 0x6bc   : > { %2984 = vmatmul.f32.gmra.mxu2 %v4882_v52 }
 0x6be   : > { %3081 = vmatmul.f32.gmra.mxu3 %v4882_v52 }
 0x6bf   : > { %v5614_v37 = vpop.f32.mrf.mxu0  ;;  %v5616_v31 = vpop.f32.mrf.mxu1 }
 0x6c0   : > { %v2381_v36 = vpop.f32.mrf.mxu2 }
 0x6c1   : > { %v2598_v39 = vpop.f32.mrf.mxu3 }
 0x6c2   : > { %v5618_v44 = vadd.f32 %v2598_v39, %v2381_v36  ;;  %2712 = vmatmul.f32.gmra.mxu0 %v6014_v54  ;;  %2833 = vmatmul.f32.gmra.mxu1 %v6015_v8  ;;  %v6022_v54 = vld [vmem:[#allocation10_spill] sm:$0xff]  ;;  %v6023_v8 = vld [vmem:[#allocation15_spill] sm:$0xff] }
 0x6c4   : > { %2988 = vmatmul.f32.gmra.mxu2 %v4911_v53 }
 0x6c6   : > { %3085 = vmatmul.f32.gmra.mxu3 %v4911_v53 }
 0x6c7   : > { %v5624_v5 = vpop.f32.mrf.mxu0  ;;  %v5626_v42 = vpop.f32.mrf.mxu1 }
 0x6c8   : > { %v2389_v52 = vpop.f32.mrf.mxu2 }
 0x6c9   : > { %v2602_v33 = vpop.f32.mrf.mxu3 }
 0x6ca   : > { %v5628_v48 = vadd.f32 %v2602_v33, %v2389_v52  ;;  %2717 = vmatmul.f32.gmra.mxu0 %v6016_v61  ;;  %2839 = vmatmul.f32.gmra.mxu1 %v6017_v56 }
 0x6cc   : > { %2992 = vmatmul.f32.gmra.mxu2 %v4939_v16 }
 0x6ce   : > { %3089 = vmatmul.f32.gmra.mxu3 %v4939_v16 }
 0x6cf   : > { %v5634_v46 = vpop.f32.mrf.mxu0  ;;  %v5636_v62 = vpop.f32.mrf.mxu1 }
 0x6d0   : > { %v2397_v53 = vpop.f32.mrf.mxu2 }
 0x6d1   : > { %v2606_v29 = vpop.f32.mrf.mxu3 }
 0x6d2   : > { %v5638_v13 = vadd.f32 %v2606_v29, %v2397_v53  ;;  %2722 = vmatmul.f32.gmra.mxu0 %v6018_v34  ;;  %2845 = vmatmul.f32.gmra.mxu1 %v6019_v26  ;;  %v6024_v53 = vld [vmem:[#allocation12_spill] sm:$0xff]  ;;  %v6025_v29 = vld [vmem:[#allocation17_spill] sm:$0xff] }
 0x6d4   : > { %2996 = vmatmul.f32.gmra.mxu2 %v4974_v57 }
 0x6d6   : > { %3093 = vmatmul.f32.gmra.mxu3 %v4974_v57 }
 0x6d7   : > { %v5644_v12 = vpop.f32.mrf.mxu0  ;;  %v5646_v6 = vpop.f32.mrf.mxu1 }
 0x6d8   : > { %v2405_v16 = vpop.f32.mrf.mxu2 }
 0x6d9   : > { %v2610_v43 = vpop.f32.mrf.mxu3 }
 0x6da   : > { %v5648_v58 = vadd.f32 %v2610_v43, %v2405_v16  ;;  %2727 = vmatmul.f32.gmra.mxu0 %v6020_v19  ;;  %2851 = vmatmul.f32.gmra.mxu1 %v6021_v20  ;;  %v6026_v19 = vld [vmem:[#allocation16_spill] sm:$0xff] }
 0x6db   : > { %v6027_v20 = vld [vmem:[#allocation20_spill] sm:$0xff] }
 0x6dc   : > { %3000 = vmatmul.f32.gmra.mxu2 %v4990_v27 }
 0x6de   : > { %3097 = vmatmul.f32.gmra.mxu3 %v4990_v27 }
 0x6df   : > { %v5654_v40 = vpop.f32.mrf.mxu0  ;;  %v5656_v47 = vpop.f32.mrf.mxu1 }
 0x6e0   : > { %v2413_v57 = vpop.f32.mrf.mxu2 }
 0x6e1   : > { %v2614_v36 = vpop.f32.mrf.mxu3 }
 0x6e2   : > { %v5658_v39 = vadd.f32 %v2614_v36, %v2413_v57  ;;  %2732 = vmatmul.f32.gmra.mxu0 %v6022_v54  ;;  %2857 = vmatmul.f32.gmra.mxu1 %v6023_v8 }
 0x6e4   : > { %3004 = vmatmul.f32.gmra.mxu2 %v5009_v18 }
 0x6e6   : > { %3101 = vmatmul.f32.gmra.mxu3 %v5009_v18 }
 0x6e7   : > { %v5664_v52 = vpop.f32.mrf.mxu0  ;;  %v5666_v33 = vpop.f32.mrf.mxu1 }
 0x6e8   : > { %v2421_v27 = vpop.f32.mrf.mxu2 }
 0x6e9   : > { %v2618_v61 = vpop.f32.mrf.mxu3 }
 0x6ea   : > { %v5668_v56 = vadd.f32 %v2618_v61, %v2421_v27  ;;  %2737 = vmatmul.f32.gmra.mxu0 %v6024_v53  ;;  %2863 = vmatmul.f32.gmra.mxu1 %v6025_v29  ;;  %v6029_v27 = vld [vmem:[#allocation24_spill] sm:$0xff] }
 0x6ec   : > { %3008 = vmatmul.f32.gmra.mxu2 %v5053_v14 }
 0x6ee   : > { %3105 = vmatmul.f32.gmra.mxu3 %v5053_v14  ;;  %v6028_v14 = vld [vmem:[#allocation19_spill] sm:$0xff] }
 0x6ef   : > { %v5674_v34 = vpop.f32.mrf.mxu0  ;;  %v2304_v26 = vpop.f32.mrf.mxu1 }
 0x6f0   : > { %v2429_v18 = vpop.f32.mrf.mxu2 }
 0x6f1   : > { %v2622_v16 = vpop.f32.mrf.mxu3 }
 0x6f2   : > { %v5676_v43 = vadd.f32 %v2622_v16, %v2429_v18  ;;  %2742 = vmatmul.f32.gmra.mxu0 %v6026_v19  ;;  %2869 = vmatmul.f32.gmra.mxu1 %v6027_v20  ;;  %v6030_v18 = vld [vmem:[#allocation23_spill] sm:$0xff]  ;;  %v6031_v16 = vld [vmem:[#allocation28_spill] sm:$0xff] }
 0x6f4   : > { %3012 = vmatmul.f32.gmra.mxu2 %v6003_v24 }
 0x6f6   : > { %3109 = vmatmul.f32.gmra.mxu3 %v6003_v24 }
 0x6f7   : > { %v2207_v57 = vpop.f32.mrf.mxu0  ;;  %v2308_v36 = vpop.f32.mrf.mxu1 }
 0x6f8   : > { %v2437_v54 = vpop.f32.mrf.mxu2  ;;  %v6032_v36 = vld [vmem:[#allocation27_spill] sm:$0xff] }
 0x6f9   : > { %v2626_v8 = vpop.f32.mrf.mxu3  ;;  %v6033_v54 = vld [vmem:[#allocation49_spill] sm:$0xff] }
 0x6fa   : > { %2747 = vmatmul.f32.gmra.mxu0 %v6028_v14  ;;  %2875 = vmatmul.f32.gmra.mxu1 %v6029_v27 }
 0x6fc   : > { %3016 = vmatmul.f32.gmra.mxu2 %v6005_v2 }
 0x6fe   : > { %3113 = vmatmul.f32.gmra.mxu3 %v6005_v2 }
 0x6ff   : > { %v2211_v61 = vpop.f32.mrf.mxu0  ;;  %v2312_v53 = vpop.f32.mrf.mxu1 }
 0x700   : > { %v2445_v29 = vpop.f32.mrf.mxu2  ;;  %v6034_v61 = vld [vmem:[#allocation48_spill] sm:$0xff] }
 0x701   : > { %v2630_v26 = vpop.f32.mrf.mxu3 }
 0x702   : > { %2752 = vmatmul.f32.gmra.mxu0 %v6030_v18  ;;  %2881 = vmatmul.f32.gmra.mxu1 %v6031_v16 }
 0x704   : > { %3020 = vmatmul.f32.gmra.mxu2 %v6007_v50 }
 0x706   : > { %3117 = vmatmul.f32.gmra.mxu3 %v6007_v50 }
 0x707   : > { %v2215_v24 = vpop.f32.mrf.mxu0  ;;  %v2316_v19 = vpop.f32.mrf.mxu1 }
 0x708   : > { %v2453_v20 = vpop.f32.mrf.mxu2  ;;  %v6036_v19 = vld [vmem:[#allocation30_spill] sm:$0xff] }
 0x709   : > { %v2634_v57 = vpop.f32.mrf.mxu3 }
 0x70a   : > { %2757 = vmatmul.f32.gmra.mxu0 %v6032_v36  ;;  %2887 = vmatmul.f32.gmra.mxu1 %v6033_v54  ;;  %v6037_v57 = vld [vmem:[#allocation33_spill] sm:$0xff] }
 0x70c   : > { %3024 = vmatmul.f32.gmra.mxu2 %v6009_v51 }
 0x70e   : > { %3121 = vmatmul.f32.gmra.mxu3 %v6009_v51 }
 0x70f   : > { %v2219_v2 = vpop.f32.mrf.mxu0  ;;  %v2320_v8 = vpop.f32.mrf.mxu1 }
 0x710   : > { %v2461_v14 = vpop.f32.mrf.mxu2  ;;  %v6038_v2 = vld [vmem:[#allocation34_spill] sm:$0xff]  ;;  %v6039_v8 = vld [vmem:[#allocation35_spill] sm:$0xff] }
 0x711   : > { %v2638_v27 = vpop.f32.mrf.mxu3 }
 0x712   : > { %2762 = vmatmul.f32.gmra.mxu0 %v6034_v61  ;;  %2893 = vmatmul.f32.gmra.mxu1 %v5404_v30 }
 0x714   : > { %3028 = vmatmul.f32.gmra.mxu2 %v6010_v28 }
 0x716   : > { %3125 = vmatmul.f32.gmra.mxu3 %v6010_v28 }
 0x717   : > { %v2223_v50 = vpop.f32.mrf.mxu0  ;;  %v2324_v53 = vpop.f32.mrf.mxu1 }
 0x718   : > { %v2469_v29 = vpop.f32.mrf.mxu2  ;;  %v6041_v53 = vld [vmem:[#allocation36_spill] sm:$0xff] }
 0x719   : > { %v2642_v26 = vpop.f32.mrf.mxu3 }
 0x71a   : > { %2767 = vmatmul.f32.gmra.mxu0 %v5393_v25  ;;  %2899 = vmatmul.f32.gmra.mxu1 %v5444_v38 }
 0x71c   : > { %3032 = vmatmul.f32.gmra.mxu2 %v5427_v59 }
 0x71e   : > { %3129 = vmatmul.f32.gmra.mxu3 %v5427_v59  ;;  %v6035_v59 = vld [vmem:[#allocation31_spill] sm:$0xff] }
 0x71f   : > { %v2227_v51 = vpop.f32.mrf.mxu0  ;;  %v2328_v18 = vpop.f32.mrf.mxu1  ;;  %v1789_v20 = vadd.f32 %v6036_v19, %v6035_v59  ;;  %v367_v19 = vld [vmem:[%s5728_s13] sm:$0xff] }
 0x720   : > { %v2477_v16 = vpop.f32.mrf.mxu2 }
 0x721   : > { %v2646_v30 = vpop.f32.mrf.mxu3  ;;  %v1903_v36 = vadd.f32 %v6037_v57, %v1789_v20 }
 0x722   : > { %2772 = vmatmul.f32.gmra.mxu0 %v5434_v10  ;;  %2905 = vmatmul.f32.gmra.mxu1 %v5477_v9  ;;  %v6042_v30 = vld [vmem:[#allocation38_spill] sm:$0xff] }
 0x724   : > { %3036 = vmatmul.f32.gmra.mxu2 %v5453_v63 }
 0x726   : > { %3133 = vmatmul.f32.gmra.mxu3 %v5453_v63 }
 0x727   : > { %v2231_v28 = vpop.f32.mrf.mxu0  ;;  %v2332_v25 = vpop.f32.mrf.mxu1 }
 0x728   : > { %v2485_v24 = vpop.f32.mrf.mxu2  ;;  %v6043_v28 = vld [vmem:[#allocation39_spill] sm:$0xff]  ;;  %v6044_v25 = vld [vmem:[#allocation37_spill] sm:$0xff] }
 0x729   : > { %v2650_v38 = vpop.f32.mrf.mxu3  ;;  %v1797_v24 = vadd.f32 %v6044_v25, %v6043_v28 }
 0x72a   : > { %2777 = vmatmul.f32.gmra.mxu0 %v5467_v17  ;;  %2911 = vmatmul.f32.gmra.mxu1 %v5518_v22  ;;  %v2017_v17 = vadd.f32 %v6038_v2, %v1903_v36  ;;  %v6040_v22 = vld [vmem:[#allocation32_spill] sm:$0xff] }
 0x72b   : > { %v1793_v14 = vadd.f32 %v6040_v22, %v6039_v8  ;;  %v3623_v22 = vld [vmem:[%s3719_s25] sm:$0xff] }
 0x72c   : > { %3040 = vmatmul.f32.gmra.mxu2 %v5497_v35  ;;  %v2176_v27 = vadd.f32 %v5604_v0, %v2017_v17 }
 0x72e   : > { %3137 = vmatmul.f32.gmra.mxu3 %v5497_v35  ;;  %v1908_v35 = vadd.f32 %v6041_v53, %v1793_v14  ;;  %v2273_v18 = vadd.f32 %v5598_v1, %v2176_v27  ;;  %v6046_v27 = vld [vmem:[#allocation42_spill] sm:$0xff]  ;;  %v6048_v53 = vld [vmem:[#allocation41_spill] sm:$0xff] }
 0x72f   : > { %v2235_v10 = vpop.f32.mrf.mxu0  ;;  %v2822_v9 = vpop.f32.mrf.mxu1 }
 0x730   : > { %v2493_v63 = vpop.f32.mrf.mxu2  ;;  %v3141_v0 = vmul.f32 0.25, %v2273_v18  ;;  %v6045_v10 = vld [vmem:[#allocation40_spill] sm:$0xff] }
 0x731   : > { %v2654_v54 = vpop.f32.mrf.mxu3 }
 0x732   : > { %2782 = vmatmul.f32.gmra.mxu0 %v5507_v4  ;;  %v2023_v4 = vadd.f32 %v6042_v30, %v1908_v35  ;;  %v3157_v14 = vsub.f32 %v3141_v0, %v3623_v22  ;;  %v368_v30 = vld [vmem:[%s5728_s13 + $0x8] sm:$0xff] }
 0x737   : > { %v2708_v61 = vpop.f32.mrf.mxu0  ;;  %v2828_v50 = vpop.f32.mrf.mxu1 }
 0x738   : > { %v2709_v29 = vadd.f32 %v2708_v61, %v5608_v3  ;;  %v2981_v26 = vpop.f32.mrf.mxu2  ;;  %v2180_v3 = vadd.f32 %v5614_v37, %v2023_v4  ;;  %v6047_v61 = vld [vmem:[#allocation43_spill] sm:$0xff] }
 0x739   : > { %v3078_v51 = vpop.f32.mrf.mxu3  ;;  %v1801_v35 = vadd.f32 %v6048_v53, %v6047_v61  ;;  %v6053_v61 = vld [vmem:[#allocation51_spill] sm:$0xff] }
 0x73a   : > { %v2823_v16 = vadd.f32 %v2822_v9, %v2709_v29  ;;  %v1913_v9 = vadd.f32 %v6045_v10, %v1797_v24  ;;  %v2277_v2 = vadd.f32 %v5606_v41, %v2180_v3 }
 0x73c   : > { %v2982_v38 = vadd.f32 %v2981_v26, %v2823_v16  ;;  %v2029_v37 = vadd.f32 %v6046_v27, %v1913_v9  ;;  %v6050_v9 = vld [vmem:[#allocation46_spill] sm:$0xff]  ;;  %v369_v27 = vld [vmem:[%s5728_s13 + $0x10] sm:$0xff] }
 0x73e   : > { %v3079_v59 = vadd.f32 %v3078_v51, %v2982_v38  ;;  %v3142_v51 = vmul.f32 0.25, %v2277_v2 }
 0x73f   : > { %v2713_v1 = vpop.f32.mrf.mxu0  ;;  %v2834_v20 = vpop.f32.mrf.mxu1 }
 0x740   : > { %v3173_v57 = vmul.f32 0.25, %v3079_v59  ;;  %v2714_v36 = vadd.f32 %v2713_v1, %v5618_v44  ;;  %v2985_v63 = vpop.f32.mrf.mxu2  ;;  %v2184_v44 = vadd.f32 %v5624_v5, %v2029_v37  ;;  %v3624_v1 = vld [vmem:[%s3719_s25 + $0x8] sm:$0xff] }
 0x741   : > { %v3082_v54 = vpop.f32.mrf.mxu3  ;;  %v3158_v10 = vsub.f32 %v3142_v51, %v3624_v1 }
 0x742   : > { %v3189_v17 = vsub.f32 %v3173_v57, %v367_v19  ;;  %v2829_v8 = vadd.f32 %v2828_v50, %v2714_v36  ;;  %v6049_v50 = vld [vmem:[#allocation45_spill] sm:$0xff]  ;;  %v2281_v59 = vadd.f32 %v5616_v31, %v2184_v44  ;;  %v6051_v36 = vld [vmem:[#allocation50_spill] sm:$0xff] }
 0x743   : > { %v1918_v28 = vadd.f32 %v6049_v50, %v1801_v35 }
 0x744   : > { %v2986_v29 = vadd.f32 %v2985_v63, %v2829_v8  ;;  %v3205_v26 = vsub.f32 %v3157_v14, %v3189_v17  ;;  %v6052_v63 = vld [vmem:[#allocation44_spill] sm:$0xff] }
 0x745   : > { %v2035_v57 = vadd.f32 %v6050_v9, %v1918_v28  ;;  %v6055_v28 = vld [vmem:[#allocation55_spill] sm:$0xff] }
 0x746   : > { %v3083_v18 = vadd.f32 %v3082_v54, %v2986_v29  ;;  %v3221_v16 = vmul.f32 %v3205_v26, %v3205_v26  ;;  %v1805_v54 = vadd.f32 %v6052_v63, %v6051_v36 }
 0x747   : > { %v2718_v41 = vpop.f32.mrf.mxu0  ;;  %v2840_v4 = vpop.f32.mrf.mxu1  ;;  %v2188_v8 = vadd.f32 %v5634_v46, %v2035_v57 }
 0x748   : > { %v3174_v25 = vmul.f32 0.25, %v3083_v18  ;;  %v2719_v24 = vadd.f32 %v2718_v41, %v5628_v48  ;;  %v2989_v38 = vpop.f32.mrf.mxu2  ;;  %v3238_v0 = vsel %vm3237_vm14, %v3221_v16, 0.0  ;;  %v3143_v48 = vmul.f32 0.25, %v2281_v59  ;;  %v3625_v16 = vld [vmem:[%s3719_s25 + $0x10] sm:$0xff]  ;;  %v6054_v41 = vld [vmem:[#allocation53_spill] sm:$0xff] }
 0x749   : > { %v3086_v3 = vpop.f32.mrf.mxu3  ;;  %3239 = vadd.xlane.f32.xlu0 %v3238_v0  ;;  %v2285_v44 = vadd.f32 %v5626_v42, %v2188_v8 }
 0x74a   : > { %v3190_v5 = vsub.f32 %v3174_v25, %v368_v30  ;;  %v2835_v19 = vadd.f32 %v2834_v20, %v2719_v24  ;;  %v1923_v20 = vadd.f32 %v6053_v61, %v1805_v54  ;;  %v3159_v30 = vsub.f32 %v3143_v48, %v3625_v16  ;;  %v6056_v25 = vld [vmem:[#allocation52_spill] sm:$0xff] }
 0x74b   : > { %v1809_v24 = vadd.f32 %v6056_v25, %v6055_v28  ;;  %v372_v25 = vld [vmem:[%s5728_s13 + $0x28] sm:$0xff] }
 0x74c   : > { %v2990_v2 = vadd.f32 %v2989_v38, %v2835_v19  ;;  %v3206_v17 = vsub.f32 %v3158_v10, %v3190_v5  ;;  %v2041_v50 = vadd.f32 %v6054_v41, %v1923_v20  ;;  %v370_v19 = vld [vmem:[%s5728_s13 + $0x18] sm:$0xff]  ;;  %v371_v20 = vld [vmem:[%s5728_s13 + $0x20] sm:$0xff] }
 0x74e   : > { %v3087_v22 = vadd.f32 %v3086_v3, %v2990_v2  ;;  %v3222_v14 = vmul.f32 %v3206_v17, %v3206_v17  ;;  %v2192_v3 = vadd.f32 %v5644_v12, %v2041_v50  ;;  %v3626_v17 = vld [vmem:[%s3719_s25 + $0x18] sm:$0xff] }
 0x74f   : > { %v2723_v37 = vpop.f32.mrf.mxu0  ;;  %v2846_v31 = vpop.f32.mrf.mxu1 }
 0x750   : > { %v3175_v53 = vmul.f32 0.25, %v3087_v22  ;;  %v2724_v35 = vadd.f32 %v2723_v37, %v5638_v13  ;;  %v2993_v29 = vpop.f32.mrf.mxu2  ;;  %v3241_v26 = vsel %vm3237_vm14, %v3222_v14, 0.0  ;;  %v3144_v13 = vmul.f32 0.25, %v2285_v44  ;;  %v3627_v44 = vld [vmem:[%s3719_s25 + $0x20] sm:$0xff] }
 0x751   : > { %v3090_v51 = vpop.f32.mrf.mxu3  ;;  %3242 = vadd.xlane.f32.xlu2 %v3241_v26  ;;  %v2289_v54 = vadd.f32 %v5636_v62, %v2192_v3 }
 0x752   : > { %v3191_v46 = vsub.f32 %v3175_v53, %v369_v27  ;;  %v2841_v18 = vadd.f32 %v2840_v4, %v2724_v35  ;;  %v1928_v4 = vadd.f32 %v5418_v21, %v1809_v24  ;;  %v3160_v48 = vsub.f32 %v3144_v13, %v3626_v17 }
 0x753   : > { %v1813_v21 = vadd.f32 %v5423_v7, %v5458_v32 }
 0x754   : > { %v2994_v38 = vadd.f32 %v2993_v29, %v2841_v18  ;;  %v3207_v0 = vsub.f32 %v3159_v30, %v3191_v46  ;;  %v2047_v8 = vadd.f32 %v5425_v49, %v1928_v4 }
 0x756   : > { %v3091_v59 = vadd.f32 %v3090_v51, %v2994_v38  ;;  %v3223_v5 = vmul.f32 %v3207_v0, %v3207_v0  ;;  %v2196_v27 = vadd.f32 %v5654_v40, %v2047_v8 }
 0x757   : > { %v2728_v1 = vpop.f32.mrf.mxu0  ;;  %v2852_v42 = vpop.f32.mrf.mxu1 }
 0x758   : > { %v3176_v10 = vmul.f32 0.25, %v3091_v59  ;;  %v2729_v9 = vadd.f32 %v2728_v1, %v5648_v58  ;;  %v2997_v57 = vpop.f32.mrf.mxu2  ;;  %v3244_v36 = vsel %vm3237_vm14, %v3223_v5, 0.0  ;;  %v3145_v58 = vmul.f32 0.25, %v2289_v54  ;;  %v3628_v5 = vld [vmem:[%s3719_s25 + $0x28] sm:$0xff] }
 0x759   : > { %v3094_v63 = vpop.f32.mrf.mxu3  ;;  %3245 = vadd.xlane.f32.xlu1 %v3244_v36  ;;  %v2293_v32 = vadd.f32 %v5646_v6, %v2196_v27 }
 0x75a   : > { %v3192_v12 = vsub.f32 %v3176_v10, %v370_v19  ;;  %v2847_v2 = vadd.f32 %v2846_v31, %v2729_v9  ;;  %v1933_v31 = vadd.f32 %v5464_v11, %v1813_v21  ;;  %v3161_v46 = vsub.f32 %v3145_v58, %v3627_v44  ;;  %v3629_v21 = vld [vmem:[%s3719_s25 + $0x30] sm:$0xff] }
 0x75b   : > { %v1817_v11 = vadd.f32 %v5460_v45, %v5499_v23 }
 0x75c   : > { %v2998_v22 = vadd.f32 %v2997_v57, %v2847_v2  ;;  %v3208_v14 = vsub.f32 %v3160_v48, %v3192_v12  ;;  %v2053_v18 = vadd.f32 %v5472_v15, %v1933_v31  ;;  %v373_v57 = vld [vmem:[%s5728_s13 + $0x30] sm:$0xff] }
 0x75d   : > { %v1938_v38 = vadd.f32 %v5501_v60, %v1817_v11 }
 0x75e   : > { %v3095_v37 = vadd.f32 %v3094_v63, %v2998_v22  ;;  %v3224_v61 = vmul.f32 %v3208_v14, %v3208_v14  ;;  %v2200_v41 = vadd.f32 %v5664_v52, %v2053_v18 }
 0x75f   : > { %v2733_v53 = vpop.f32.mrf.mxu0  ;;  %v2858_v62 = vpop.f32.mrf.mxu1  ;;  %v2059_v1 = vadd.f32 %v5511_v55, %v1938_v38 }
 0x760   : > { %v3177_v35 = vmul.f32 0.25, %v3095_v37  ;;  %v2734_v29 = vadd.f32 %v2733_v53, %v5658_v39  ;;  %v3001_v49 = vpop.f32.mrf.mxu2  ;;  %v3247_v26 = vsel %vm3237_vm14, %v3224_v61, 0.0  ;;  %v3146_v39 = vmul.f32 0.25, %v2293_v32  ;;  %v374_v61 = vld [vmem:[%s5728_s13 + $0x38] sm:$0xff] }
 0x761   : > { %v3098_v7 = vpop.f32.mrf.mxu3  ;;  %3248 = vadd.xlane.f32.xlu0 %v3247_v26  ;;  %v2297_v3 = vadd.f32 %v5656_v47, %v2200_v41 }
 0x762   : > { %v3193_v40 = vsub.f32 %v3177_v35, %v371_v20  ;;  %v2853_v51 = vadd.f32 %v2852_v42, %v2734_v29  ;;  %v3162_v19 = vsub.f32 %v3146_v39, %v3628_v5  ;;  %v3630_v29 = vld [vmem:[%s3719_s25 + $0x38] sm:$0xff] }
 0x763   : > { %v3147_v60 = vmul.f32 0.25, %v2297_v3 }
 0x764   : > { %v3002_v16 = vadd.f32 %v3001_v49, %v2853_v51  ;;  %v3209_v30 = vsub.f32 %v3161_v46, %v3193_v40 }
 0x766   : > { %v3099_v50 = vadd.f32 %v3098_v7, %v3002_v16  ;;  %v3225_v28 = vmul.f32 %v3209_v30, %v3209_v30 }
 0x767   : > { %v2738_v24 = vpop.f32.mrf.mxu0  ;;  %v2864_v6 = vpop.f32.mrf.mxu1 }
 0x768   : > { %v3178_v0 = vmul.f32 0.25, %v3099_v50  ;;  %v2739_v13 = vadd.f32 %v2738_v24, %v5668_v56  ;;  %v3005_v15 = vpop.f32.mrf.mxu2  ;;  %v3250_v45 = vsel %vm3237_vm14, %v3225_v28, 0.0  ;;  %v2204_v56 = vadd.f32 %v5674_v34, %v2059_v1 }
 0x769   : > { %v3102_v23 = vpop.f32.mrf.mxu3  ;;  %3251 = vadd.xlane.f32.xlu2 %v3250_v45  ;;  %v3163_v34 = vsub.f32 %v3147_v60, %v3629_v21 }
 0x76a   : > { %v3194_v52 = vsub.f32 %v3178_v0, %v372_v25  ;;  %v2859_v59 = vadd.f32 %v2858_v62, %v2739_v13  ;;  %v2301_v55 = vadd.f32 %v5666_v33, %v2204_v56 }
 0x76c   : > { %v3006_v42 = vadd.f32 %v3005_v15, %v2859_v59  ;;  %v3210_v4 = vsub.f32 %v3162_v19, %v3194_v52  ;;  %v3148_v58 = vmul.f32 0.25, %v2301_v55 }
 0x76e   : > { %v3103_v10 = vadd.f32 %v3102_v23, %v3006_v42  ;;  %v3226_v9 = vmul.f32 %v3210_v4, %v3210_v4  ;;  %v3164_v49 = vsub.f32 %v3148_v58, %v3630_v29 }
 0x76f   : > { %v2743_v36 = vpop.f32.mrf.mxu0  ;;  %v2870_v63 = vpop.f32.mrf.mxu1 }
 0x770   : > { %v3179_v54 = vmul.f32 0.25, %v3103_v10  ;;  %v2744_v47 = vadd.f32 %v2743_v36, %v5676_v43  ;;  %v3009_v12 = vpop.f32.mrf.mxu2  ;;  %v3253_v2 = vsel %vm3237_vm14, %v3226_v9, 0.0 }
 0x771   : > { %v3106_v17 = vpop.f32.mrf.mxu3  ;;  %3254 = vadd.xlane.f32.xlu1 %v3253_v2 }
 0x772   : > { %v3195_v48 = vsub.f32 %v3179_v54, %v373_v57  ;;  %v2865_v8 = vadd.f32 %v2864_v6, %v2744_v47 }
 0x774   : > { %v3010_v22 = vadd.f32 %v3009_v12, %v2865_v8  ;;  %v3211_v14 = vsub.f32 %v3163_v34, %v3195_v48 }
 0x776   : > { %v3107_v27 = vadd.f32 %v3106_v17, %v3010_v22  ;;  %v3227_v37 = vmul.f32 %v3211_v14, %v3211_v14 }
 0x777   : > { %v2748_v20 = vpop.f32.mrf.mxu0  ;;  %v2876_v43 = vpop.f32.mrf.mxu1 }
 0x778   : > { %v3180_v53 = vmul.f32 0.25, %v3107_v27  ;;  %v3013_v62 = vpop.f32.mrf.mxu2  ;;  %v3256_v31 = vsel %vm3237_vm14, %v3227_v37, 0.0 }
 0x779   : > { %v3110_v35 = vpop.f32.mrf.mxu3  ;;  %3257 = vadd.xlane.f32.xlu0 %v3256_v31 }
 0x77a   : > { %v3196_v33 = vsub.f32 %v3180_v53, %v374_v61 }
 0x77c   : > { %v3212_v26 = vsub.f32 %v3164_v49, %v3196_v33 }
 0x77e   : > { %v3228_v7 = vmul.f32 %v3212_v26, %v3212_v26 }
 0x77f   : > { %v2753_v32 = vpop.f32.mrf.mxu0  ;;  %v2882_v40 = vpop.f32.mrf.mxu1 }
 0x780   : > { %v3017_v51 = vpop.f32.mrf.mxu2  ;;  %v3259_v44 = vsel %vm3237_vm14, %v3228_v7, 0.0 }
 0x781   : > { %v3114_v46 = vpop.f32.mrf.mxu3  ;;  %3260 = vadd.xlane.f32.xlu2 %v3259_v44 }
 0x787   : > { %v2758_v18 = vpop.f32.mrf.mxu0  ;;  %v2888_v11 = vpop.f32.mrf.mxu1 }
 0x788   : > { %v3021_v16 = vpop.f32.mrf.mxu2 }
 0x789   : > { %v3118_v30 = vpop.f32.mrf.mxu3 }
 0x78f   : > { %v2763_v39 = vpop.f32.mrf.mxu0  ;;  %v2894_v41 = vpop.f32.mrf.mxu1 }
 0x790   : > { %v3025_v50 = vpop.f32.mrf.mxu2 }
 0x791   : > { %v3122_v28 = vpop.f32.mrf.mxu3 }
 0x797   : > { %v2768_v25 = vpop.f32.mrf.mxu0  ;;  %v2900_v24 = vpop.f32.mrf.mxu1 }
 0x798   : > { %v3029_v6 = vpop.f32.mrf.mxu2 }
 0x799   : > { %v3126_v38 = vpop.f32.mrf.mxu3 }
 0x79f   : > { %v2773_v0 = vpop.f32.mrf.mxu0  ;;  %v2906_v13 = vpop.f32.mrf.mxu1 }
 0x7a0   : > { %v3033_v15 = vpop.f32.mrf.mxu2 }
 0x7a1   : > { %v3130_v45 = vpop.f32.mrf.mxu3 }
 0x7a7   : > { %v2778_v23 = vpop.f32.mrf.mxu0  ;;  %v2912_v3 = vpop.f32.mrf.mxu1 }
 0x7a8   : > { %v3037_v52 = vpop.f32.mrf.mxu2 }
 0x7a9   : > { %v3134_v59 = vpop.f32.mrf.mxu3 }
 0x7af   : > { %v2783_v5 = vpop.f32.mrf.mxu0 }
 0x7b0   : > { %v3041_v19 = vpop.f32.mrf.mxu2 }
 0x7b1   : > { %v3138_v1 = vpop.f32.mrf.mxu3 }
 0x7bc   : > { %v3240_v42 = vpop.xlane.xlu0 %3239 }
 0x7bd   : > { %v3319_v9 = vsel %vm3318_vm5, %v3240_v42, 0.0 }
 0x7c4   : > { %v3243_v4 = vpop.xlane.xlu2 %3242 }
 0x7c5   : > { %v3320_v10 = vsel %vm3318_vm5, %v3243_v4, 0.0 }
 0x7c6   : > { %v3321_v36 = vadd.f32 %v3320_v10, %v3319_v9 }
 0x7cc   : > { %v3246_v60 = vpop.xlane.xlu1 %3245 }
 0x7cd   : > { %v3322_v57 = vsel %vm3318_vm5, %v3246_v60, 0.0 }
 0x7ce   : > { %v3323_v47 = vadd.f32 %v3322_v57, %v3321_v36 }
 0x7d4   : > { %v3249_v56 = vpop.xlane.xlu0 %3248 }
 0x7d5   : > { %v3324_v54 = vsel %vm3318_vm5, %v3249_v56, 0.0 }
 0x7d6   : > { %v3325_v17 = vadd.f32 %v3324_v54, %v3323_v47 }
 0x7dc   : > { %v3252_v63 = vpop.xlane.xlu2 %3251 }
 0x7dd   : > { %v3326_v2 = vsel %vm3318_vm5, %v3252_v63, 0.0 }
 0x7de   : > { %v3327_v8 = vadd.f32 %v3326_v2, %v3325_v17 }
 0x7e4   : > { %v3255_v12 = vpop.xlane.xlu1 %3254 }
 0x7e5   : > { %v3328_v48 = vsel %vm3318_vm5, %v3255_v12, 0.0 }
 0x7e6   : > { %v3329_v34 = vadd.f32 %v3328_v48, %v3327_v8 }
 0x7ec   : > { %v3258_v55 = vpop.xlane.xlu0 %3257 }
 0x7ed   : > { %v3330_v21 = vsel %vm3318_vm5, %v3258_v55, 0.0 }
 0x7ee   : > { %v3331_v22 = vadd.f32 %v3330_v21, %v3329_v34 }
 0x7f4   : > { %v3261_v14 = vpop.xlane.xlu2 %3260 }
 0x7f5   : > { %v3332_v58 = vsel %vm3318_vm5, %v3261_v14, 0.0 }
 0x7f6   : > { %v3333_v27 = vadd.f32 %v3332_v58, %v3331_v22 }
 0x7f8   : > { %3350 = vadd.xlane.f32.xlu1 %v3333_v27 }
 0x86b   : > { %v3351_v37 = vpop.xlane.xlu1 %3350 }
 0x86c   : > { %v3352_v61 = vrot.slane %v3351_v37, 4 }
 0x86e   : > { %v3353_v20 = vadd.f32 %v3352_v61, %v3351_v37 }
 0x870   : > { %v3354_v43 = vrot.slane %v3353_v20, 2 }
 0x872   : > { %v3355_v53 = vadd.f32 %v3354_v43, %v3353_v20 }
 0x874   : > { %v3356_v62 = vrot.slane %v3355_v53, 1 }
 0x876   : > { %v3357_v31 = vadd.f32 %v3356_v62, %v3355_v53 }
 0x878   : > { %3571 = vpush %v3357_v31 }
 0x8a9   : > { %s3572_s17 = spop %3571 }
 0x8aa   : > { %v3359_v35 = vstv %s3572_s17 }
 0x8ab   : > { %3361 = vst.msk [vmem:[%s349_s16] sm:$0x1] %vm3360_vm10, %v3359_v35 }
 0x8ac PF: > { %s15_s20 = sadd.s32 1, %s3653_s20   ;;  %s6057_s18 = smov %s3649_s19 }
 0x8ad   : > { %p12_p5 = scmp.ge.s32.totalorder %s15_s20, 4   ;;  %s6058_s19 = smov %s6060_s21 }
 0x8af   :  { %14 = sbr.rel (!%p12_p5) target bundleno = 2 (0x2), region = 82 }

</bundles_post_ra>
